<compile_context>
chip_gen: v7x
topology: tpu7x:2x2x1
jax: 0.10.0
libtpu: 0.0.40
codegen_flags: <defaults>
</compile_context>

<pallas_src>
import functools

import jax
import jax.numpy as jnp
import numpy as np
from jax.experimental import pallas as pl
from jax.experimental.pallas import tpu as pltpu

_EPS = 1e-5  # PyTorch InstanceNorm2d default eps (affine=False)
_SHIFTS3x3 = tuple((dy, dx) for dy in (-1, 0, 1) for dx in (-1, 0, 1))


def _round_up(n, m):
    return (n + m - 1) // m * m


# --------------------------------- kernel -----------------------------------

def _decoder_kernel(x_ref, masks_ref, wa_ref, wcat_ref, bias_ref, out_ref, *,
                    img_w, G):
    B, _, P = x_ref.shape
    c2 = 2 * G

    masks = masks_ref[...]                       # (9, P)    f32 0/1 boundary masks
    wa = wa_ref[...]                             # (8G, 9G)  bf16: dec | emb | att2 | rgb
    wcat = wcat_ref[...]                         # (2G, 18G) bf16: att1 + to_edge + to_line
    bias = bias_ref[...]                         # (8G, 1)   f32:  emb | cat | att2 | rgb
    w_dec, w_emb, w_att2, w_rgb = (wa[i * c2:(i + 1) * c2] for i in range(4))
    b_emb, b_cat, b_att2, b_rgb = (bias[i * c2:(i + 1) * c2] for i in range(4))
    pad2 = jnp.zeros((2, P), jnp.float32)        # hoisted: pads the output slab to 8 rows

    def patches(a):
        """(C, P) f32 -> (9*C, P) bf16 im2col matrix for a 3x3 'same' conv.

        C is a multiple of 8, so every piece is sublane-tile aligned.  Shifted
        copies are XLU lane rotations; out-of-bounds taps are zeroed with the
        precomputed boundary masks (the center tap needs no mask).
        """
        pieces = []
        for t, (dy, dx) in enumerate(_SHIFTS3x3):
            s = dy * img_w + dx
            if s == 0:
                piece = a
            else:
                piece = pltpu.roll(a, shift=(-s) % P, axis=1) * masks[t:t + 1, :]
            pieces.append(piece)
        # Single cast at the dot (keeps element-wise math in f32 for v5e).
        return jnp.concatenate(pieces, axis=0).astype(jnp.bfloat16)

    def conv(a, w, b=None):
        y = jnp.dot(w, patches(a), preferred_element_type=jnp.float32)
        return y if b is None else y + b

    def inorm_relu(y):
        # One-pass statistics: v = E[y^2] - m^2, (y - m) computed once.
        inv_n = 1.0 / y.shape[-1]
        m = jnp.sum(y, axis=1, keepdims=True) * inv_n
        ms = jnp.sum(y * y, axis=1, keepdims=True) * inv_n
        v = jnp.maximum(ms - m * m, 0.0)
        return jnp.maximum((y - m) * jax.lax.rsqrt(v + _EPS), 0.0)

    for b_i in range(B):                          # small static unroll over the image block
        xf = x_ref[b_i]                           # (G, P), channels zero-padded to G
        # decoder_conv: SNGateConv (no bias) -> x*sigmoid(g) -> InstanceNorm -> ReLU
        g = conv(xf, w_dec)                       # (2G, P): x-part | gate
        xa = inorm_relu(g[:G] * jax.nn.sigmoid(g[G:]))
        # emb_head: Conv(bias) -> InstanceNorm -> ReLU
        emb = inorm_relu(conv(xa, w_emb, b_emb))  # (2G, P): e | l
        e, l = emb[:G], emb[G:]
        # att_head[0] + to_edge + to_line fused over the shared emb patches
        cat = conv(emb, wcat, b_cat)              # rows: h(0..G-1) | edge(G) | line(G+1)
        h = inorm_relu(cat[:G])
        el = jax.nn.sigmoid(cat[G:G + 2])         # (2, P): edge, line
        # att_head[3:]: Conv(bias) -> Sigmoid
        att = jax.nn.sigmoid(conv(h, w_att2, b_att2)[0:1])      # (1, P)
        # x_combine = e*att + l*(1-att);  to_rgb: Conv(bias) -> Tanh
        comb = e * att + l * (1.0 - att)
        rgb = jnp.tanh(conv(comb, w_rgb, b_rgb)[0:3])            # (3, P)
        # One lane-dense (8, P) slab per image: [r, g, b, edge, line, att, 0, 0]
        out_ref[b_i] = jnp.concatenate([rgb, el, att, pad2], axis=0)


# --------------------------- parameter preparation ---------------------------

def _boundary_masks(H, W):
    """(9, H*W) 0/1 masks: is tap (dy,dx) in-bounds at each flat position."""
    y, x = np.divmod(np.arange(H * W), W)
    m = np.stack([((y + dy >= 0) & (y + dy < H) & (x + dx >= 0) & (x + dx < W))
                  for dy, dx in _SHIFTS3x3]).astype(np.float32)
    return jnp.asarray(m)


def _place_conv(dst, w, out_row, in_col, tap_stride):
    """Scatter an OIHW (Cout, Cin, 3, 3) conv weight into the packed im2col matrix.

    Output channel o -> row out_row + o.  Input channel j at tap t = ky*3 + kx
    -> column t*tap_stride + in_col + j (matches the patches() row ordering).
    """
    w = np.asarray(w, np.float32)
    co, ci = w.shape[0], w.shape[1]
    wt = np.transpose(w, (0, 2, 3, 1)).reshape(co, 9, ci)
    for t in range(9):
        c0 = t * tap_stride + in_col
        dst[out_row:out_row + co, c0:c0 + ci] = wt[:, t, :]


def pack_decoder_params(p, input_channels, emb_channels):
    """Pad channel groups to a multiple of 8 and pack all weights/biases into
    three kernel operands (wa / wcat / bias).  Runs once, outside jit."""
    deconv_ch = input_channels                    # stride == 1
    G = _round_up(max(input_channels, deconv_ch, emb_channels), 8)

    # wa: four 2G-row chunks over 9*G im2col columns: dec | emb | att2 | rgb.
    wa = np.zeros((8 * G, 9 * G), np.float32)
    _place_conv(wa, p["dec_w"][:deconv_ch], 0 * G, 0, G)        # gate conv: x-part
    _place_conv(wa, p["dec_w"][deconv_ch:], 1 * G, 0, G)        # gate conv: gate
    _place_conv(wa, p["emb_w"][:emb_channels], 2 * G, 0, G)     # emb: e group
    _place_conv(wa, p["emb_w"][emb_channels:], 3 * G, 0, G)     # emb: l group
    _place_conv(wa, p["att2_w"], 4 * G, 0, G)                   # att_head[3]
    _place_conv(wa, p["rgb_w"], 6 * G, 0, G)                    # to_rgb

    # wcat: att_head[0] + to_edge + to_line over the (2G-channel) emb patches.
    wcat = np.zeros((2 * G, 9 * 2 * G), np.float32)
    _place_conv(wcat, p["att1_w"][:, :emb_channels], 0, 0, 2 * G)   # reads e group
    _place_conv(wcat, p["att1_w"][:, emb_channels:], 0, G, 2 * G)   # reads l group
    _place_conv(wcat, p["edge_w"], G, 0, 2 * G)                     # edge <- e
    _place_conv(wcat, p["line_w"], G + 1, G, 2 * G)                 # line <- l

    # bias: four 2G-row chunks: emb | cat | att2 | rgb (decoder gate conv has no bias).
    bias = np.zeros((8 * G, 1), np.float32)
    bias[0:emb_channels, 0] = np.asarray(p["emb_b"][:emb_channels])
    bias[G:G + emb_channels, 0] = np.asarray(p["emb_b"][emb_channels:])
    bias[2 * G:2 * G + emb_channels, 0] = np.asarray(p["att1_b"])
    bias[3 * G:3 * G + 1, 0] = np.asarray(p["edge_b"])
    bias[3 * G + 1:3 * G + 2, 0] = np.asarray(p["line_b"])
    bias[4 * G:4 * G + 1, 0] = np.asarray(p["att2_b"])
    bias[6 * G:6 * G + 3, 0] = np.asarray(p["rgb_b"])

    return {"wa": jnp.asarray(wa, jnp.bfloat16),
            "wcat": jnp.asarray(wcat, jnp.bfloat16),
            "bias": jnp.asarray(bias, jnp.float32)}


# ------------------------------ public forward -------------------------------

@functools.partial(jax.jit, static_argnames=("images_per_step",))
def separable_decoder_forward(x_nchw, packed, images_per_step=None):
    """Pallas implementation of SeparableDecoder.forward (stride=1, no proj)."""
    N, Cin, H, W = x_nchw.shape
    P = H * W
    wa, wcat, bias = packed["wa"], packed["wcat"], packed["bias"]
    G = wa.shape[0] // 8
    assert Cin <= G, (Cin, G)

    # Images per grid step: batch to amortize per-step overhead and tiny DMAs,
    # but keep >= 2 "parallel" steps so both v7x TensorCores get work.
    B = images_per_step if images_per_step is not None else max(1, -(-N // 2))
    Nb = -(-N // B) * B

    x_flat = x_nchw.reshape(N, Cin, P)
    if (G - Cin) or (Nb - N):       # pad channels to the 8-sublane multiple, batch to Nb
        x_flat = jnp.pad(x_flat, ((0, Nb - N), (0, G - Cin), (0, 0)))
    masks = _boundary_masks(H, W)

    grid_spec = pltpu.PrefetchScalarGridSpec(
        num_scalar_prefetch=0,
        grid=(Nb // B,),
        in_specs=[
            pl.BlockSpec((B, G, P), lambda i: (i, 0, 0)),     # image block
            pl.BlockSpec(masks.shape, lambda i: (0, 0)),      # fetched once (constant idx)
            pl.BlockSpec(wa.shape, lambda i: (0, 0)),
            pl.BlockSpec(wcat.shape, lambda i: (0, 0)),
            pl.BlockSpec(bias.shape, lambda i: (0, 0)),
        ],
        out_specs=pl.BlockSpec((B, 8, P), lambda i: (i, 0, 0)),
    )

    out = pl.pallas_call(
        functools.partial(_decoder_kernel, img_w=W, G=G),
        out_shape=jax.ShapeDtypeStruct((Nb, 8, P), jnp.float32),
        grid_spec=grid_spec,
        # VMEM use per step is tiny at these shapes on every generation; set
        # vmem_limit_bytes here if H*W or images_per_step are scaled up
        # (64 MiB physical on v7x, 16 MiB scoped default on v5e).
        compiler_params=pltpu.CompilerParams(
            dimension_semantics=("parallel",)),
    )(x_flat, masks, wa, wcat, bias)

    out = out[:N].reshape(N, 8, H, W)
    return out[:, 0:3], out[:, 3:4], out[:, 4:5], out[:, 5:6]


# ------------------------------ parameter init --------------------------------

def _spectral_normalize(w, iters=30):
    # Converged power iteration: inference-time stand-in for nn.utils.spectral_norm.
    # TODO(synk): PyTorch's single stateful power-iteration-per-forward is not reproduced.
    mat = np.asarray(w).reshape(w.shape[0], -1)
    v = np.ones((mat.shape[1],), np.float32) / np.sqrt(mat.shape[1])
    u = mat @ v
    for _ in range(iters):
        u = mat @ v
        u = u / (np.linalg.norm(u) + 1e-12)
        v = mat.T @ u
        v = v / (np.linalg.norm(v) + 1e-12)
    sigma = float(u @ (mat @ v))
    return w / sigma


def init_params(key, input_channels, emb_channels):
    deconv_ch = input_channels  # stride == 1
    ks = jax.random.split(key, 13)

    def wconv(k, cout, cin):
        return jax.random.normal(k, (cout, cin, 3, 3), jnp.float32) / np.sqrt(cin * 9)

    def bias(k, cout):
        return jax.random.normal(k, (cout,), jnp.float32) * 0.01

    return {
        "dec_w": _spectral_normalize(wconv(ks[0], 2 * deconv_ch, input_channels)),
        "emb_w": wconv(ks[1], 2 * emb_channels, deconv_ch),
        "emb_b": bias(ks[2], 2 * emb_channels),
        "att1_w": wconv(ks[3], emb_channels, 2 * emb_channels),
        "att1_b": bias(ks[4], emb_channels),
        "att2_w": wconv(ks[5], 1, emb_channels),
        "att2_b": bias(ks[6], 1),
        "edge_w": wconv(ks[7], 1, emb_channels),
        "edge_b": bias(ks[8], 1),
        "line_w": wconv(ks[9], 1, emb_channels),
        "line_b": bias(ks[10], 1),
        "rgb_w": wconv(ks[11], 3, emb_channels),
        "rgb_b": bias(ks[12], 3),
    }


# ------------------------------ pure-JAX reference ----------------------------

def _conv_ref(x, w, b=None):
    y = jax.lax.conv_general_dilated(
        x, w, (1, 1), "SAME",
        dimension_numbers=("NCHW", "OIHW", "NCHW"),
        precision=jax.lax.Precision.HIGHEST)
    if b is not None:
        y = y + b.reshape(1, -1, 1, 1)
    return y


def _in_relu_ref(y):
    m = jnp.mean(y, axis=(2, 3), keepdims=True)
    v = jnp.mean((y - m) ** 2, axis=(2, 3), keepdims=True)
    return jnp.maximum((y - m) * jax.lax.rsqrt(v + _EPS), 0.0)


def reference_forward(x, p, emb_ch):
    g = _conv_ref(x, p["dec_w"])
    dc = g.shape[1] // 2
    xa = _in_relu_ref(g[:, :dc] * jax.nn.sigmoid(g[:, dc:]))
    emb = _in_relu_ref(_conv_ref(xa, p["emb_w"], p["emb_b"]))
    e, l = emb[:, :emb_ch], emb[:, emb_ch:]
    edge = jax.nn.sigmoid(_conv_ref(e, p["edge_w"], p["edge_b"]))
    line = jax.nn.sigmoid(_conv_ref(l, p["line_w"], p["line_b"]))
    h = _in_relu_ref(_conv_ref(emb, p["att1_w"], p["att1_b"]))
    att = jax.nn.sigmoid(_conv_ref(h, p["att2_w"], p["att2_b"]))
    comb = e * att + l * (1.0 - att)
    rgb = jnp.tanh(_conv_ref(comb, p["rgb_w"], p["rgb_b"]))
    return rgb, edge, line, att


# ------------------------------------ main ------------------------------------

if __name__ == "__main__":
    input_channels, emb_channels = 4, 4
    N, H, W = 4, 16, 16   # N=4 -> 2 "parallel" grid steps x 2 images per step

    key = jax.random.PRNGKey(0)
    kx, kp = jax.random.split(key)
    params = init_params(kp, input_channels, emb_channels)
    x = jax.random.normal(kx, (N, input_channels, H, W), jnp.float32)

    packed = pack_decoder_params(params, input_channels, emb_channels)
    outs = jax.block_until_ready(separable_decoder_forward(x, packed))
    refs = jax.block_until_ready(reference_forward(x, params, emb_channels))

    expected_shapes = [(N, 3, H, W), (N, 1, H, W), (N, 1, H, W), (N, 1, H, W)]
    for o, r, s in zip(outs, refs, expected_shapes):
        assert o.shape == s and r.shape == s, (o.shape, r.shape, s)
        err = float(jnp.max(jnp.abs(o - r)))
        # Kernel matmuls run in bf16 (same numerics as the MXU's DEFAULT
        # single-bf16-pass behaviour); the reference is f32/HIGHEST -> 5e-2 bound.
        assert err < 5e-2, err

    print("KERNEL_OK")
</pallas_src>

<mosaic_0001>
module attributes {stable_mosaic.version = 11 : i64} {
  func.func @_decoder_kernel(%arg0: i32, %arg1: memref<2x8x256xf32, #tpu.memory_space<vmem>>, %arg2: memref<9x256xf32, #tpu.memory_space<vmem>>, %arg3: memref<64x72xbf16, #tpu.memory_space<vmem>>, %arg4: memref<16x144xbf16, #tpu.memory_space<vmem>>, %arg5: memref<64x1xf32, #tpu.memory_space<vmem>>, %arg6: memref<2x8x256xf32, #tpu.memory_space<vmem>>) attributes {dimension_semantics = [#tpu.dimension_semantics<parallel>], iteration_bounds = array<i64: 2>, scalar_prefetch = 0 : i64, scratch_operands = 0 : i64, tpu.core_type = #tpu.core_type<tc>, window_params = [{transform_indices = @transform_0, window_bounds = array<i64: 2, 8, 256>}, {pipeline_mode = #tpu.pipeline_mode<synchronous>, transform_indices = @transform_1, window_bounds = array<i64: 9, 256>}, {pipeline_mode = #tpu.pipeline_mode<synchronous>, transform_indices = @transform_2, window_bounds = array<i64: 64, 72>}, {pipeline_mode = #tpu.pipeline_mode<synchronous>, transform_indices = @transform_3, window_bounds = array<i64: 16, 144>}, {pipeline_mode = #tpu.pipeline_mode<synchronous>, transform_indices = @transform_4, window_bounds = array<i64: 64, 1>}, {transform_indices = @transform_5, window_bounds = array<i64: 2, 8, 256>}]} {
    %c0 = arith.constant 0 : index
    %c0_0 = arith.constant 0 : index
    %0 = vector.load %arg2[%c0, %c0_0] : memref<9x256xf32, #tpu.memory_space<vmem>>, vector<9x256xf32>
    %c0_1 = arith.constant 0 : index
    %c0_2 = arith.constant 0 : index
    %1 = vector.load %arg3[%c0_1, %c0_2] : memref<64x72xbf16, #tpu.memory_space<vmem>>, vector<64x72xbf16>
    %c0_3 = arith.constant 0 : index
    %c0_4 = arith.constant 0 : index
    %2 = vector.load %arg4[%c0_3, %c0_4] : memref<16x144xbf16, #tpu.memory_space<vmem>>, vector<16x144xbf16>
    %c0_5 = arith.constant 0 : index
    %c0_6 = arith.constant 0 : index
    %3 = vector.load %arg5[%c0_5, %c0_6] : memref<64x1xf32, #tpu.memory_space<vmem>>, vector<64x1xf32>
    %4 = vector.extract_strided_slice %1 {offsets = [0, 0], sizes = [16, 72], strides = [1, 1]} : vector<64x72xbf16> to vector<16x72xbf16>
    %5 = vector.extract_strided_slice %1 {offsets = [16, 0], sizes = [16, 72], strides = [1, 1]} : vector<64x72xbf16> to vector<16x72xbf16>
    %6 = vector.extract_strided_slice %1 {offsets = [32, 0], sizes = [16, 72], strides = [1, 1]} : vector<64x72xbf16> to vector<16x72xbf16>
    %7 = vector.extract_strided_slice %1 {offsets = [48, 0], sizes = [16, 72], strides = [1, 1]} : vector<64x72xbf16> to vector<16x72xbf16>
    %8 = vector.extract_strided_slice %3 {offsets = [0, 0], sizes = [16, 1], strides = [1, 1]} : vector<64x1xf32> to vector<16x1xf32>
    %9 = vector.extract_strided_slice %3 {offsets = [16, 0], sizes = [16, 1], strides = [1, 1]} : vector<64x1xf32> to vector<16x1xf32>
    %10 = vector.extract_strided_slice %3 {offsets = [32, 0], sizes = [16, 1], strides = [1, 1]} : vector<64x1xf32> to vector<16x1xf32>
    %11 = vector.extract_strided_slice %3 {offsets = [48, 0], sizes = [16, 1], strides = [1, 1]} : vector<64x1xf32> to vector<16x1xf32>
    %cst = arith.constant 0.000000e+00 : f32
    %12 = vector.broadcast %cst : f32 to vector<2x256xf32>
    %c0_7 = arith.constant 0 : index
    %c0_8 = arith.constant 0 : index
    %c0_9 = arith.constant 0 : index
    %13 = vector.load %arg1[%c0_7, %c0_8, %c0_9] : memref<2x8x256xf32, #tpu.memory_space<vmem>>, vector<1x8x256xf32>
    %14 = vector.shape_cast %13 : vector<1x8x256xf32> to vector<8x256xf32>
    %c17_i32 = arith.constant 17 : i32
    %15 = tpu.dynamic_rotate %14 by %c17_i32 dim 1 : vector<8x256xf32>, i32 -> vector<8x256xf32>
    %16 = vector.extract_strided_slice %0 {offsets = [0, 0], sizes = [1, 256], strides = [1, 1]} : vector<9x256xf32> to vector<1x256xf32>
    %17 = vector.broadcast %16 : vector<1x256xf32> to vector<8x256xf32>
    %18 = arith.mulf %15, %17 : vector<8x256xf32>
    %c16_i32 = arith.constant 16 : i32
    %19 = tpu.dynamic_rotate %14 by %c16_i32 dim 1 : vector<8x256xf32>, i32 -> vector<8x256xf32>
    %20 = vector.extract_strided_slice %0 {offsets = [1, 0], sizes = [1, 256], strides = [1, 1]} : vector<9x256xf32> to vector<1x256xf32>
    %21 = vector.broadcast %20 : vector<1x256xf32> to vector<8x256xf32>
    %22 = arith.mulf %19, %21 : vector<8x256xf32>
    %c15_i32 = arith.constant 15 : i32
    %23 = tpu.dynamic_rotate %14 by %c15_i32 dim 1 : vector<8x256xf32>, i32 -> vector<8x256xf32>
    %24 = vector.extract_strided_slice %0 {offsets = [2, 0], sizes = [1, 256], strides = [1, 1]} : vector<9x256xf32> to vector<1x256xf32>
    %25 = vector.broadcast %24 : vector<1x256xf32> to vector<8x256xf32>
    %26 = arith.mulf %23, %25 : vector<8x256xf32>
    %c1_i32 = arith.constant 1 : i32
    %27 = tpu.dynamic_rotate %14 by %c1_i32 dim 1 : vector<8x256xf32>, i32 -> vector<8x256xf32>
    %28 = vector.extract_strided_slice %0 {offsets = [3, 0], sizes = [1, 256], strides = [1, 1]} : vector<9x256xf32> to vector<1x256xf32>
    %29 = vector.broadcast %28 : vector<1x256xf32> to vector<8x256xf32>
    %30 = arith.mulf %27, %29 : vector<8x256xf32>
    %c255_i32 = arith.constant 255 : i32
    %31 = tpu.dynamic_rotate %14 by %c255_i32 dim 1 : vector<8x256xf32>, i32 -> vector<8x256xf32>
    %32 = vector.extract_strided_slice %0 {offsets = [5, 0], sizes = [1, 256], strides = [1, 1]} : vector<9x256xf32> to vector<1x256xf32>
    %33 = vector.broadcast %32 : vector<1x256xf32> to vector<8x256xf32>
    %34 = arith.mulf %31, %33 : vector<8x256xf32>
    %c241_i32 = arith.constant 241 : i32
    %35 = tpu.dynamic_rotate %14 by %c241_i32 dim 1 : vector<8x256xf32>, i32 -> vector<8x256xf32>
    %36 = vector.extract_strided_slice %0 {offsets = [6, 0], sizes = [1, 256], strides = [1, 1]} : vector<9x256xf32> to vector<1x256xf32>
    %37 = vector.broadcast %36 : vector<1x256xf32> to vector<8x256xf32>
    %38 = arith.mulf %35, %37 : vector<8x256xf32>
    %c240_i32 = arith.constant 240 : i32
    %39 = tpu.dynamic_rotate %14 by %c240_i32 dim 1 : vector<8x256xf32>, i32 -> vector<8x256xf32>
    %40 = vector.extract_strided_slice %0 {offsets = [7, 0], sizes = [1, 256], strides = [1, 1]} : vector<9x256xf32> to vector<1x256xf32>
    %41 = vector.broadcast %40 : vector<1x256xf32> to vector<8x256xf32>
    %42 = arith.mulf %39, %41 : vector<8x256xf32>
    %c239_i32 = arith.constant 239 : i32
    %43 = tpu.dynamic_rotate %14 by %c239_i32 dim 1 : vector<8x256xf32>, i32 -> vector<8x256xf32>
    %44 = vector.extract_strided_slice %0 {offsets = [8, 0], sizes = [1, 256], strides = [1, 1]} : vector<9x256xf32> to vector<1x256xf32>
    %45 = vector.broadcast %44 : vector<1x256xf32> to vector<8x256xf32>
    %46 = arith.mulf %43, %45 : vector<8x256xf32>
    %47 = tpu.concatenate %18, %22, %26, %30, %14, %34, %38, %42, %46 in 0 : vector<8x256xf32>, vector<8x256xf32>, vector<8x256xf32>, vector<8x256xf32>, vector<8x256xf32>, vector<8x256xf32>, vector<8x256xf32>, vector<8x256xf32>, vector<8x256xf32> -> vector<72x256xf32>
    %48 = arith.truncf %47 : vector<72x256xf32> to vector<72x256xbf16>
    %cst_10 = arith.constant dense<0.000000e+00> : vector<16x256xf32>
    %49 = tpu.matmul %4, %48, %cst_10 {dimension_numbers = #tpu.dot_dimension_numbers<[1], [0], [0], [1], [0, 0, 1, 1], [], []>} : vector<16x72xbf16>, vector<72x256xbf16>, vector<16x256xf32> -> vector<16x256xf32>
    %50 = vector.extract_strided_slice %49 {offsets = [0, 0], sizes = [8, 256], strides = [1, 1]} : vector<16x256xf32> to vector<8x256xf32>
    %51 = vector.extract_strided_slice %49 {offsets = [8, 0], sizes = [8, 256], strides = [1, 1]} : vector<16x256xf32> to vector<8x256xf32>
    %52 = arith.negf %51 : vector<8x256xf32>
    %53 = math.exp %52 : vector<8x256xf32>
    %cst_11 = arith.constant 1.000000e+00 : f32
    %54 = vector.broadcast %cst_11 : f32 to vector<8x256xf32>
    %55 = arith.addf %54, %53 : vector<8x256xf32>
    %56 = arith.divf %54, %55 : vector<8x256xf32>
    %57 = arith.mulf %50, %56 : vector<8x256xf32>
    %cst_12 = arith.constant dense<0.000000e+00> : vector<8xf32>
    %58 = vector.multi_reduction <add>, %57, %cst_12 [1] : vector<8x256xf32> to vector<8xf32>
    %59 = vector.shape_cast %58 : vector<8xf32> to vector<8x1xf32>
    %cst_13 = arith.constant 3.906250e-03 : f32
    %60 = vector.broadcast %cst_13 : f32 to vector<8x1xf32>
    %61 = arith.mulf %59, %60 : vector<8x1xf32>
    %62 = arith.mulf %57, %57 : vector<8x256xf32>
    %cst_14 = arith.constant dense<0.000000e+00> : vector<8xf32>
    %63 = vector.multi_reduction <add>, %62, %cst_14 [1] : vector<8x256xf32> to vector<8xf32>
    %64 = vector.shape_cast %63 : vector<8xf32> to vector<8x1xf32>
    %cst_15 = arith.constant 3.906250e-03 : f32
    %65 = vector.broadcast %cst_15 : f32 to vector<8x1xf32>
    %66 = arith.mulf %64, %65 : vector<8x1xf32>
    %67 = arith.mulf %61, %61 : vector<8x1xf32>
    %68 = arith.subf %66, %67 : vector<8x1xf32>
    %cst_16 = arith.constant 0.000000e+00 : f32
    %69 = vector.broadcast %cst_16 : f32 to vector<8x1xf32>
    %70 = arith.maximumf %68, %69 : vector<8x1xf32>
    %71 = vector.broadcast %61 : vector<8x1xf32> to vector<8x256xf32>
    %72 = arith.subf %57, %71 : vector<8x256xf32>
    %cst_17 = arith.constant 9.99999974E-6 : f32
    %73 = vector.broadcast %cst_17 : f32 to vector<8x1xf32>
    %74 = arith.addf %70, %73 : vector<8x1xf32>
    %75 = math.rsqrt %74 : vector<8x1xf32>
    %76 = vector.broadcast %75 : vector<8x1xf32> to vector<8x256xf32>
    %77 = arith.mulf %72, %76 : vector<8x256xf32>
    %cst_18 = arith.constant 0.000000e+00 : f32
    %78 = vector.broadcast %cst_18 : f32 to vector<8x256xf32>
    %79 = arith.maximumf %77, %78 : vector<8x256xf32>
    %c17_i32_19 = arith.constant 17 : i32
    %80 = tpu.dynamic_rotate %79 by %c17_i32_19 dim 1 : vector<8x256xf32>, i32 -> vector<8x256xf32>
    %81 = vector.extract_strided_slice %0 {offsets = [0, 0], sizes = [1, 256], strides = [1, 1]} : vector<9x256xf32> to vector<1x256xf32>
    %82 = vector.broadcast %81 : vector<1x256xf32> to vector<8x256xf32>
    %83 = arith.mulf %80, %82 : vector<8x256xf32>
    %c16_i32_20 = arith.constant 16 : i32
    %84 = tpu.dynamic_rotate %79 by %c16_i32_20 dim 1 : vector<8x256xf32>, i32 -> vector<8x256xf32>
    %85 = vector.extract_strided_slice %0 {offsets = [1, 0], sizes = [1, 256], strides = [1, 1]} : vector<9x256xf32> to vector<1x256xf32>
    %86 = vector.broadcast %85 : vector<1x256xf32> to vector<8x256xf32>
    %87 = arith.mulf %84, %86 : vector<8x256xf32>
    %c15_i32_21 = arith.constant 15 : i32
    %88 = tpu.dynamic_rotate %79 by %c15_i32_21 dim 1 : vector<8x256xf32>, i32 -> vector<8x256xf32>
    %89 = vector.extract_strided_slice %0 {offsets = [2, 0], sizes = [1, 256], strides = [1, 1]} : vector<9x256xf32> to vector<1x256xf32>
    %90 = vector.broadcast %89 : vector<1x256xf32> to vector<8x256xf32>
    %91 = arith.mulf %88, %90 : vector<8x256xf32>
    %c1_i32_22 = arith.constant 1 : i32
    %92 = tpu.dynamic_rotate %79 by %c1_i32_22 dim 1 : vector<8x256xf32>, i32 -> vector<8x256xf32>
    %93 = vector.extract_strided_slice %0 {offsets = [3, 0], sizes = [1, 256], strides = [1, 1]} : vector<9x256xf32> to vector<1x256xf32>
    %94 = vector.broadcast %93 : vector<1x256xf32> to vector<8x256xf32>
    %95 = arith.mulf %92, %94 : vector<8x256xf32>
    %c255_i32_23 = arith.constant 255 : i32
    %96 = tpu.dynamic_rotate %79 by %c255_i32_23 dim 1 : vector<8x256xf32>, i32 -> vector<8x256xf32>
    %97 = vector.extract_strided_slice %0 {offsets = [5, 0], sizes = [1, 256], strides = [1, 1]} : vector<9x256xf32> to vector<1x256xf32>
    %98 = vector.broadcast %97 : vector<1x256xf32> to vector<8x256xf32>
    %99 = arith.mulf %96, %98 : vector<8x256xf32>
    %c241_i32_24 = arith.constant 241 : i32
    %100 = tpu.dynamic_rotate %79 by %c241_i32_24 dim 1 : vector<8x256xf32>, i32 -> vector<8x256xf32>
    %101 = vector.extract_strided_slice %0 {offsets = [6, 0], sizes = [1, 256], strides = [1, 1]} : vector<9x256xf32> to vector<1x256xf32>
    %102 = vector.broadcast %101 : vector<1x256xf32> to vector<8x256xf32>
    %103 = arith.mulf %100, %102 : vector<8x256xf32>
    %c240_i32_25 = arith.constant 240 : i32
    %104 = tpu.dynamic_rotate %79 by %c240_i32_25 dim 1 : vector<8x256xf32>, i32 -> vector<8x256xf32>
    %105 = vector.extract_strided_slice %0 {offsets = [7, 0], sizes = [1, 256], strides = [1, 1]} : vector<9x256xf32> to vector<1x256xf32>
    %106 = vector.broadcast %105 : vector<1x256xf32> to vector<8x256xf32>
    %107 = arith.mulf %104, %106 : vector<8x256xf32>
    %c239_i32_26 = arith.constant 239 : i32
    %108 = tpu.dynamic_rotate %79 by %c239_i32_26 dim 1 : vector<8x256xf32>, i32 -> vector<8x256xf32>
    %109 = vector.extract_strided_slice %0 {offsets = [8, 0], sizes = [1, 256], strides = [1, 1]} : vector<9x256xf32> to vector<1x256xf32>
    %110 = vector.broadcast %109 : vector<1x256xf32> to vector<8x256xf32>
    %111 = arith.mulf %108, %110 : vector<8x256xf32>
    %112 = tpu.concatenate %83, %87, %91, %95, %79, %99, %103, %107, %111 in 0 : vector<8x256xf32>, vector<8x256xf32>, vector<8x256xf32>, vector<8x256xf32>, vector<8x256xf32>, vector<8x256xf32>, vector<8x256xf32>, vector<8x256xf32>, vector<8x256xf32> -> vector<72x256xf32>
    %113 = arith.truncf %112 : vector<72x256xf32> to vector<72x256xbf16>
    %cst_27 = arith.constant dense<0.000000e+00> : vector<16x256xf32>
    %114 = tpu.matmul %5, %113, %cst_27 {dimension_numbers = #tpu.dot_dimension_numbers<[1], [0], [0], [1], [0, 0, 1, 1], [], []>} : vector<16x72xbf16>, vector<72x256xbf16>, vector<16x256xf32> -> vector<16x256xf32>
    %115 = vector.broadcast %8 : vector<16x1xf32> to vector<16x256xf32>
    %116 = arith.addf %114, %115 : vector<16x256xf32>
    %cst_28 = arith.constant dense<0.000000e+00> : vector<16xf32>
    %117 = vector.multi_reduction <add>, %116, %cst_28 [1] : vector<16x256xf32> to vector<16xf32>
    %118 = vector.shape_cast %117 : vector<16xf32> to vector<16x1xf32>
    %cst_29 = arith.constant 3.906250e-03 : f32
    %119 = vector.broadcast %cst_29 : f32 to vector<16x1xf32>
    %120 = arith.mulf %118, %119 : vector<16x1xf32>
    %121 = arith.mulf %116, %116 : vector<16x256xf32>
    %cst_30 = arith.constant dense<0.000000e+00> : vector<16xf32>
    %122 = vector.multi_reduction <add>, %121, %cst_30 [1] : vector<16x256xf32> to vector<16xf32>
    %123 = vector.shape_cast %122 : vector<16xf32> to vector<16x1xf32>
    %cst_31 = arith.constant 3.906250e-03 : f32
    %124 = vector.broadcast %cst_31 : f32 to vector<16x1xf32>
    %125 = arith.mulf %123, %124 : vector<16x1xf32>
    %126 = arith.mulf %120, %120 : vector<16x1xf32>
    %127 = arith.subf %125, %126 : vector<16x1xf32>
    %cst_32 = arith.constant 0.000000e+00 : f32
    %128 = vector.broadcast %cst_32 : f32 to vector<16x1xf32>
    %129 = arith.maximumf %127, %128 : vector<16x1xf32>
    %130 = vector.broadcast %120 : vector<16x1xf32> to vector<16x256xf32>
    %131 = arith.subf %116, %130 : vector<16x256xf32>
    %cst_33 = arith.constant 9.99999974E-6 : f32
    %132 = vector.broadcast %cst_33 : f32 to vector<16x1xf32>
    %133 = arith.addf %129, %132 : vector<16x1xf32>
    %134 = math.rsqrt %133 : vector<16x1xf32>
    %135 = vector.broadcast %134 : vector<16x1xf32> to vector<16x256xf32>
    %136 = arith.mulf %131, %135 : vector<16x256xf32>
    %cst_34 = arith.constant 0.000000e+00 : f32
    %137 = vector.broadcast %cst_34 : f32 to vector<16x256xf32>
    %138 = arith.maximumf %136, %137 : vector<16x256xf32>
    %139 = vector.extract_strided_slice %138 {offsets = [0, 0], sizes = [8, 256], strides = [1, 1]} : vector<16x256xf32> to vector<8x256xf32>
    %140 = vector.extract_strided_slice %138 {offsets = [8, 0], sizes = [8, 256], strides = [1, 1]} : vector<16x256xf32> to vector<8x256xf32>
    %c17_i32_35 = arith.constant 17 : i32
    %141 = tpu.dynamic_rotate %138 by %c17_i32_35 dim 1 : vector<16x256xf32>, i32 -> vector<16x256xf32>
    %142 = vector.extract_strided_slice %0 {offsets = [0, 0], sizes = [1, 256], strides = [1, 1]} : vector<9x256xf32> to vector<1x256xf32>
    %143 = vector.broadcast %142 : vector<1x256xf32> to vector<16x256xf32>
    %144 = arith.mulf %141, %143 : vector<16x256xf32>
    %c16_i32_36 = arith.constant 16 : i32
    %145 = tpu.dynamic_rotate %138 by %c16_i32_36 dim 1 : vector<16x256xf32>, i32 -> vector<16x256xf32>
    %146 = vector.extract_strided_slice %0 {offsets = [1, 0], sizes = [1, 256], strides = [1, 1]} : vector<9x256xf32> to vector<1x256xf32>
    %147 = vector.broadcast %146 : vector<1x256xf32> to vector<16x256xf32>
    %148 = arith.mulf %145, %147 : vector<16x256xf32>
    %c15_i32_37 = arith.constant 15 : i32
    %149 = tpu.dynamic_rotate %138 by %c15_i32_37 dim 1 : vector<16x256xf32>, i32 -> vector<16x256xf32>
    %150 = vector.extract_strided_slice %0 {offsets = [2, 0], sizes = [1, 256], strides = [1, 1]} : vector<9x256xf32> to vector<1x256xf32>
    %151 = vector.broadcast %150 : vector<1x256xf32> to vector<16x256xf32>
    %152 = arith.mulf %149, %151 : vector<16x256xf32>
    %c1_i32_38 = arith.constant 1 : i32
    %153 = tpu.dynamic_rotate %138 by %c1_i32_38 dim 1 : vector<16x256xf32>, i32 -> vector<16x256xf32>
    %154 = vector.extract_strided_slice %0 {offsets = [3, 0], sizes = [1, 256], strides = [1, 1]} : vector<9x256xf32> to vector<1x256xf32>
    %155 = vector.broadcast %154 : vector<1x256xf32> to vector<16x256xf32>
    %156 = arith.mulf %153, %155 : vector<16x256xf32>
    %c255_i32_39 = arith.constant 255 : i32
    %157 = tpu.dynamic_rotate %138 by %c255_i32_39 dim 1 : vector<16x256xf32>, i32 -> vector<16x256xf32>
    %158 = vector.extract_strided_slice %0 {offsets = [5, 0], sizes = [1, 256], strides = [1, 1]} : vector<9x256xf32> to vector<1x256xf32>
    %159 = vector.broadcast %158 : vector<1x256xf32> to vector<16x256xf32>
    %160 = arith.mulf %157, %159 : vector<16x256xf32>
    %c241_i32_40 = arith.constant 241 : i32
    %161 = tpu.dynamic_rotate %138 by %c241_i32_40 dim 1 : vector<16x256xf32>, i32 -> vector<16x256xf32>
    %162 = vector.extract_strided_slice %0 {offsets = [6, 0], sizes = [1, 256], strides = [1, 1]} : vector<9x256xf32> to vector<1x256xf32>
    %163 = vector.broadcast %162 : vector<1x256xf32> to vector<16x256xf32>
    %164 = arith.mulf %161, %163 : vector<16x256xf32>
    %c240_i32_41 = arith.constant 240 : i32
    %165 = tpu.dynamic_rotate %138 by %c240_i32_41 dim 1 : vector<16x256xf32>, i32 -> vector<16x256xf32>
    %166 = vector.extract_strided_slice %0 {offsets = [7, 0], sizes = [1, 256], strides = [1, 1]} : vector<9x256xf32> to vector<1x256xf32>
    %167 = vector.broadcast %166 : vector<1x256xf32> to vector<16x256xf32>
    %168 = arith.mulf %165, %167 : vector<16x256xf32>
    %c239_i32_42 = arith.constant 239 : i32
    %169 = tpu.dynamic_rotate %138 by %c239_i32_42 dim 1 : vector<16x256xf32>, i32 -> vector<16x256xf32>
    %170 = vector.extract_strided_slice %0 {offsets = [8, 0], sizes = [1, 256], strides = [1, 1]} : vector<9x256xf32> to vector<1x256xf32>
    %171 = vector.broadcast %170 : vector<1x256xf32> to vector<16x256xf32>
    %172 = arith.mulf %169, %171 : vector<16x256xf32>
    %173 = tpu.concatenate %144, %148, %152, %156, %138, %160, %164, %168, %172 in 0 : vector<16x256xf32>, vector<16x256xf32>, vector<16x256xf32>, vector<16x256xf32>, vector<16x256xf32>, vector<16x256xf32>, vector<16x256xf32>, vector<16x256xf32>, vector<16x256xf32> -> vector<144x256xf32>
    %174 = arith.truncf %173 : vector<144x256xf32> to vector<144x256xbf16>
    %cst_43 = arith.constant dense<0.000000e+00> : vector<16x256xf32>
    %175 = tpu.matmul %2, %174, %cst_43 {dimension_numbers = #tpu.dot_dimension_numbers<[1], [0], [0], [1], [0, 0, 1, 1], [], []>} : vector<16x144xbf16>, vector<144x256xbf16>, vector<16x256xf32> -> vector<16x256xf32>
    %176 = vector.broadcast %9 : vector<16x1xf32> to vector<16x256xf32>
    %177 = arith.addf %175, %176 : vector<16x256xf32>
    %178 = vector.extract_strided_slice %177 {offsets = [0, 0], sizes = [8, 256], strides = [1, 1]} : vector<16x256xf32> to vector<8x256xf32>
    %cst_44 = arith.constant dense<0.000000e+00> : vector<8xf32>
    %179 = vector.multi_reduction <add>, %178, %cst_44 [1] : vector<8x256xf32> to vector<8xf32>
    %180 = vector.shape_cast %179 : vector<8xf32> to vector<8x1xf32>
    %cst_45 = arith.constant 3.906250e-03 : f32
    %181 = vector.broadcast %cst_45 : f32 to vector<8x1xf32>
    %182 = arith.mulf %180, %181 : vector<8x1xf32>
    %183 = arith.mulf %178, %178 : vector<8x256xf32>
    %cst_46 = arith.constant dense<0.000000e+00> : vector<8xf32>
    %184 = vector.multi_reduction <add>, %183, %cst_46 [1] : vector<8x256xf32> to vector<8xf32>
    %185 = vector.shape_cast %184 : vector<8xf32> to vector<8x1xf32>
    %cst_47 = arith.constant 3.906250e-03 : f32
    %186 = vector.broadcast %cst_47 : f32 to vector<8x1xf32>
    %187 = arith.mulf %185, %186 : vector<8x1xf32>
    %188 = arith.mulf %182, %182 : vector<8x1xf32>
    %189 = arith.subf %187, %188 : vector<8x1xf32>
    %cst_48 = arith.constant 0.000000e+00 : f32
    %190 = vector.broadcast %cst_48 : f32 to vector<8x1xf32>
    %191 = arith.maximumf %189, %190 : vector<8x1xf32>
    %192 = vector.broadcast %182 : vector<8x1xf32> to vector<8x256xf32>
    %193 = arith.subf %178, %192 : vector<8x256xf32>
    %cst_49 = arith.constant 9.99999974E-6 : f32
    %194 = vector.broadcast %cst_49 : f32 to vector<8x1xf32>
    %195 = arith.addf %191, %194 : vector<8x1xf32>
    %196 = math.rsqrt %195 : vector<8x1xf32>
    %197 = vector.broadcast %196 : vector<8x1xf32> to vector<8x256xf32>
    %198 = arith.mulf %193, %197 : vector<8x256xf32>
    %cst_50 = arith.constant 0.000000e+00 : f32
    %199 = vector.broadcast %cst_50 : f32 to vector<8x256xf32>
    %200 = arith.maximumf %198, %199 : vector<8x256xf32>
    %201 = vector.extract_strided_slice %177 {offsets = [8, 0], sizes = [2, 256], strides = [1, 1]} : vector<16x256xf32> to vector<2x256xf32>
    %202 = arith.negf %201 : vector<2x256xf32>
    %203 = math.exp %202 : vector<2x256xf32>
    %cst_51 = arith.constant 1.000000e+00 : f32
    %204 = vector.broadcast %cst_51 : f32 to vector<2x256xf32>
    %205 = arith.addf %204, %203 : vector<2x256xf32>
    %206 = arith.divf %204, %205 : vector<2x256xf32>
    %c17_i32_52 = arith.constant 17 : i32
    %207 = tpu.dynamic_rotate %200 by %c17_i32_52 dim 1 : vector<8x256xf32>, i32 -> vector<8x256xf32>
    %208 = vector.extract_strided_slice %0 {offsets = [0, 0], sizes = [1, 256], strides = [1, 1]} : vector<9x256xf32> to vector<1x256xf32>
    %209 = vector.broadcast %208 : vector<1x256xf32> to vector<8x256xf32>
    %210 = arith.mulf %207, %209 : vector<8x256xf32>
    %c16_i32_53 = arith.constant 16 : i32
    %211 = tpu.dynamic_rotate %200 by %c16_i32_53 dim 1 : vector<8x256xf32>, i32 -> vector<8x256xf32>
    %212 = vector.extract_strided_slice %0 {offsets = [1, 0], sizes = [1, 256], strides = [1, 1]} : vector<9x256xf32> to vector<1x256xf32>
    %213 = vector.broadcast %212 : vector<1x256xf32> to vector<8x256xf32>
    %214 = arith.mulf %211, %213 : vector<8x256xf32>
    %c15_i32_54 = arith.constant 15 : i32
    %215 = tpu.dynamic_rotate %200 by %c15_i32_54 dim 1 : vector<8x256xf32>, i32 -> vector<8x256xf32>
    %216 = vector.extract_strided_slice %0 {offsets = [2, 0], sizes = [1, 256], strides = [1, 1]} : vector<9x256xf32> to vector<1x256xf32>
    %217 = vector.broadcast %216 : vector<1x256xf32> to vector<8x256xf32>
    %218 = arith.mulf %215, %217 : vector<8x256xf32>
    %c1_i32_55 = arith.constant 1 : i32
    %219 = tpu.dynamic_rotate %200 by %c1_i32_55 dim 1 : vector<8x256xf32>, i32 -> vector<8x256xf32>
    %220 = vector.extract_strided_slice %0 {offsets = [3, 0], sizes = [1, 256], strides = [1, 1]} : vector<9x256xf32> to vector<1x256xf32>
    %221 = vector.broadcast %220 : vector<1x256xf32> to vector<8x256xf32>
    %222 = arith.mulf %219, %221 : vector<8x256xf32>
    %c255_i32_56 = arith.constant 255 : i32
    %223 = tpu.dynamic_rotate %200 by %c255_i32_56 dim 1 : vector<8x256xf32>, i32 -> vector<8x256xf32>
    %224 = vector.extract_strided_slice %0 {offsets = [5, 0], sizes = [1, 256], strides = [1, 1]} : vector<9x256xf32> to vector<1x256xf32>
    %225 = vector.broadcast %224 : vector<1x256xf32> to vector<8x256xf32>
    %226 = arith.mulf %223, %225 : vector<8x256xf32>
    %c241_i32_57 = arith.constant 241 : i32
    %227 = tpu.dynamic_rotate %200 by %c241_i32_57 dim 1 : vector<8x256xf32>, i32 -> vector<8x256xf32>
    %228 = vector.extract_strided_slice %0 {offsets = [6, 0], sizes = [1, 256], strides = [1, 1]} : vector<9x256xf32> to vector<1x256xf32>
    %229 = vector.broadcast %228 : vector<1x256xf32> to vector<8x256xf32>
    %230 = arith.mulf %227, %229 : vector<8x256xf32>
    %c240_i32_58 = arith.constant 240 : i32
    %231 = tpu.dynamic_rotate %200 by %c240_i32_58 dim 1 : vector<8x256xf32>, i32 -> vector<8x256xf32>
    %232 = vector.extract_strided_slice %0 {offsets = [7, 0], sizes = [1, 256], strides = [1, 1]} : vector<9x256xf32> to vector<1x256xf32>
    %233 = vector.broadcast %232 : vector<1x256xf32> to vector<8x256xf32>
    %234 = arith.mulf %231, %233 : vector<8x256xf32>
    %c239_i32_59 = arith.constant 239 : i32
    %235 = tpu.dynamic_rotate %200 by %c239_i32_59 dim 1 : vector<8x256xf32>, i32 -> vector<8x256xf32>
    %236 = vector.extract_strided_slice %0 {offsets = [8, 0], sizes = [1, 256], strides = [1, 1]} : vector<9x256xf32> to vector<1x256xf32>
    %237 = vector.broadcast %236 : vector<1x256xf32> to vector<8x256xf32>
    %238 = arith.mulf %235, %237 : vector<8x256xf32>
    %239 = tpu.concatenate %210, %214, %218, %222, %200, %226, %230, %234, %238 in 0 : vector<8x256xf32>, vector<8x256xf32>, vector<8x256xf32>, vector<8x256xf32>, vector<8x256xf32>, vector<8x256xf32>, vector<8x256xf32>, vector<8x256xf32>, vector<8x256xf32> -> vector<72x256xf32>
    %240 = arith.truncf %239 : vector<72x256xf32> to vector<72x256xbf16>
    %cst_60 = arith.constant dense<0.000000e+00> : vector<16x256xf32>
    %241 = tpu.matmul %6, %240, %cst_60 {dimension_numbers = #tpu.dot_dimension_numbers<[1], [0], [0], [1], [0, 0, 1, 1], [], []>} : vector<16x72xbf16>, vector<72x256xbf16>, vector<16x256xf32> -> vector<16x256xf32>
    %242 = vector.broadcast %10 : vector<16x1xf32> to vector<16x256xf32>
    %243 = arith.addf %241, %242 : vector<16x256xf32>
    %244 = vector.extract_strided_slice %243 {offsets = [0, 0], sizes = [1, 256], strides = [1, 1]} : vector<16x256xf32> to vector<1x256xf32>
    %245 = arith.negf %244 : vector<1x256xf32>
    %246 = math.exp %245 : vector<1x256xf32>
    %cst_61 = arith.constant 1.000000e+00 : f32
    %247 = vector.broadcast %cst_61 : f32 to vector<1x256xf32>
    %248 = arith.addf %247, %246 : vector<1x256xf32>
    %249 = arith.divf %247, %248 : vector<1x256xf32>
    %250 = vector.broadcast %249 : vector<1x256xf32> to vector<8x256xf32>
    %251 = arith.mulf %139, %250 : vector<8x256xf32>
    %cst_62 = arith.constant 1.000000e+00 : f32
    %252 = vector.broadcast %cst_62 : f32 to vector<1x256xf32>
    %253 = arith.subf %252, %249 : vector<1x256xf32>
    %254 = vector.broadcast %253 : vector<1x256xf32> to vector<8x256xf32>
    %255 = arith.mulf %140, %254 : vector<8x256xf32>
    %256 = arith.addf %251, %255 : vector<8x256xf32>
    %c17_i32_63 = arith.constant 17 : i32
    %257 = tpu.dynamic_rotate %256 by %c17_i32_63 dim 1 : vector<8x256xf32>, i32 -> vector<8x256xf32>
    %258 = vector.extract_strided_slice %0 {offsets = [0, 0], sizes = [1, 256], strides = [1, 1]} : vector<9x256xf32> to vector<1x256xf32>
    %259 = vector.broadcast %258 : vector<1x256xf32> to vector<8x256xf32>
    %260 = arith.mulf %257, %259 : vector<8x256xf32>
    %c16_i32_64 = arith.constant 16 : i32
    %261 = tpu.dynamic_rotate %256 by %c16_i32_64 dim 1 : vector<8x256xf32>, i32 -> vector<8x256xf32>
    %262 = vector.extract_strided_slice %0 {offsets = [1, 0], sizes = [1, 256], strides = [1, 1]} : vector<9x256xf32> to vector<1x256xf32>
    %263 = vector.broadcast %262 : vector<1x256xf32> to vector<8x256xf32>
    %264 = arith.mulf %261, %263 : vector<8x256xf32>
    %c15_i32_65 = arith.constant 15 : i32
    %265 = tpu.dynamic_rotate %256 by %c15_i32_65 dim 1 : vector<8x256xf32>, i32 -> vector<8x256xf32>
    %266 = vector.extract_strided_slice %0 {offsets = [2, 0], sizes = [1, 256], strides = [1, 1]} : vector<9x256xf32> to vector<1x256xf32>
    %267 = vector.broadcast %266 : vector<1x256xf32> to vector<8x256xf32>
    %268 = arith.mulf %265, %267 : vector<8x256xf32>
    %c1_i32_66 = arith.constant 1 : i32
    %269 = tpu.dynamic_rotate %256 by %c1_i32_66 dim 1 : vector<8x256xf32>, i32 -> vector<8x256xf32>
    %270 = vector.extract_strided_slice %0 {offsets = [3, 0], sizes = [1, 256], strides = [1, 1]} : vector<9x256xf32> to vector<1x256xf32>
    %271 = vector.broadcast %270 : vector<1x256xf32> to vector<8x256xf32>
    %272 = arith.mulf %269, %271 : vector<8x256xf32>
    %c255_i32_67 = arith.constant 255 : i32
    %273 = tpu.dynamic_rotate %256 by %c255_i32_67 dim 1 : vector<8x256xf32>, i32 -> vector<8x256xf32>
    %274 = vector.extract_strided_slice %0 {offsets = [5, 0], sizes = [1, 256], strides = [1, 1]} : vector<9x256xf32> to vector<1x256xf32>
    %275 = vector.broadcast %274 : vector<1x256xf32> to vector<8x256xf32>
    %276 = arith.mulf %273, %275 : vector<8x256xf32>
    %c241_i32_68 = arith.constant 241 : i32
    %277 = tpu.dynamic_rotate %256 by %c241_i32_68 dim 1 : vector<8x256xf32>, i32 -> vector<8x256xf32>
    %278 = vector.extract_strided_slice %0 {offsets = [6, 0], sizes = [1, 256], strides = [1, 1]} : vector<9x256xf32> to vector<1x256xf32>
    %279 = vector.broadcast %278 : vector<1x256xf32> to vector<8x256xf32>
    %280 = arith.mulf %277, %279 : vector<8x256xf32>
    %c240_i32_69 = arith.constant 240 : i32
    %281 = tpu.dynamic_rotate %256 by %c240_i32_69 dim 1 : vector<8x256xf32>, i32 -> vector<8x256xf32>
    %282 = vector.extract_strided_slice %0 {offsets = [7, 0], sizes = [1, 256], strides = [1, 1]} : vector<9x256xf32> to vector<1x256xf32>
    %283 = vector.broadcast %282 : vector<1x256xf32> to vector<8x256xf32>
    %284 = arith.mulf %281, %283 : vector<8x256xf32>
    %c239_i32_70 = arith.constant 239 : i32
    %285 = tpu.dynamic_rotate %256 by %c239_i32_70 dim 1 : vector<8x256xf32>, i32 -> vector<8x256xf32>
    %286 = vector.extract_strided_slice %0 {offsets = [8, 0], sizes = [1, 256], strides = [1, 1]} : vector<9x256xf32> to vector<1x256xf32>
    %287 = vector.broadcast %286 : vector<1x256xf32> to vector<8x256xf32>
    %288 = arith.mulf %285, %287 : vector<8x256xf32>
    %289 = tpu.concatenate %260, %264, %268, %272, %256, %276, %280, %284, %288 in 0 : vector<8x256xf32>, vector<8x256xf32>, vector<8x256xf32>, vector<8x256xf32>, vector<8x256xf32>, vector<8x256xf32>, vector<8x256xf32>, vector<8x256xf32>, vector<8x256xf32> -> vector<72x256xf32>
    %290 = arith.truncf %289 : vector<72x256xf32> to vector<72x256xbf16>
    %cst_71 = arith.constant dense<0.000000e+00> : vector<16x256xf32>
    %291 = tpu.matmul %7, %290, %cst_71 {dimension_numbers = #tpu.dot_dimension_numbers<[1], [0], [0], [1], [0, 0, 1, 1], [], []>} : vector<16x72xbf16>, vector<72x256xbf16>, vector<16x256xf32> -> vector<16x256xf32>
    %292 = vector.broadcast %11 : vector<16x1xf32> to vector<16x256xf32>
    %293 = arith.addf %291, %292 : vector<16x256xf32>
    %294 = vector.extract_strided_slice %293 {offsets = [0, 0], sizes = [3, 256], strides = [1, 1]} : vector<16x256xf32> to vector<3x256xf32>
    %295 = math.tanh %294 : vector<3x256xf32>
    %296 = tpu.concatenate %295, %206, %249, %12 in 0 : vector<3x256xf32>, vector<2x256xf32>, vector<1x256xf32>, vector<2x256xf32> -> vector<8x256xf32>
    %c0_72 = arith.constant 0 : index
    %c0_73 = arith.constant 0 : index
    %c0_74 = arith.constant 0 : index
    %297 = vector.load %arg6[%c0_72, %c0_73, %c0_74] : memref<2x8x256xf32, #tpu.memory_space<vmem>>, vector<1x8x256xf32>
    %298 = vector.shape_cast %297 : vector<1x8x256xf32> to vector<8x256xf32>
    %299 = vector.shape_cast %296 : vector<8x256xf32> to vector<1x8x256xf32>
    tpu.vector_store %arg6[%c0_72, %c0_73, %c0_74], %299 {strides = array<i32>} : memref<2x8x256xf32, #tpu.memory_space<vmem>>, vector<1x8x256xf32>,
    %c1 = arith.constant 1 : index
    %c0_75 = arith.constant 0 : index
    %c0_76 = arith.constant 0 : index
    %300 = vector.load %arg1[%c1, %c0_75, %c0_76] : memref<2x8x256xf32, #tpu.memory_space<vmem>>, vector<1x8x256xf32>
    %301 = vector.shape_cast %300 : vector<1x8x256xf32> to vector<8x256xf32>
    %c17_i32_77 = arith.constant 17 : i32
    %302 = tpu.dynamic_rotate %301 by %c17_i32_77 dim 1 : vector<8x256xf32>, i32 -> vector<8x256xf32>
    %303 = vector.extract_strided_slice %0 {offsets = [0, 0], sizes = [1, 256], strides = [1, 1]} : vector<9x256xf32> to vector<1x256xf32>
    %304 = vector.broadcast %303 : vector<1x256xf32> to vector<8x256xf32>
    %305 = arith.mulf %302, %304 : vector<8x256xf32>
    %c16_i32_78 = arith.constant 16 : i32
    %306 = tpu.dynamic_rotate %301 by %c16_i32_78 dim 1 : vector<8x256xf32>, i32 -> vector<8x256xf32>
    %307 = vector.extract_strided_slice %0 {offsets = [1, 0], sizes = [1, 256], strides = [1, 1]} : vector<9x256xf32> to vector<1x256xf32>
    %308 = vector.broadcast %307 : vector<1x256xf32> to vector<8x256xf32>
    %309 = arith.mulf %306, %308 : vector<8x256xf32>
    %c15_i32_79 = arith.constant 15 : i32
    %310 = tpu.dynamic_rotate %301 by %c15_i32_79 dim 1 : vector<8x256xf32>, i32 -> vector<8x256xf32>
    %311 = vector.extract_strided_slice %0 {offsets = [2, 0], sizes = [1, 256], strides = [1, 1]} : vector<9x256xf32> to vector<1x256xf32>
    %312 = vector.broadcast %311 : vector<1x256xf32> to vector<8x256xf32>
    %313 = arith.mulf %310, %312 : vector<8x256xf32>
    %c1_i32_80 = arith.constant 1 : i32
    %314 = tpu.dynamic_rotate %301 by %c1_i32_80 dim 1 : vector<8x256xf32>, i32 -> vector<8x256xf32>
    %315 = vector.extract_strided_slice %0 {offsets = [3, 0], sizes = [1, 256], strides = [1, 1]} : vector<9x256xf32> to vector<1x256xf32>
    %316 = vector.broadcast %315 : vector<1x256xf32> to vector<8x256xf32>
    %317 = arith.mulf %314, %316 : vector<8x256xf32>
    %c255_i32_81 = arith.constant 255 : i32
    %318 = tpu.dynamic_rotate %301 by %c255_i32_81 dim 1 : vector<8x256xf32>, i32 -> vector<8x256xf32>
    %319 = vector.extract_strided_slice %0 {offsets = [5, 0], sizes = [1, 256], strides = [1, 1]} : vector<9x256xf32> to vector<1x256xf32>
    %320 = vector.broadcast %319 : vector<1x256xf32> to vector<8x256xf32>
    %321 = arith.mulf %318, %320 : vector<8x256xf32>
    %c241_i32_82 = arith.constant 241 : i32
    %322 = tpu.dynamic_rotate %301 by %c241_i32_82 dim 1 : vector<8x256xf32>, i32 -> vector<8x256xf32>
    %323 = vector.extract_strided_slice %0 {offsets = [6, 0], sizes = [1, 256], strides = [1, 1]} : vector<9x256xf32> to vector<1x256xf32>
    %324 = vector.broadcast %323 : vector<1x256xf32> to vector<8x256xf32>
    %325 = arith.mulf %322, %324 : vector<8x256xf32>
    %c240_i32_83 = arith.constant 240 : i32
    %326 = tpu.dynamic_rotate %301 by %c240_i32_83 dim 1 : vector<8x256xf32>, i32 -> vector<8x256xf32>
    %327 = vector.extract_strided_slice %0 {offsets = [7, 0], sizes = [1, 256], strides = [1, 1]} : vector<9x256xf32> to vector<1x256xf32>
    %328 = vector.broadcast %327 : vector<1x256xf32> to vector<8x256xf32>
    %329 = arith.mulf %326, %328 : vector<8x256xf32>
    %c239_i32_84 = arith.constant 239 : i32
    %330 = tpu.dynamic_rotate %301 by %c239_i32_84 dim 1 : vector<8x256xf32>, i32 -> vector<8x256xf32>
    %331 = vector.extract_strided_slice %0 {offsets = [8, 0], sizes = [1, 256], strides = [1, 1]} : vector<9x256xf32> to vector<1x256xf32>
    %332 = vector.broadcast %331 : vector<1x256xf32> to vector<8x256xf32>
    %333 = arith.mulf %330, %332 : vector<8x256xf32>
    %334 = tpu.concatenate %305, %309, %313, %317, %301, %321, %325, %329, %333 in 0 : vector<8x256xf32>, vector<8x256xf32>, vector<8x256xf32>, vector<8x256xf32>, vector<8x256xf32>, vector<8x256xf32>, vector<8x256xf32>, vector<8x256xf32>, vector<8x256xf32> -> vector<72x256xf32>
    %335 = arith.truncf %334 : vector<72x256xf32> to vector<72x256xbf16>
    %cst_85 = arith.constant dense<0.000000e+00> : vector<16x256xf32>
    %336 = tpu.matmul %4, %335, %cst_85 {dimension_numbers = #tpu.dot_dimension_numbers<[1], [0], [0], [1], [0, 0, 1, 1], [], []>} : vector<16x72xbf16>, vector<72x256xbf16>, vector<16x256xf32> -> vector<16x256xf32>
    %337 = vector.extract_strided_slice %336 {offsets = [0, 0], sizes = [8, 256], strides = [1, 1]} : vector<16x256xf32> to vector<8x256xf32>
    %338 = vector.extract_strided_slice %336 {offsets = [8, 0], sizes = [8, 256], strides = [1, 1]} : vector<16x256xf32> to vector<8x256xf32>
    %339 = arith.negf %338 : vector<8x256xf32>
    %340 = math.exp %339 : vector<8x256xf32>
    %cst_86 = arith.constant 1.000000e+00 : f32
    %341 = vector.broadcast %cst_86 : f32 to vector<8x256xf32>
    %342 = arith.addf %341, %340 : vector<8x256xf32>
    %343 = arith.divf %341, %342 : vector<8x256xf32>
    %344 = arith.mulf %337, %343 : vector<8x256xf32>
    %cst_87 = arith.constant dense<0.000000e+00> : vector<8xf32>
    %345 = vector.multi_reduction <add>, %344, %cst_87 [1] : vector<8x256xf32> to vector<8xf32>
    %346 = vector.shape_cast %345 : vector<8xf32> to vector<8x1xf32>
    %cst_88 = arith.constant 3.906250e-03 : f32
    %347 = vector.broadcast %cst_88 : f32 to vector<8x1xf32>
    %348 = arith.mulf %346, %347 : vector<8x1xf32>
    %349 = arith.mulf %344, %344 : vector<8x256xf32>
    %cst_89 = arith.constant dense<0.000000e+00> : vector<8xf32>
    %350 = vector.multi_reduction <add>, %349, %cst_89 [1] : vector<8x256xf32> to vector<8xf32>
    %351 = vector.shape_cast %350 : vector<8xf32> to vector<8x1xf32>
    %cst_90 = arith.constant 3.906250e-03 : f32
    %352 = vector.broadcast %cst_90 : f32 to vector<8x1xf32>
    %353 = arith.mulf %351, %352 : vector<8x1xf32>
    %354 = arith.mulf %348, %348 : vector<8x1xf32>
    %355 = arith.subf %353, %354 : vector<8x1xf32>
    %cst_91 = arith.constant 0.000000e+00 : f32
    %356 = vector.broadcast %cst_91 : f32 to vector<8x1xf32>
    %357 = arith.maximumf %355, %356 : vector<8x1xf32>
    %358 = vector.broadcast %348 : vector<8x1xf32> to vector<8x256xf32>
    %359 = arith.subf %344, %358 : vector<8x256xf32>
    %cst_92 = arith.constant 9.99999974E-6 : f32
    %360 = vector.broadcast %cst_92 : f32 to vector<8x1xf32>
    %361 = arith.addf %357, %360 : vector<8x1xf32>
    %362 = math.rsqrt %361 : vector<8x1xf32>
    %363 = vector.broadcast %362 : vector<8x1xf32> to vector<8x256xf32>
    %364 = arith.mulf %359, %363 : vector<8x256xf32>
    %cst_93 = arith.constant 0.000000e+00 : f32
    %365 = vector.broadcast %cst_93 : f32 to vector<8x256xf32>
    %366 = arith.maximumf %364, %365 : vector<8x256xf32>
    %c17_i32_94 = arith.constant 17 : i32
    %367 = tpu.dynamic_rotate %366 by %c17_i32_94 dim 1 : vector<8x256xf32>, i32 -> vector<8x256xf32>
    %368 = vector.extract_strided_slice %0 {offsets = [0, 0], sizes = [1, 256], strides = [1, 1]} : vector<9x256xf32> to vector<1x256xf32>
    %369 = vector.broadcast %368 : vector<1x256xf32> to vector<8x256xf32>
    %370 = arith.mulf %367, %369 : vector<8x256xf32>
    %c16_i32_95 = arith.constant 16 : i32
    %371 = tpu.dynamic_rotate %366 by %c16_i32_95 dim 1 : vector<8x256xf32>, i32 -> vector<8x256xf32>
    %372 = vector.extract_strided_slice %0 {offsets = [1, 0], sizes = [1, 256], strides = [1, 1]} : vector<9x256xf32> to vector<1x256xf32>
    %373 = vector.broadcast %372 : vector<1x256xf32> to vector<8x256xf32>
    %374 = arith.mulf %371, %373 : vector<8x256xf32>
    %c15_i32_96 = arith.constant 15 : i32
    %375 = tpu.dynamic_rotate %366 by %c15_i32_96 dim 1 : vector<8x256xf32>, i32 -> vector<8x256xf32>
    %376 = vector.extract_strided_slice %0 {offsets = [2, 0], sizes = [1, 256], strides = [1, 1]} : vector<9x256xf32> to vector<1x256xf32>
    %377 = vector.broadcast %376 : vector<1x256xf32> to vector<8x256xf32>
    %378 = arith.mulf %375, %377 : vector<8x256xf32>
    %c1_i32_97 = arith.constant 1 : i32
    %379 = tpu.dynamic_rotate %366 by %c1_i32_97 dim 1 : vector<8x256xf32>, i32 -> vector<8x256xf32>
    %380 = vector.extract_strided_slice %0 {offsets = [3, 0], sizes = [1, 256], strides = [1, 1]} : vector<9x256xf32> to vector<1x256xf32>
    %381 = vector.broadcast %380 : vector<1x256xf32> to vector<8x256xf32>
    %382 = arith.mulf %379, %381 : vector<8x256xf32>
    %c255_i32_98 = arith.constant 255 : i32
    %383 = tpu.dynamic_rotate %366 by %c255_i32_98 dim 1 : vector<8x256xf32>, i32 -> vector<8x256xf32>
    %384 = vector.extract_strided_slice %0 {offsets = [5, 0], sizes = [1, 256], strides = [1, 1]} : vector<9x256xf32> to vector<1x256xf32>
    %385 = vector.broadcast %384 : vector<1x256xf32> to vector<8x256xf32>
    %386 = arith.mulf %383, %385 : vector<8x256xf32>
    %c241_i32_99 = arith.constant 241 : i32
    %387 = tpu.dynamic_rotate %366 by %c241_i32_99 dim 1 : vector<8x256xf32>, i32 -> vector<8x256xf32>
    %388 = vector.extract_strided_slice %0 {offsets = [6, 0], sizes = [1, 256], strides = [1, 1]} : vector<9x256xf32> to vector<1x256xf32>
    %389 = vector.broadcast %388 : vector<1x256xf32> to vector<8x256xf32>
    %390 = arith.mulf %387, %389 : vector<8x256xf32>
    %c240_i32_100 = arith.constant 240 : i32
    %391 = tpu.dynamic_rotate %366 by %c240_i32_100 dim 1 : vector<8x256xf32>, i32 -> vector<8x256xf32>
    %392 = vector.extract_strided_slice %0 {offsets = [7, 0], sizes = [1, 256], strides = [1, 1]} : vector<9x256xf32> to vector<1x256xf32>
    %393 = vector.broadcast %392 : vector<1x256xf32> to vector<8x256xf32>
    %394 = arith.mulf %391, %393 : vector<8x256xf32>
    %c239_i32_101 = arith.constant 239 : i32
    %395 = tpu.dynamic_rotate %366 by %c239_i32_101 dim 1 : vector<8x256xf32>, i32 -> vector<8x256xf32>
    %396 = vector.extract_strided_slice %0 {offsets = [8, 0], sizes = [1, 256], strides = [1, 1]} : vector<9x256xf32> to vector<1x256xf32>
    %397 = vector.broadcast %396 : vector<1x256xf32> to vector<8x256xf32>
    %398 = arith.mulf %395, %397 : vector<8x256xf32>
    %399 = tpu.concatenate %370, %374, %378, %382, %366, %386, %390, %394, %398 in 0 : vector<8x256xf32>, vector<8x256xf32>, vector<8x256xf32>, vector<8x256xf32>, vector<8x256xf32>, vector<8x256xf32>, vector<8x256xf32>, vector<8x256xf32>, vector<8x256xf32> -> vector<72x256xf32>
    %400 = arith.truncf %399 : vector<72x256xf32> to vector<72x256xbf16>
    %cst_102 = arith.constant dense<0.000000e+00> : vector<16x256xf32>
    %401 = tpu.matmul %5, %400, %cst_102 {dimension_numbers = #tpu.dot_dimension_numbers<[1], [0], [0], [1], [0, 0, 1, 1], [], []>} : vector<16x72xbf16>, vector<72x256xbf16>, vector<16x256xf32> -> vector<16x256xf32>
    %402 = vector.broadcast %8 : vector<16x1xf32> to vector<16x256xf32>
    %403 = arith.addf %401, %402 : vector<16x256xf32>
    %cst_103 = arith.constant dense<0.000000e+00> : vector<16xf32>
    %404 = vector.multi_reduction <add>, %403, %cst_103 [1] : vector<16x256xf32> to vector<16xf32>
    %405 = vector.shape_cast %404 : vector<16xf32> to vector<16x1xf32>
    %cst_104 = arith.constant 3.906250e-03 : f32
    %406 = vector.broadcast %cst_104 : f32 to vector<16x1xf32>
    %407 = arith.mulf %405, %406 : vector<16x1xf32>
    %408 = arith.mulf %403, %403 : vector<16x256xf32>
    %cst_105 = arith.constant dense<0.000000e+00> : vector<16xf32>
    %409 = vector.multi_reduction <add>, %408, %cst_105 [1] : vector<16x256xf32> to vector<16xf32>
    %410 = vector.shape_cast %409 : vector<16xf32> to vector<16x1xf32>
    %cst_106 = arith.constant 3.906250e-03 : f32
    %411 = vector.broadcast %cst_106 : f32 to vector<16x1xf32>
    %412 = arith.mulf %410, %411 : vector<16x1xf32>
    %413 = arith.mulf %407, %407 : vector<16x1xf32>
    %414 = arith.subf %412, %413 : vector<16x1xf32>
    %cst_107 = arith.constant 0.000000e+00 : f32
    %415 = vector.broadcast %cst_107 : f32 to vector<16x1xf32>
    %416 = arith.maximumf %414, %415 : vector<16x1xf32>
    %417 = vector.broadcast %407 : vector<16x1xf32> to vector<16x256xf32>
    %418 = arith.subf %403, %417 : vector<16x256xf32>
    %cst_108 = arith.constant 9.99999974E-6 : f32
    %419 = vector.broadcast %cst_108 : f32 to vector<16x1xf32>
    %420 = arith.addf %416, %419 : vector<16x1xf32>
    %421 = math.rsqrt %420 : vector<16x1xf32>
    %422 = vector.broadcast %421 : vector<16x1xf32> to vector<16x256xf32>
    %423 = arith.mulf %418, %422 : vector<16x256xf32>
    %cst_109 = arith.constant 0.000000e+00 : f32
    %424 = vector.broadcast %cst_109 : f32 to vector<16x256xf32>
    %425 = arith.maximumf %423, %424 : vector<16x256xf32>
    %426 = vector.extract_strided_slice %425 {offsets = [0, 0], sizes = [8, 256], strides = [1, 1]} : vector<16x256xf32> to vector<8x256xf32>
    %427 = vector.extract_strided_slice %425 {offsets = [8, 0], sizes = [8, 256], strides = [1, 1]} : vector<16x256xf32> to vector<8x256xf32>
    %c17_i32_110 = arith.constant 17 : i32
    %428 = tpu.dynamic_rotate %425 by %c17_i32_110 dim 1 : vector<16x256xf32>, i32 -> vector<16x256xf32>
    %429 = vector.extract_strided_slice %0 {offsets = [0, 0], sizes = [1, 256], strides = [1, 1]} : vector<9x256xf32> to vector<1x256xf32>
    %430 = vector.broadcast %429 : vector<1x256xf32> to vector<16x256xf32>
    %431 = arith.mulf %428, %430 : vector<16x256xf32>
    %c16_i32_111 = arith.constant 16 : i32
    %432 = tpu.dynamic_rotate %425 by %c16_i32_111 dim 1 : vector<16x256xf32>, i32 -> vector<16x256xf32>
    %433 = vector.extract_strided_slice %0 {offsets = [1, 0], sizes = [1, 256], strides = [1, 1]} : vector<9x256xf32> to vector<1x256xf32>
    %434 = vector.broadcast %433 : vector<1x256xf32> to vector<16x256xf32>
    %435 = arith.mulf %432, %434 : vector<16x256xf32>
    %c15_i32_112 = arith.constant 15 : i32
    %436 = tpu.dynamic_rotate %425 by %c15_i32_112 dim 1 : vector<16x256xf32>, i32 -> vector<16x256xf32>
    %437 = vector.extract_strided_slice %0 {offsets = [2, 0], sizes = [1, 256], strides = [1, 1]} : vector<9x256xf32> to vector<1x256xf32>
    %438 = vector.broadcast %437 : vector<1x256xf32> to vector<16x256xf32>
    %439 = arith.mulf %436, %438 : vector<16x256xf32>
    %c1_i32_113 = arith.constant 1 : i32
    %440 = tpu.dynamic_rotate %425 by %c1_i32_113 dim 1 : vector<16x256xf32>, i32 -> vector<16x256xf32>
    %441 = vector.extract_strided_slice %0 {offsets = [3, 0], sizes = [1, 256], strides = [1, 1]} : vector<9x256xf32> to vector<1x256xf32>
    %442 = vector.broadcast %441 : vector<1x256xf32> to vector<16x256xf32>
    %443 = arith.mulf %440, %442 : vector<16x256xf32>
    %c255_i32_114 = arith.constant 255 : i32
    %444 = tpu.dynamic_rotate %425 by %c255_i32_114 dim 1 : vector<16x256xf32>, i32 -> vector<16x256xf32>
    %445 = vector.extract_strided_slice %0 {offsets = [5, 0], sizes = [1, 256], strides = [1, 1]} : vector<9x256xf32> to vector<1x256xf32>
    %446 = vector.broadcast %445 : vector<1x256xf32> to vector<16x256xf32>
    %447 = arith.mulf %444, %446 : vector<16x256xf32>
    %c241_i32_115 = arith.constant 241 : i32
    %448 = tpu.dynamic_rotate %425 by %c241_i32_115 dim 1 : vector<16x256xf32>, i32 -> vector<16x256xf32>
    %449 = vector.extract_strided_slice %0 {offsets = [6, 0], sizes = [1, 256], strides = [1, 1]} : vector<9x256xf32> to vector<1x256xf32>
    %450 = vector.broadcast %449 : vector<1x256xf32> to vector<16x256xf32>
    %451 = arith.mulf %448, %450 : vector<16x256xf32>
    %c240_i32_116 = arith.constant 240 : i32
    %452 = tpu.dynamic_rotate %425 by %c240_i32_116 dim 1 : vector<16x256xf32>, i32 -> vector<16x256xf32>
    %453 = vector.extract_strided_slice %0 {offsets = [7, 0], sizes = [1, 256], strides = [1, 1]} : vector<9x256xf32> to vector<1x256xf32>
    %454 = vector.broadcast %453 : vector<1x256xf32> to vector<16x256xf32>
    %455 = arith.mulf %452, %454 : vector<16x256xf32>
    %c239_i32_117 = arith.constant 239 : i32
    %456 = tpu.dynamic_rotate %425 by %c239_i32_117 dim 1 : vector<16x256xf32>, i32 -> vector<16x256xf32>
    %457 = vector.extract_strided_slice %0 {offsets = [8, 0], sizes = [1, 256], strides = [1, 1]} : vector<9x256xf32> to vector<1x256xf32>
    %458 = vector.broadcast %457 : vector<1x256xf32> to vector<16x256xf32>
    %459 = arith.mulf %456, %458 : vector<16x256xf32>
    %460 = tpu.concatenate %431, %435, %439, %443, %425, %447, %451, %455, %459 in 0 : vector<16x256xf32>, vector<16x256xf32>, vector<16x256xf32>, vector<16x256xf32>, vector<16x256xf32>, vector<16x256xf32>, vector<16x256xf32>, vector<16x256xf32>, vector<16x256xf32> -> vector<144x256xf32>
    %461 = arith.truncf %460 : vector<144x256xf32> to vector<144x256xbf16>
    %cst_118 = arith.constant dense<0.000000e+00> : vector<16x256xf32>
    %462 = tpu.matmul %2, %461, %cst_118 {dimension_numbers = #tpu.dot_dimension_numbers<[1], [0], [0], [1], [0, 0, 1, 1], [], []>} : vector<16x144xbf16>, vector<144x256xbf16>, vector<16x256xf32> -> vector<16x256xf32>
    %463 = vector.broadcast %9 : vector<16x1xf32> to vector<16x256xf32>
    %464 = arith.addf %462, %463 : vector<16x256xf32>
    %465 = vector.extract_strided_slice %464 {offsets = [0, 0], sizes = [8, 256], strides = [1, 1]} : vector<16x256xf32> to vector<8x256xf32>
    %cst_119 = arith.constant dense<0.000000e+00> : vector<8xf32>
    %466 = vector.multi_reduction <add>, %465, %cst_119 [1] : vector<8x256xf32> to vector<8xf32>
    %467 = vector.shape_cast %466 : vector<8xf32> to vector<8x1xf32>
    %cst_120 = arith.constant 3.906250e-03 : f32
    %468 = vector.broadcast %cst_120 : f32 to vector<8x1xf32>
    %469 = arith.mulf %467, %468 : vector<8x1xf32>
    %470 = arith.mulf %465, %465 : vector<8x256xf32>
    %cst_121 = arith.constant dense<0.000000e+00> : vector<8xf32>
    %471 = vector.multi_reduction <add>, %470, %cst_121 [1] : vector<8x256xf32> to vector<8xf32>
    %472 = vector.shape_cast %471 : vector<8xf32> to vector<8x1xf32>
    %cst_122 = arith.constant 3.906250e-03 : f32
    %473 = vector.broadcast %cst_122 : f32 to vector<8x1xf32>
    %474 = arith.mulf %472, %473 : vector<8x1xf32>
    %475 = arith.mulf %469, %469 : vector<8x1xf32>
    %476 = arith.subf %474, %475 : vector<8x1xf32>
    %cst_123 = arith.constant 0.000000e+00 : f32
    %477 = vector.broadcast %cst_123 : f32 to vector<8x1xf32>
    %478 = arith.maximumf %476, %477 : vector<8x1xf32>
    %479 = vector.broadcast %469 : vector<8x1xf32> to vector<8x256xf32>
    %480 = arith.subf %465, %479 : vector<8x256xf32>
    %cst_124 = arith.constant 9.99999974E-6 : f32
    %481 = vector.broadcast %cst_124 : f32 to vector<8x1xf32>
    %482 = arith.addf %478, %481 : vector<8x1xf32>
    %483 = math.rsqrt %482 : vector<8x1xf32>
    %484 = vector.broadcast %483 : vector<8x1xf32> to vector<8x256xf32>
    %485 = arith.mulf %480, %484 : vector<8x256xf32>
    %cst_125 = arith.constant 0.000000e+00 : f32
    %486 = vector.broadcast %cst_125 : f32 to vector<8x256xf32>
    %487 = arith.maximumf %485, %486 : vector<8x256xf32>
    %488 = vector.extract_strided_slice %464 {offsets = [8, 0], sizes = [2, 256], strides = [1, 1]} : vector<16x256xf32> to vector<2x256xf32>
    %489 = arith.negf %488 : vector<2x256xf32>
    %490 = math.exp %489 : vector<2x256xf32>
    %cst_126 = arith.constant 1.000000e+00 : f32
    %491 = vector.broadcast %cst_126 : f32 to vector<2x256xf32>
    %492 = arith.addf %491, %490 : vector<2x256xf32>
    %493 = arith.divf %491, %492 : vector<2x256xf32>
    %c17_i32_127 = arith.constant 17 : i32
    %494 = tpu.dynamic_rotate %487 by %c17_i32_127 dim 1 : vector<8x256xf32>, i32 -> vector<8x256xf32>
    %495 = vector.extract_strided_slice %0 {offsets = [0, 0], sizes = [1, 256], strides = [1, 1]} : vector<9x256xf32> to vector<1x256xf32>
    %496 = vector.broadcast %495 : vector<1x256xf32> to vector<8x256xf32>
    %497 = arith.mulf %494, %496 : vector<8x256xf32>
    %c16_i32_128 = arith.constant 16 : i32
    %498 = tpu.dynamic_rotate %487 by %c16_i32_128 dim 1 : vector<8x256xf32>, i32 -> vector<8x256xf32>
    %499 = vector.extract_strided_slice %0 {offsets = [1, 0], sizes = [1, 256], strides = [1, 1]} : vector<9x256xf32> to vector<1x256xf32>
    %500 = vector.broadcast %499 : vector<1x256xf32> to vector<8x256xf32>
    %501 = arith.mulf %498, %500 : vector<8x256xf32>
    %c15_i32_129 = arith.constant 15 : i32
    %502 = tpu.dynamic_rotate %487 by %c15_i32_129 dim 1 : vector<8x256xf32>, i32 -> vector<8x256xf32>
    %503 = vector.extract_strided_slice %0 {offsets = [2, 0], sizes = [1, 256], strides = [1, 1]} : vector<9x256xf32> to vector<1x256xf32>
    %504 = vector.broadcast %503 : vector<1x256xf32> to vector<8x256xf32>
    %505 = arith.mulf %502, %504 : vector<8x256xf32>
    %c1_i32_130 = arith.constant 1 : i32
    %506 = tpu.dynamic_rotate %487 by %c1_i32_130 dim 1 : vector<8x256xf32>, i32 -> vector<8x256xf32>
    %507 = vector.extract_strided_slice %0 {offsets = [3, 0], sizes = [1, 256], strides = [1, 1]} : vector<9x256xf32> to vector<1x256xf32>
    %508 = vector.broadcast %507 : vector<1x256xf32> to vector<8x256xf32>
    %509 = arith.mulf %506, %508 : vector<8x256xf32>
    %c255_i32_131 = arith.constant 255 : i32
    %510 = tpu.dynamic_rotate %487 by %c255_i32_131 dim 1 : vector<8x256xf32>, i32 -> vector<8x256xf32>
    %511 = vector.extract_strided_slice %0 {offsets = [5, 0], sizes = [1, 256], strides = [1, 1]} : vector<9x256xf32> to vector<1x256xf32>
    %512 = vector.broadcast %511 : vector<1x256xf32> to vector<8x256xf32>
    %513 = arith.mulf %510, %512 : vector<8x256xf32>
    %c241_i32_132 = arith.constant 241 : i32
    %514 = tpu.dynamic_rotate %487 by %c241_i32_132 dim 1 : vector<8x256xf32>, i32 -> vector<8x256xf32>
    %515 = vector.extract_strided_slice %0 {offsets = [6, 0], sizes = [1, 256], strides = [1, 1]} : vector<9x256xf32> to vector<1x256xf32>
    %516 = vector.broadcast %515 : vector<1x256xf32> to vector<8x256xf32>
    %517 = arith.mulf %514, %516 : vector<8x256xf32>
    %c240_i32_133 = arith.constant 240 : i32
    %518 = tpu.dynamic_rotate %487 by %c240_i32_133 dim 1 : vector<8x256xf32>, i32 -> vector<8x256xf32>
    %519 = vector.extract_strided_slice %0 {offsets = [7, 0], sizes = [1, 256], strides = [1, 1]} : vector<9x256xf32> to vector<1x256xf32>
    %520 = vector.broadcast %519 : vector<1x256xf32> to vector<8x256xf32>
    %521 = arith.mulf %518, %520 : vector<8x256xf32>
    %c239_i32_134 = arith.constant 239 : i32
    %522 = tpu.dynamic_rotate %487 by %c239_i32_134 dim 1 : vector<8x256xf32>, i32 -> vector<8x256xf32>
    %523 = vector.extract_strided_slice %0 {offsets = [8, 0], sizes = [1, 256], strides = [1, 1]} : vector<9x256xf32> to vector<1x256xf32>
    %524 = vector.broadcast %523 : vector<1x256xf32> to vector<8x256xf32>
    %525 = arith.mulf %522, %524 : vector<8x256xf32>
    %526 = tpu.concatenate %497, %501, %505, %509, %487, %513, %517, %521, %525 in 0 : vector<8x256xf32>, vector<8x256xf32>, vector<8x256xf32>, vector<8x256xf32>, vector<8x256xf32>, vector<8x256xf32>, vector<8x256xf32>, vector<8x256xf32>, vector<8x256xf32> -> vector<72x256xf32>
    %527 = arith.truncf %526 : vector<72x256xf32> to vector<72x256xbf16>
    %cst_135 = arith.constant dense<0.000000e+00> : vector<16x256xf32>
    %528 = tpu.matmul %6, %527, %cst_135 {dimension_numbers = #tpu.dot_dimension_numbers<[1], [0], [0], [1], [0, 0, 1, 1], [], []>} : vector<16x72xbf16>, vector<72x256xbf16>, vector<16x256xf32> -> vector<16x256xf32>
    %529 = vector.broadcast %10 : vector<16x1xf32> to vector<16x256xf32>
    %530 = arith.addf %528, %529 : vector<16x256xf32>
    %531 = vector.extract_strided_slice %530 {offsets = [0, 0], sizes = [1, 256], strides = [1, 1]} : vector<16x256xf32> to vector<1x256xf32>
    %532 = arith.negf %531 : vector<1x256xf32>
    %533 = math.exp %532 : vector<1x256xf32>
    %cst_136 = arith.constant 1.000000e+00 : f32
    %534 = vector.broadcast %cst_136 : f32 to vector<1x256xf32>
    %535 = arith.addf %534, %533 : vector<1x256xf32>
    %536 = arith.divf %534, %535 : vector<1x256xf32>
    %537 = vector.broadcast %536 : vector<1x256xf32> to vector<8x256xf32>
    %538 = arith.mulf %426, %537 : vector<8x256xf32>
    %cst_137 = arith.constant 1.000000e+00 : f32
    %539 = vector.broadcast %cst_137 : f32 to vector<1x256xf32>
    %540 = arith.subf %539, %536 : vector<1x256xf32>
    %541 = vector.broadcast %540 : vector<1x256xf32> to vector<8x256xf32>
    %542 = arith.mulf %427, %541 : vector<8x256xf32>
    %543 = arith.addf %538, %542 : vector<8x256xf32>
    %c17_i32_138 = arith.constant 17 : i32
    %544 = tpu.dynamic_rotate %543 by %c17_i32_138 dim 1 : vector<8x256xf32>, i32 -> vector<8x256xf32>
    %545 = vector.extract_strided_slice %0 {offsets = [0, 0], sizes = [1, 256], strides = [1, 1]} : vector<9x256xf32> to vector<1x256xf32>
    %546 = vector.broadcast %545 : vector<1x256xf32> to vector<8x256xf32>
    %547 = arith.mulf %544, %546 : vector<8x256xf32>
    %c16_i32_139 = arith.constant 16 : i32
    %548 = tpu.dynamic_rotate %543 by %c16_i32_139 dim 1 : vector<8x256xf32>, i32 -> vector<8x256xf32>
    %549 = vector.extract_strided_slice %0 {offsets = [1, 0], sizes = [1, 256], strides = [1, 1]} : vector<9x256xf32> to vector<1x256xf32>
    %550 = vector.broadcast %549 : vector<1x256xf32> to vector<8x256xf32>
    %551 = arith.mulf %548, %550 : vector<8x256xf32>
    %c15_i32_140 = arith.constant 15 : i32
    %552 = tpu.dynamic_rotate %543 by %c15_i32_140 dim 1 : vector<8x256xf32>, i32 -> vector<8x256xf32>
    %553 = vector.extract_strided_slice %0 {offsets = [2, 0], sizes = [1, 256], strides = [1, 1]} : vector<9x256xf32> to vector<1x256xf32>
    %554 = vector.broadcast %553 : vector<1x256xf32> to vector<8x256xf32>
    %555 = arith.mulf %552, %554 : vector<8x256xf32>
    %c1_i32_141 = arith.constant 1 : i32
    %556 = tpu.dynamic_rotate %543 by %c1_i32_141 dim 1 : vector<8x256xf32>, i32 -> vector<8x256xf32>
    %557 = vector.extract_strided_slice %0 {offsets = [3, 0], sizes = [1, 256], strides = [1, 1]} : vector<9x256xf32> to vector<1x256xf32>
    %558 = vector.broadcast %557 : vector<1x256xf32> to vector<8x256xf32>
    %559 = arith.mulf %556, %558 : vector<8x256xf32>
    %c255_i32_142 = arith.constant 255 : i32
    %560 = tpu.dynamic_rotate %543 by %c255_i32_142 dim 1 : vector<8x256xf32>, i32 -> vector<8x256xf32>
    %561 = vector.extract_strided_slice %0 {offsets = [5, 0], sizes = [1, 256], strides = [1, 1]} : vector<9x256xf32> to vector<1x256xf32>
    %562 = vector.broadcast %561 : vector<1x256xf32> to vector<8x256xf32>
    %563 = arith.mulf %560, %562 : vector<8x256xf32>
    %c241_i32_143 = arith.constant 241 : i32
    %564 = tpu.dynamic_rotate %543 by %c241_i32_143 dim 1 : vector<8x256xf32>, i32 -> vector<8x256xf32>
    %565 = vector.extract_strided_slice %0 {offsets = [6, 0], sizes = [1, 256], strides = [1, 1]} : vector<9x256xf32> to vector<1x256xf32>
    %566 = vector.broadcast %565 : vector<1x256xf32> to vector<8x256xf32>
    %567 = arith.mulf %564, %566 : vector<8x256xf32>
    %c240_i32_144 = arith.constant 240 : i32
    %568 = tpu.dynamic_rotate %543 by %c240_i32_144 dim 1 : vector<8x256xf32>, i32 -> vector<8x256xf32>
    %569 = vector.extract_strided_slice %0 {offsets = [7, 0], sizes = [1, 256], strides = [1, 1]} : vector<9x256xf32> to vector<1x256xf32>
    %570 = vector.broadcast %569 : vector<1x256xf32> to vector<8x256xf32>
    %571 = arith.mulf %568, %570 : vector<8x256xf32>
    %c239_i32_145 = arith.constant 239 : i32
    %572 = tpu.dynamic_rotate %543 by %c239_i32_145 dim 1 : vector<8x256xf32>, i32 -> vector<8x256xf32>
    %573 = vector.extract_strided_slice %0 {offsets = [8, 0], sizes = [1, 256], strides = [1, 1]} : vector<9x256xf32> to vector<1x256xf32>
    %574 = vector.broadcast %573 : vector<1x256xf32> to vector<8x256xf32>
    %575 = arith.mulf %572, %574 : vector<8x256xf32>
    %576 = tpu.concatenate %547, %551, %555, %559, %543, %563, %567, %571, %575 in 0 : vector<8x256xf32>, vector<8x256xf32>, vector<8x256xf32>, vector<8x256xf32>, vector<8x256xf32>, vector<8x256xf32>, vector<8x256xf32>, vector<8x256xf32>, vector<8x256xf32> -> vector<72x256xf32>
    %577 = arith.truncf %576 : vector<72x256xf32> to vector<72x256xbf16>
    %cst_146 = arith.constant dense<0.000000e+00> : vector<16x256xf32>
    %578 = tpu.matmul %7, %577, %cst_146 {dimension_numbers = #tpu.dot_dimension_numbers<[1], [0], [0], [1], [0, 0, 1, 1], [], []>} : vector<16x72xbf16>, vector<72x256xbf16>, vector<16x256xf32> -> vector<16x256xf32>
    %579 = vector.broadcast %11 : vector<16x1xf32> to vector<16x256xf32>
    %580 = arith.addf %578, %579 : vector<16x256xf32>
    %581 = vector.extract_strided_slice %580 {offsets = [0, 0], sizes = [3, 256], strides = [1, 1]} : vector<16x256xf32> to vector<3x256xf32>
    %582 = math.tanh %581 : vector<3x256xf32>
    %583 = tpu.concatenate %582, %493, %536, %12 in 0 : vector<3x256xf32>, vector<2x256xf32>, vector<1x256xf32>, vector<2x256xf32> -> vector<8x256xf32>
    %c1_147 = arith.constant 1 : index
    %c0_148 = arith.constant 0 : index
    %c0_149 = arith.constant 0 : index
    %584 = vector.load %arg6[%c1_147, %c0_148, %c0_149] : memref<2x8x256xf32, #tpu.memory_space<vmem>>, vector<1x8x256xf32>
    %585 = vector.shape_cast %584 : vector<1x8x256xf32> to vector<8x256xf32>
    %586 = vector.shape_cast %583 : vector<8x256xf32> to vector<1x8x256xf32>
    tpu.vector_store %arg6[%c1_147, %c0_148, %c0_149], %586 {strides = array<i32>} : memref<2x8x256xf32, #tpu.memory_space<vmem>>, vector<1x8x256xf32>,
    return
  }
  func.func @transform_0(%arg0: i32) -> (i32, i32, i32) {
    %c0_i32 = arith.constant 0 : i32
    %c0_i32_0 = arith.constant 0 : i32
    %c0_i32_1 = arith.constant 0 : i32
    return %arg0, %c0_i32, %c0_i32_0 : i32, i32, i32
  }
  func.func @transform_1(%arg0: i32) -> (i32, i32) {
    %c0_i32 = arith.constant 0 : i32
    %c0_i32_0 = arith.constant 0 : i32
    %c0_i32_1 = arith.constant 0 : i32
    return %c0_i32, %c0_i32_0 : i32, i32
  }
  func.func @transform_2(%arg0: i32) -> (i32, i32) {
    %c0_i32 = arith.constant 0 : i32
    %c0_i32_0 = arith.constant 0 : i32
    %c0_i32_1 = arith.constant 0 : i32
    return %c0_i32, %c0_i32_0 : i32, i32
  }
  func.func @transform_3(%arg0: i32) -> (i32, i32) {
    %c0_i32 = arith.constant 0 : i32
    %c0_i32_0 = arith.constant 0 : i32
    %c0_i32_1 = arith.constant 0 : i32
    return %c0_i32, %c0_i32_0 : i32, i32
  }
  func.func @transform_4(%arg0: i32) -> (i32, i32) {
    %c0_i32 = arith.constant 0 : i32
    %c0_i32_0 = arith.constant 0 : i32
    %c0_i32_1 = arith.constant 0 : i32
    return %c0_i32, %c0_i32_0 : i32, i32
  }
  func.func @transform_5(%arg0: i32) -> (i32, i32, i32) {
    %c0_i32 = arith.constant 0 : i32
    %c0_i32_0 = arith.constant 0 : i32
    %c0_i32_1 = arith.constant 0 : i32
    return %arg0, %c0_i32, %c0_i32_0 : i32, i32, i32
  }
}

</mosaic_0001>

<bundles_post_ra>
// kernel: separable_decoder_forward.1
= control target key start
LH: loop header
LB: loop body
LE: loop exit
PB: predicated region body
PF: predicated region fallthrough
CT: control target
= control target key end

     0   :  { %s2381_s18 = smov 0   ;;  %s3756_s0 = inlined_call_operand.vmem [shape: f32[4,8,256], index: 0, kind: input, shape index: {}]   ;;  %s3757_s1 = inlined_call_operand.vmem [shape: f32[9,256], index: 1, kind: input, shape index: {}]   ;;  %s3758_s2 = inlined_call_operand.vmem [shape: bf16[64,72], index: 2, kind: input, shape index: {}]   ;;  %s3759_s3 = inlined_call_operand.vmem [shape: bf16[16,144], index: 3, kind: input, shape index: {}]   ;;  %s3760_s4 = inlined_call_operand.vmem [shape: f32[64,1], index: 4, kind: input, shape index: {}]   ;;  %s3761_s5 = inlined_call_operand.vmem [shape: f32[4,8,256], index: 5, kind: output, shape index: {}]  }
   0x1 LB: > { %s2172_s19 = sadd.s32 4294967295, %s2340_s18   ;;  %p2176_p0 = scmp.ge.s32.totalorder %s2340_s18, 1  ;;  %s2340_s18 = sphi %s2381_s18, %s15_s18  }
   0x2   : > { %p189_p1 = scmp.lt.s32.totalorder %s2340_s18, 3 }
   0x4   : > { %p190_p2 = pnand %p2176_p0, %p189_p1 }
   0x5   : > { %s2177_s20 = sshll.u32 (!%p190_p2), %s2172_s19, 1  ;;  %s2342_s25 = smov (!%p190_p2), 16   ;;  %v2348_v2 = vmov (!%p190_p2), 0   ;;  %v262_v3 = vlaneseq (!%p190_p2)  ;;  %v2452_v8 = vld [vmem:[%s3757_s1] sm:$0xff] (!%p190_p2)  ;;  %v2457_v9 = vld [vmem:[%s3757_s1 + $0x8] sm:$0xff] (!%p190_p2)  ;;  %vm415_vm8 = vcmask (!%p190_p2), 1043456  }
   0x6   : > { %193 = sbr.rel (%p190_p2) target bundleno = 4021 (0xfb5), region = 40  ;;  %p220_p3 = scmp.lt.s32.totalorder (!%p190_p2), %s2177_s20, 3  ;;  %454 = vmatprep.mubr.bf16.mxu0 (!%p190_p2), %v2348_v2  ;;  %630 = vmatprep.mubr.bf16.mxu1 (!%p190_p2), %v2348_v2  ;;  %vm411_vm9 = vcmask (!%p190_p2), 588800   ;;  %vm848_vm10 = vcmask (!%p190_p2), 130048   ;;  %vm1254_vm11 = vcmask (!%p190_p2), 1042432   ;;  %vm1257_vm12 = vcmask (!%p190_p2), 1044480  }
   0x7   : > { %s2343_s26 = smov (!%p190_p2), 17   ;;  %s2344_s27 = smov (!%p190_p2), 15   ;;  %2246 = vset.pattern.permute.xlu0 (!%p190_p2), %v2348_v2  ;;  %2247 = vset.pattern.permute.xlu1 (!%p190_p2), %v2348_v2  ;;  %v2441_v4 = vshrl.u32 (!%p190_p2), %v262_v3, 7  ;;  %v2443_v5 = vand.u32 (!%p190_p2), 127, %v262_v3  ;;  %vm1260_vm13 = vcmask (!%p190_p2), 1045504  }
   0x8   : > { %s2345_s28 = smov (!%p190_p2), 1   ;;  %s2346_s29 = smov (!%p190_p2), 127  }
   0x9   : > { %s2347_s30 = smov (!%p190_p2), 113   ;;  %s2349_s6 = smov (!%p190_p2), 112   ;;  %v2446_v6 = vsub.s32 (!%p190_p2), 0, %v2441_v4  ;;  %v286_v7 = vsub.s32 (!%p190_p2), 1, %v2441_v4  ;;  %vm281_vm0 = vcmp.lt.s32.totalorder (!%p190_p2), %v2443_v5, 16  ;;  %vm264_vm1 = vcmp.lt.s32.totalorder (!%p190_p2), %v2443_v5, 17 }
   0xa   : > { %s2350_s7 = smov (!%p190_p2), 111   ;;  %v303_v18 = vsub.s32 (!%p190_p2), 2, %v2441_v4  ;;  %v320_v19 = vsub.s32 (!%p190_p2), 3, %v2441_v4  ;;  %vm298_vm2 = vcmp.lt.s32.totalorder (!%p190_p2), %v2443_v5, 15  ;;  %vm315_vm3 = vcmp.lt.s32.totalorder (!%p190_p2), %v2443_v5, 1 }
   0xb   : > { %v2463_v12 = vrot.slane (!%p190_p2), %v2457_v9, %v2446_v6  ;;  %v2466_v13 = vrot.slane (!%p190_p2), %v2457_v9, %v286_v7  ;;  %v2470_v14 = vrot.slane (!%p190_p2), %v2452_v8, %v2446_v6  ;;  %v2473_v15 = vrot.slane (!%p190_p2), %v2452_v8, %v286_v7 }
   0xc   : > { %v337_v32 = vsub.s32 (!%p190_p2), 5, %v2441_v4  ;;  %v2493_v33 = vrot.slane (!%p190_p2), %v2452_v8, %v303_v18  ;;  %v2496_v34 = vrot.slane (!%p190_p2), %v2457_v9, %v303_v18  ;;  %v2499_v35 = vrot.slane (!%p190_p2), %v2452_v8, %v320_v19 }
   0xd   : > { %s3763_s20 = smov (!%p220_p3, %s2177_s20), 3  ;;  %v2502_v36 = vrot.slane %v2457_v9, %v320_v19  ;;  %vm332_vm4 = vcmp.lt.s32.totalorder %v2443_v5, 127  ;;  %v354_v57 = vsub.s32 6, %v2441_v4  ;;  %v371_v58 = vsub.s32 7, %v2441_v4 }
   0xe   : > { %s2227_s21 = sshll.u32 %s3763_s20, 4  ;;  %v2514_v43 = vrot.slane %v2452_v8, %v337_v32  ;;  %v2517_v44 = vrot.slane %v2457_v9, %v337_v32  ;;  %vm349_vm5 = vcmp.lt.s32.totalorder %v2443_v5, 113  ;;  %vm366_vm6 = vcmp.lt.s32.totalorder %v2443_v5, 112 }
   0xf   : > { %s2397_s24 = scalar_lea.vmem %s3756_s0, %s2227_s21  ;;  %v2536_v63 = vrot.slane %v2452_v8, %v354_v57  ;;  %v2539_v3 = vrot.slane %v2457_v9, %v354_v57  ;;  %v2542_v4 = vrot.slane %v2452_v8, %v371_v58  ;;  %v2545_v7 = vrot.slane %v2457_v9, %v371_v58 }
  0x10   : > { %v2400_v0 = vld [vmem:[%s2397_s24] sm:$0xff]  ;;  %v2407_v1 = vld [vmem:[%s2397_s24 + $0x8] sm:$0xff]  ;;  %vm383_vm7 = vcmp.lt.s32.totalorder %v2443_v5, 111 }
  0x11   : > { %277 = vrot.lane.b32.xlu1 %v2400_v0, %s2342_s25  ;;  %258 = vrot.lane.b32.xlu0 %v2400_v0, %s2343_s26 }
  0x15   : > { %279 = vrot.lane.b32.xlu1 %v2407_v1, %s2342_s25  ;;  %260 = vrot.lane.b32.xlu0 %v2407_v1, %s2343_s26 }
  0x19   : > { %296 = vrot.lane.b32.xlu1 %v2407_v1, %s2344_s27  ;;  %294 = vrot.lane.b32.xlu0 %v2400_v0, %s2344_s27 }
  0x1d   : > { %313 = vrot.lane.b32.xlu1 %v2407_v1, %s2345_s28  ;;  %311 = vrot.lane.b32.xlu0 %v2400_v0, %s2345_s28 }
  0x21   : > { %330 = vrot.lane.b32.xlu1 %v2407_v1, %s2346_s29  ;;  %328 = vrot.lane.b32.xlu0 %v2400_v0, %s2346_s29 }
  0x25   : > { %347 = vrot.lane.b32.xlu1 %v2407_v1, %s2347_s30  ;;  %345 = vrot.lane.b32.xlu0 %v2400_v0, %s2347_s30 }
  0x29   : > { %364 = vrot.lane.b32.xlu1 %v2407_v1, %s2349_s6  ;;  %362 = vrot.lane.b32.xlu0 %v2400_v0, %s2349_s6 }
  0x2d   : > { %381 = vrot.lane.b32.xlu1 %v2407_v1, %s2350_s7  ;;  %379 = vrot.lane.b32.xlu0 %v2400_v0, %s2350_s7 }
  0x83   : > { %v278_v10 = vpop.permute.xlu1 %277  ;;  %v259_v11 = vpop.permute.xlu0 %258 }
  0x87   : > { %v280_v16 = vpop.permute.xlu1 %279  ;;  %v261_v17 = vpop.permute.xlu0 %260 }
  0x88   : > { %v283_v20 = vsel %vm281_vm0, %v280_v16, %v278_v10  ;;  %v266_v21 = vsel %vm264_vm1, %v261_v17, %v259_v11  ;;  %v265_v22 = vsel %vm264_vm1, %v259_v11, %v261_v17  ;;  %v282_v23 = vsel %vm281_vm0, %v278_v10, %v280_v16 }
  0x89   : > { %v276_v24 = vmul.f32 %v2463_v12, %v265_v22  ;;  %v293_v25 = vmul.f32 %v2466_v13, %v282_v23  ;;  %v275_v26 = vmul.f32 %v2470_v14, %v266_v21  ;;  %v292_v27 = vmul.f32 %v2473_v15, %v283_v20  ;;  %v2563_v20 = vld [vmem:[%s3757_s1 + $0x18] ss:$0 sm:$0xff]  ;;  %v2568_v21 = vld [vmem:[%s3757_s1 + $0x10] ss:$0 sm:$0xff] }
  0x8b   : > { %v297_v28 = vpop.permute.xlu1 %296  ;;  %v295_v29 = vpop.permute.xlu0 %294  ;;  %v397_v30 = vpack.c.bf16 %v293_v25, %v276_v24  ;;  %v396_v31 = vpack.c.bf16 %v292_v27, %v275_v26 }
  0x8c   : > { %v299_v37 = vsel %vm298_vm2, %v295_v29, %v297_v28  ;;  %v300_v38 = vsel %vm298_vm2, %v297_v28, %v295_v29 }
  0x8d   : > { %422 = vmatprep.subr.bf16.mxu0 %v397_v30  ;;  %v309_v45 = vmul.f32 %v2493_v33, %v300_v38  ;;  %v310_v46 = vmul.f32 %v2496_v34, %v299_v37  ;;  %v2581_v37 = vld [vmem:[%s3758_s2] sm:$0xff]  }
  0x8e   : > { %423 = vmatpush1.bf16.msra.mxu0 %v396_v31 }
  0x8f   : > { %v314_v39 = vpop.permute.xlu1 %313  ;;  %v312_v40 = vpop.permute.xlu0 %311 }
  0x90   : > { %v316_v41 = vsel %vm315_vm3, %v312_v40, %v314_v39  ;;  %v317_v42 = vsel %vm315_vm3, %v314_v39, %v312_v40 }
  0x91   : > { %v326_v47 = vmul.f32 %v2499_v35, %v317_v42  ;;  %v327_v48 = vmul.f32 %v2502_v36, %v316_v41 }
  0x93   : > { %v331_v49 = vpop.permute.xlu1 %330  ;;  %v329_v50 = vpop.permute.xlu0 %328  ;;  %v399_v51 = vpack.c.bf16 %v327_v48, %v310_v46  ;;  %v398_v52 = vpack.c.bf16 %v326_v47, %v309_v45 }
  0x94   : > { %v333_v53 = vsel %vm332_vm4, %v329_v50, %v331_v49  ;;  %v334_v54 = vsel %vm332_vm4, %v331_v49, %v329_v50 }
  0x95   : > { %v343_v55 = vmul.f32 %v2514_v43, %v333_v53  ;;  %v344_v56 = vmul.f32 %v2517_v44, %v334_v54  ;;  %424 = vmatprep.subr.bf16.mxu0 %v399_v51 }
  0x96   : > { %425 = vmatpush1.bf16.msra.mxu0 %v398_v52 }
  0x97   : > { %v348_v59 = vpop.permute.xlu1 %347  ;;  %v346_v60 = vpop.permute.xlu0 %345  ;;  %v401_v61 = vpack.c.bf16 %v344_v56, %v2407_v1  ;;  %v400_v62 = vpack.c.bf16 %v343_v55, %v2400_v0 }
  0x98   : > { %v350_v1 = vsel %vm349_vm5, %v346_v60, %v348_v59  ;;  %v351_v0 = vsel %vm349_vm5, %v348_v59, %v346_v60 }
  0x99   : > { %426 = vmatprep.subr.bf16.mxu0 %v401_v61  ;;  %v360_v9 = vmul.f32 %v2536_v63, %v350_v1  ;;  %v361_v17 = vmul.f32 %v2539_v3, %v351_v0 }
  0x9a   : > { %427 = vmatpush1.bf16.msra.mxu0 %v400_v62 }
  0x9b   : > { %v365_v10 = vpop.permute.xlu1 %364  ;;  %v363_v11 = vpop.permute.xlu0 %362 }
  0x9c   : > { %v367_v16 = vsel %vm366_vm6, %v363_v11, %v365_v10  ;;  %v368_v8 = vsel %vm366_vm6, %v365_v10, %v363_v11 }
  0x9d   : > { %v377_v18 = vmul.f32 %v2542_v4, %v367_v16  ;;  %v378_v19 = vmul.f32 %v2545_v7, %v368_v8 }
  0x9f   : > { %v382_v22 = vpop.permute.xlu1 %381  ;;  %v380_v23 = vpop.permute.xlu0 %379  ;;  %v403_v24 = vpack.c.bf16 %v378_v19, %v361_v17  ;;  %v402_v25 = vpack.c.bf16 %v377_v18, %v360_v9 }
  0xa0   : > { %v384_v26 = vsel %vm383_vm7, %v380_v23, %v382_v22  ;;  %v385_v27 = vsel %vm383_vm7, %v382_v22, %v380_v23  ;;  %v248_v22 = vld [vmem:[%s3760_s4] sm:$0xff]  ;;  %v249_v23 = vld [vmem:[%s3760_s4 + $0x8] sm:$0xff] }
  0xa1   : > { %v395_v28 = vmul.f32 %v2563_v20, %v385_v27  ;;  %428 = vmatprep.subr.bf16.mxu0 %v403_v24  ;;  %v394_v29 = vmul.f32 %v2568_v21, %v384_v26 }
  0xa2   : > { %429 = vmatpush1.bf16.msra.mxu0 %v402_v25 }
  0xa3   : > { %v405_v30 = vpack.c.bf16 %v395_v28, %v395_v28  ;;  %v404_v31 = vpack.c.bf16 %v394_v29, %v394_v29 }
  0xa5   : > { %2186 = vmatprep.subr.msk.bf16.mxu0 %vm415_vm8, %v405_v30  ;;  %v417_v32 = vsel %vm415_vm8, %v404_v31, 0 }
  0xa6   : > { %431 = vmatpush1.bf16.msra.mxu0 %v417_v32 }
  0xa9   : > { %2187 = vmatmul.mubr.msk.bf16.vlgmr.msra.gmra.mrb[0].mxu0 %vm411_vm9, %v2581_v37 }
 0x17c   : > { %v456_v38 = vpop.f32.mrb[0].mxu0 }
 0x17d   : > { %v458_v39 = vpop.f32.mrb[1].mxu0 }
 0x17e   : > { %v460_v40 = vpop.f32.mrb[2].mxu0 }
 0x17f   : > { %v2188_v41 = vmul.f32 -1.442695, %v460_v40  ;;  %v462_v42 = vpop.f32.mrb[3].mxu0 }
 0x180   : > { %v2189_v45 = vmul.f32 -1.442695, %v462_v42 }
 0x181   : > { %2255 = vpow2.f32 %v2188_v41 }
 0x182   : > { %2257 = vpow2.f32 %v2189_v45 }
 0x18b   : > { %v2256_v46 = vpop.eup %2255 }
 0x18c   : > { %v2258_v47 = vpop.eup %2257  ;;  %v471_v48 = vadd.f32 1.0, %v2256_v46 }
 0x18d   : > { %v472_v49 = vadd.f32 1.0, %v2258_v47 }
 0x18e   : > { %2259 = vrcp.f32 %v471_v48 }
 0x18f   : > { %2261 = vrcp.f32 %v472_v49 }
 0x198   : > { %v2260_v50 = vpop.eup %2259 }
 0x199   : > { %v2262_v51 = vpop.eup %2261  ;;  %v477_v52 = vmul.f32 %v2260_v50, %v456_v38 }
 0x19a   : > { %v478_v53 = vmul.f32 %v2262_v51, %v458_v39 }
 0x19b   : > { %v483_v54 = vmul.f32 %v477_v52, %v477_v52 }
 0x19c   : > { %v479_v55 = vadd.f32 %v478_v53, %v477_v52  ;;  %v484_v56 = vmul.f32 %v478_v53, %v478_v53 }
 0x19e   : > { %480 = vadd.xlane.f32.xlu0 %v479_v55  ;;  %v485_v57 = vadd.f32 %v484_v56, %v483_v54 }
 0x1a0   : > { %486 = vadd.xlane.f32.xlu1 %v485_v57 }
 0x22b   : > { %v481_v58 = vpop.xlane.xlu0 %480 }
 0x22c   : > { %v482_v59 = vmul.f32 0.00390625, %v481_v58 }
 0x22d   : > { %v487_v60 = vpop.xlane.xlu1 %486 }
 0x22e   : > { %v488_v61 = vmul.f32 0.00390625, %v487_v60  ;;  %v489_v62 = vmul.f32 %v482_v59, %v482_v59  ;;  %v492_v11 = vsub.f32 %v477_v52, %v482_v59  ;;  %v493_v16 = vsub.f32 %v478_v53, %v482_v59 }
 0x230   : > { %v490_v1 = vsub.f32 %v488_v61, %v489_v62 }
 0x232   : > { %v491_v0 = vmax.f32 %v490_v1, 0.0 }
 0x234   : > { %v494_v10 = vadd.f32 1e-05, %v491_v0 }
 0x236   : > { %2263 = vrsqrt.f32 %v494_v10 }
 0x240   : > { %v2264_v8 = vpop.eup %2263 }
 0x241   : > { %v496_v9 = vmul.f32 %v2264_v8, %v492_v11  ;;  %v497_v17 = vmul.f32 %v2264_v8, %v493_v16 }
 0x243   : > { %v2585_v18 = vmax.f32 %v496_v9, 0.0  ;;  %v2587_v19 = vmax.f32 %v497_v17, 0.0 }
 0x245   : > { %502 = vrot.lane.b32.xlu1 %v2587_v19, %s2343_s26  ;;  %500 = vrot.lane.b32.xlu0 %v2585_v18, %s2343_s26 }
 0x249   : > { %510 = vrot.lane.b32.xlu1 %v2587_v19, %s2342_s25  ;;  %508 = vrot.lane.b32.xlu0 %v2585_v18, %s2342_s25 }
 0x24d   : > { %518 = vrot.lane.b32.xlu1 %v2587_v19, %s2344_s27  ;;  %516 = vrot.lane.b32.xlu0 %v2585_v18, %s2344_s27 }
 0x251   : > { %526 = vrot.lane.b32.xlu1 %v2587_v19, %s2345_s28  ;;  %524 = vrot.lane.b32.xlu0 %v2585_v18, %s2345_s28 }
 0x255   : > { %534 = vrot.lane.b32.xlu1 %v2587_v19, %s2346_s29  ;;  %532 = vrot.lane.b32.xlu0 %v2585_v18, %s2346_s29 }
 0x259   : > { %542 = vrot.lane.b32.xlu1 %v2587_v19, %s2347_s30  ;;  %540 = vrot.lane.b32.xlu0 %v2585_v18, %s2347_s30 }
 0x25d   : > { %550 = vrot.lane.b32.xlu1 %v2587_v19, %s2349_s6  ;;  %548 = vrot.lane.b32.xlu0 %v2585_v18, %s2349_s6 }
 0x261   : > { %558 = vrot.lane.b32.xlu1 %v2587_v19, %s2350_s7  ;;  %556 = vrot.lane.b32.xlu0 %v2585_v18, %s2350_s7 }
 0x265   : > { %576 = vperm.xlu0 %2246, %v248_v22   ;;  %581 = vperm.xlu1 %2247, %v249_v23  }
 0x2b7   : > { %v503_v24 = vpop.permute.xlu1 %502  ;;  %v501_v25 = vpop.permute.xlu0 %500 }
 0x2b8   : > { %v505_v26 = vsel %vm264_vm1, %v503_v24, %v501_v25  ;;  %v504_v27 = vsel %vm264_vm1, %v501_v25, %v503_v24 }
 0x2b9   : > { %v507_v32 = vmul.f32 %v504_v27, %v2463_v12  ;;  %v506_v39 = vmul.f32 %v505_v26, %v2470_v14 }
 0x2bb   : > { %v511_v28 = vpop.permute.xlu1 %510  ;;  %v509_v29 = vpop.permute.xlu0 %508 }
 0x2bc   : > { %v513_v30 = vsel %vm281_vm0, %v511_v28, %v509_v29  ;;  %v512_v31 = vsel %vm281_vm0, %v509_v29, %v511_v28 }
 0x2bd   : > { %v515_v38 = vmul.f32 %v512_v31, %v2466_v13  ;;  %v514_v40 = vmul.f32 %v513_v30, %v2473_v15 }
 0x2bf   : > { %v519_v41 = vpop.permute.xlu1 %518  ;;  %v517_v42 = vpop.permute.xlu0 %516  ;;  %v565_v45 = vpack.c.bf16 %v515_v38, %v507_v32  ;;  %v564_v46 = vpack.c.bf16 %v514_v40, %v506_v39 }
 0x2c0   : > { %v520_v47 = vsel %vm298_vm2, %v517_v42, %v519_v41  ;;  %v521_v48 = vsel %vm298_vm2, %v519_v41, %v517_v42 }
 0x2c1   : > { %598 = vmatprep.subr.bf16.mxu1 %v565_v45  ;;  %v522_v53 = vmul.f32 %v521_v48, %v2493_v33  ;;  %v523_v54 = vmul.f32 %v520_v47, %v2496_v34 }
 0x2c2   : > { %599 = vmatpush1.bf16.msra.mxu1 %v564_v46  ;;  %v2249_v46 = vld [vmem:[%s3758_s2 + $0x8] sm:$0xff]  }
 0x2c3   : > { %v527_v49 = vpop.permute.xlu1 %526  ;;  %v525_v50 = vpop.permute.xlu0 %524 }
 0x2c4   : > { %v528_v51 = vsel %vm315_vm3, %v525_v50, %v527_v49  ;;  %v529_v52 = vsel %vm315_vm3, %v527_v49, %v525_v50 }
 0x2c5   : > { %v530_v55 = vmul.f32 %v529_v52, %v2499_v35  ;;  %v531_v56 = vmul.f32 %v528_v51, %v2502_v36 }
 0x2c7   : > { %v535_v57 = vpop.permute.xlu1 %534  ;;  %v533_v58 = vpop.permute.xlu0 %532  ;;  %v567_v59 = vpack.c.bf16 %v531_v56, %v523_v54  ;;  %v566_v60 = vpack.c.bf16 %v530_v55, %v522_v53 }
 0x2c8   : > { %v536_v61 = vsel %vm332_vm4, %v533_v58, %v535_v57  ;;  %v537_v62 = vsel %vm332_vm4, %v535_v57, %v533_v58 }
 0x2c9   : > { %v538_v1 = vmul.f32 %v536_v61, %v2514_v43  ;;  %v539_v0 = vmul.f32 %v537_v62, %v2517_v44  ;;  %600 = vmatprep.subr.bf16.mxu1 %v567_v59 }
 0x2ca   : > { %601 = vmatpush1.bf16.msra.mxu1 %v566_v60 }
 0x2cb   : > { %v543_v10 = vpop.permute.xlu1 %542  ;;  %v541_v11 = vpop.permute.xlu0 %540  ;;  %v569_v16 = vpack.c.bf16 %v539_v0, %v2587_v19  ;;  %v568_v8 = vpack.c.bf16 %v538_v1, %v2585_v18 }
 0x2cc   : > { %v544_v9 = vsel %vm349_vm5, %v541_v11, %v543_v10  ;;  %v545_v17 = vsel %vm349_vm5, %v543_v10, %v541_v11 }
 0x2cd   : > { %602 = vmatprep.subr.bf16.mxu1 %v569_v16  ;;  %v546_v19 = vmul.f32 %v544_v9, %v2536_v63  ;;  %v547_v18 = vmul.f32 %v545_v17, %v2539_v3 }
 0x2ce   : > { %603 = vmatpush1.bf16.msra.mxu1 %v568_v8 }
 0x2cf   : > { %v551_v22 = vpop.permute.xlu1 %550  ;;  %v549_v23 = vpop.permute.xlu0 %548 }
 0x2d0   : > { %v552_v24 = vsel %vm366_vm6, %v549_v23, %v551_v22  ;;  %v553_v25 = vsel %vm366_vm6, %v551_v22, %v549_v23 }
 0x2d1   : > { %v554_v26 = vmul.f32 %v552_v24, %v2542_v4  ;;  %v555_v27 = vmul.f32 %v553_v25, %v2545_v7 }
 0x2d3   : > { %v559_v28 = vpop.permute.xlu1 %558  ;;  %v557_v29 = vpop.permute.xlu0 %556  ;;  %v571_v30 = vpack.c.bf16 %v555_v27, %v547_v18  ;;  %v570_v31 = vpack.c.bf16 %v554_v26, %v546_v19 }
 0x2d4   : > { %v560_v32 = vsel %vm383_vm7, %v557_v29, %v559_v28  ;;  %v561_v38 = vsel %vm383_vm7, %v559_v28, %v557_v29 }
 0x2d5   : > { %v563_v39 = vmul.f32 %v2563_v20, %v561_v38  ;;  %604 = vmatprep.subr.bf16.mxu1 %v571_v30  ;;  %v562_v40 = vmul.f32 %v2568_v21, %v560_v32 }
 0x2d6   : > { %605 = vmatpush1.bf16.msra.mxu1 %v570_v31 }
 0x2d7   : > { %v573_v41 = vpack.c.bf16 %v563_v39, %v563_v39  ;;  %v572_v42 = vpack.c.bf16 %v562_v40, %v562_v40 }
 0x2d9   : > { %2191 = vmatprep.subr.msk.bf16.mxu1 %vm415_vm8, %v573_v41  ;;  %v593_v45 = vsel %vm415_vm8, %v572_v42, 0 }
 0x2da   : > { %607 = vmatpush1.bf16.msra.mxu1 %v593_v45 }
 0x2dd   : > { %2192 = vmatmul.mubr.msk.bf16.vlgmr.msra.gmra.mrb[0].mxu1 %vm411_vm9, %v2249_v46 }
 0x2de   : > { %1057 = vmatprep.mubr.bf16.mxu1 %v2348_v2 }
 0x2e4   : > { %v2684_v47 = vpop.permute.xlu0 %576  ;;  %v2686_v49 = vpop.permute.xlu1 %581 }
 0x3b0   : > { %v632_v48 = vpop.f32.mrb[0].mxu1 }
 0x3b1   : > { %v634_v50 = vpop.f32.mrb[1].mxu1  ;;  %v633_v51 = vadd.f32 %v632_v48, %v2684_v47 }
 0x3b2   : > { %v635_v52 = vadd.f32 %v634_v50, %v2684_v47  ;;  %v636_v53 = vpop.f32.mrb[2].mxu1 }
 0x3b3   : > { %v637_v54 = vadd.f32 %v636_v53, %v2686_v49  ;;  %v638_v55 = vpop.f32.mrb[3].mxu1  ;;  %v649_v61 = vmul.f32 %v633_v51, %v633_v51 }
 0x3b4   : > { %v639_v56 = vadd.f32 %v638_v55, %v2686_v49  ;;  %v641_v57 = vadd.f32 %v635_v52, %v633_v51  ;;  %v650_v62 = vmul.f32 %v635_v52, %v635_v52  ;;  %v2775_v55 = vld [vmem:[%s2397_s24 + $0x10] sm:$0xff] }
 0x3b5   : > { %v651_v58 = vmul.f32 %v637_v54, %v637_v54 }
 0x3b6   : > { %642 = vadd.xlane.f32.xlu1 %v641_v57  ;;  %v644_v59 = vadd.f32 %v639_v56, %v637_v54  ;;  %v652_v60 = vmul.f32 %v639_v56, %v639_v56  ;;  %v653_v0 = vadd.f32 %v650_v62, %v649_v61 }
 0x3b8   : > { %645 = vadd.xlane.f32.xlu0 %v644_v59  ;;  %v656_v1 = vadd.f32 %v652_v60, %v651_v58 }
 0x3ba   : > { %657 = vadd.xlane.f32.xlu1 %v656_v1 }
 0x3bc   : > { %654 = vadd.xlane.f32.xlu0 %v653_v0 }
 0x443   : > { %v643_v10 = vpop.xlane.xlu1 %642 }
 0x444   : > { %v647_v16 = vmul.f32 0.00390625, %v643_v10 }
 0x445   : > { %v646_v11 = vpop.xlane.xlu0 %645 }
 0x446   : > { %v648_v8 = vmul.f32 0.00390625, %v646_v11  ;;  %v661_v25 = vmul.f32 %v647_v16, %v647_v16  ;;  %v667_v31 = vsub.f32 %v633_v51, %v647_v16  ;;  %v668_v32 = vsub.f32 %v635_v52, %v647_v16  ;;  %v2759_v52 = vld [vmem:[%s3759_s3 + $0x4] ss:$8 sps:$4 sm:$0xff]  }
 0x447   : > { %v658_v9 = vpop.xlane.xlu1 %657  ;;  %2195 = vmatprep.mubr.msk.bf16.mxu0 %vm848_vm10, %v2759_v52 }
 0x448   : > { %v660_v17 = vmul.f32 0.00390625, %v658_v9  ;;  %v662_v22 = vmul.f32 %v648_v8, %v648_v8  ;;  %v670_v39 = vsub.f32 %v639_v56, %v648_v8  ;;  %v669_v48 = vsub.f32 %v637_v54, %v648_v8  ;;  %v250_v54 = vld [vmem:[%s3760_s4 + $0x10] sm:$0xff]  ;;  %v2780_v56 = vld [vmem:[%s2397_s24 + $0x18] sm:$0xff] }
 0x449   : > { %v655_v23 = vpop.xlane.xlu0 %654 }
 0x44a   : > { %v664_v24 = vsub.f32 %v660_v17, %v662_v22  ;;  %v659_v19 = vmul.f32 0.00390625, %v655_v23 }
 0x44c   : > { %v666_v18 = vmax.f32 %v664_v24, 0.0  ;;  %v663_v26 = vsub.f32 %v659_v19, %v661_v25 }
 0x44e   : > { %v672_v27 = vadd.f32 1e-05, %v666_v18  ;;  %v665_v28 = vmax.f32 %v663_v26, 0.0 }
 0x450   : > { %v671_v29 = vadd.f32 1e-05, %v665_v28  ;;  %2265 = vrsqrt.f32 %v672_v27 }
 0x452   : > { %2267 = vrsqrt.f32 %v671_v29 }
 0x45a   : > { %v2266_v30 = vpop.eup %2265 }
 0x45b   : > { %v678_v42 = vmul.f32 %v2266_v30, %v670_v39  ;;  %v677_v50 = vmul.f32 %v2266_v30, %v669_v48 }
 0x45c   : > { %v2268_v38 = vpop.eup %2267 }
 0x45d   : > { %v675_v40 = vmul.f32 %v2268_v38, %v667_v31  ;;  %v676_v41 = vmul.f32 %v2268_v38, %v668_v32  ;;  %v2700_v53 = vmax.f32 %v678_v42, 0.0  ;;  %v2706_v51 = vmax.f32 %v677_v50, 0.0 }
 0x45f   : > { %v2692_v45 = vmax.f32 %v675_v40, 0.0  ;;  %v2694_v46 = vmax.f32 %v676_v41, 0.0 }
 0x461   : > { %687 = vrot.lane.b32.xlu1 %v2694_v46, %s2343_s26  ;;  %683 = vrot.lane.b32.xlu0 %v2692_v45, %s2343_s26 }
 0x465   : > { %699 = vrot.lane.b32.xlu1 %v2692_v45, %s2342_s25  ;;  %689 = vrot.lane.b32.xlu0 %v2700_v53, %s2343_s26 }
 0x469   : > { %703 = vrot.lane.b32.xlu1 %v2694_v46, %s2342_s25  ;;  %701 = vrot.lane.b32.xlu0 %v2706_v51, %s2342_s25 }
 0x46d   : > { %715 = vrot.lane.b32.xlu1 %v2692_v45, %s2344_s27  ;;  %705 = vrot.lane.b32.xlu0 %v2700_v53, %s2342_s25 }
 0x471   : > { %719 = vrot.lane.b32.xlu1 %v2694_v46, %s2344_s27  ;;  %717 = vrot.lane.b32.xlu0 %v2706_v51, %s2344_s27 }
 0x475   : > { %731 = vrot.lane.b32.xlu1 %v2692_v45, %s2345_s28  ;;  %721 = vrot.lane.b32.xlu0 %v2700_v53, %s2344_s27 }
 0x479   : > { %735 = vrot.lane.b32.xlu1 %v2694_v46, %s2345_s28  ;;  %733 = vrot.lane.b32.xlu0 %v2706_v51, %s2345_s28 }
 0x47d   : > { %685 = vrot.lane.b32.xlu1 %v2706_v51, %s2343_s26  ;;  %737 = vrot.lane.b32.xlu0 %v2700_v53, %s2345_s28 }
 0x481   : > { %747 = vrot.lane.b32.xlu1 %v2692_v45, %s2346_s29  ;;  %749 = vrot.lane.b32.xlu0 %v2706_v51, %s2346_s29 }
 0x485   : > { %751 = vrot.lane.b32.xlu1 %v2694_v46, %s2346_s29  ;;  %753 = vrot.lane.b32.xlu0 %v2700_v53, %s2346_s29 }
 0x489   : > { %763 = vrot.lane.b32.xlu1 %v2692_v45, %s2347_s30  ;;  %765 = vrot.lane.b32.xlu0 %v2706_v51, %s2347_s30 }
 0x48d   : > { %767 = vrot.lane.b32.xlu1 %v2694_v46, %s2347_s30  ;;  %769 = vrot.lane.b32.xlu0 %v2700_v53, %s2347_s30 }
 0x491   : > { %779 = vrot.lane.b32.xlu1 %v2692_v45, %s2349_s6  ;;  %781 = vrot.lane.b32.xlu0 %v2706_v51, %s2349_s6 }
 0x495   : > { %783 = vrot.lane.b32.xlu1 %v2694_v46, %s2349_s6  ;;  %785 = vrot.lane.b32.xlu0 %v2700_v53, %s2349_s6 }
 0x499   : > { %795 = vrot.lane.b32.xlu1 %v2692_v45, %s2350_s7  ;;  %797 = vrot.lane.b32.xlu0 %v2706_v51, %s2350_s7 }
 0x49d   : > { %799 = vrot.lane.b32.xlu1 %v2694_v46, %s2350_s7  ;;  %801 = vrot.lane.b32.xlu0 %v2700_v53, %s2350_s7 }
 0x4a1   : > { %831 = vperm.xlu1 %2247, %v250_v54   ;;  %1268 = vrot.lane.b32.xlu0 %v2775_v55, %s2343_s26 }
 0x4a5   : > { %1270 = vrot.lane.b32.xlu1 %v2780_v56, %s2343_s26  ;;  %1276 = vrot.lane.b32.xlu0 %v2775_v55, %s2342_s25 }
 0x4a9   : > { %1278 = vrot.lane.b32.xlu1 %v2780_v56, %s2342_s25  ;;  %1284 = vrot.lane.b32.xlu0 %v2775_v55, %s2344_s27 }
 0x4ad   : > { %1286 = vrot.lane.b32.xlu1 %v2780_v56, %s2344_s27  ;;  %1292 = vrot.lane.b32.xlu0 %v2775_v55, %s2345_s28 }
 0x4b1   : > { %1294 = vrot.lane.b32.xlu1 %v2780_v56, %s2345_s28 }
 0x4b5   : > { %1302 = vrot.lane.b32.xlu1 %v2780_v56, %s2346_s29 }
 0x4b9   : > { %1310 = vrot.lane.b32.xlu1 %v2780_v56, %s2347_s30 }
 0x4d3   : > { %v688_v57 = vpop.permute.xlu1 %687  ;;  %v684_v58 = vpop.permute.xlu0 %683 }
 0x4d4   : > { %v693_v22 = vsel %vm264_vm1, %v688_v57, %v684_v58  ;;  %v691_v23 = vsel %vm264_vm1, %v684_v58, %v688_v57 }
 0x4d5   : > { %v695_v25 = vmul.f32 %v693_v22, %v2470_v14  ;;  %v696_v26 = vmul.f32 %v691_v23, %v2463_v12 }
 0x4d7   : > { %v700_v59 = vpop.permute.xlu1 %699  ;;  %v690_v60 = vpop.permute.xlu0 %689 }
 0x4db   : > { %v704_v61 = vpop.permute.xlu1 %703  ;;  %v702_v62 = vpop.permute.xlu0 %701 }
 0x4dc   : > { %v707_v27 = vsel %vm281_vm0, %v700_v59, %v704_v61  ;;  %v709_v40 = vsel %vm281_vm0, %v704_v61, %v700_v59 }
 0x4dd   : > { %v712_v41 = vmul.f32 %v707_v27, %v2466_v13  ;;  %v711_v59 = vmul.f32 %v709_v40, %v2473_v15 }
 0x4df   : > { %v716_v1 = vpop.permute.xlu1 %715  ;;  %v706_v0 = vpop.permute.xlu0 %705 }
 0x4e0   : > { %v708_v24 = vsel %vm281_vm0, %v702_v62, %v706_v0  ;;  %v710_v30 = vsel %vm281_vm0, %v706_v0, %v702_v62 }
 0x4e1   : > { %v714_v31 = vmul.f32 %v708_v24, %v2466_v13  ;;  %v713_v57 = vmul.f32 %v710_v30, %v2473_v15 }
 0x4e3   : > { %v720_v10 = vpop.permute.xlu1 %719  ;;  %v718_v11 = vpop.permute.xlu0 %717  ;;  %v814_v0 = vpack.c.bf16 %v714_v31, %v712_v41 }
 0x4e4   : > { %v723_v58 = vsel %vm298_vm2, %v716_v1, %v720_v10  ;;  %v725_v22 = vsel %vm298_vm2, %v720_v10, %v716_v1 }
 0x4e5   : > { %v728_v23 = vmul.f32 %v723_v58, %v2496_v34 }
 0x4e7   : > { %v732_v16 = vpop.permute.xlu1 %731  ;;  %v722_v8 = vpop.permute.xlu0 %721 }
 0x4e8   : > { %v724_v39 = vsel %vm298_vm2, %v718_v11, %v722_v8 }
 0x4e9   : > { %v730_v62 = vmul.f32 %v724_v39, %v2496_v34 }
 0x4eb   : > { %v736_v9 = vpop.permute.xlu1 %735  ;;  %v734_v17 = vpop.permute.xlu0 %733 }
 0x4ec   : > { %v741_v1 = vsel %vm315_vm3, %v736_v9, %v732_v16 }
 0x4ef   : > { %v686_v19 = vpop.permute.xlu1 %685  ;;  %v738_v18 = vpop.permute.xlu0 %737 }
 0x4f0   : > { %v692_v28 = vsel %vm264_vm1, %v686_v19, %v690_v60  ;;  %v694_v29 = vsel %vm264_vm1, %v690_v60, %v686_v19  ;;  %v726_v60 = vsel %vm298_vm2, %v722_v8, %v718_v11  ;;  %v740_v61 = vsel %vm315_vm3, %v734_v17, %v738_v18 }
 0x4f1   : > { %v697_v32 = vmul.f32 %v694_v29, %v2470_v14  ;;  %v698_v38 = vmul.f32 %v692_v28, %v2463_v12  ;;  %v813_v19 = vpack.c.bf16 %v713_v57, %v711_v59  ;;  %v729_v11 = vmul.f32 %v726_v60, %v2493_v33 }
 0x4f2   : > { %v739_v8 = vsel %vm315_vm3, %v732_v16, %v736_v9  ;;  %v746_v27 = vmul.f32 %v740_v61, %v2502_v36  ;;  %v816_v28 = vpack.c.bf16 %v730_v62, %v728_v23  ;;  %v727_v29 = vmul.f32 %v725_v22, %v2493_v33 }
 0x4f3   : > { %v811_v42 = vpack.c.bf16 %v697_v32, %v695_v25  ;;  %v748_v48 = vpop.permute.xlu1 %747  ;;  %v750_v50 = vpop.permute.xlu0 %749  ;;  %v812_v54 = vpack.c.bf16 %v698_v38, %v696_v26  ;;  %v742_v26 = vsel %vm315_vm3, %v738_v18, %v734_v17  ;;  %v744_v10 = vmul.f32 %v739_v8, %v2502_v36 }
 0x4f4   : > { %v815_v32 = vpack.c.bf16 %v729_v11, %v727_v29  ;;  %v745_v38 = vmul.f32 %v742_v26, %v2499_v35  ;;  %v743_v17 = vmul.f32 %v741_v1, %v2499_v35  ;;  %v820_v60 = vpack.c.bf16 %v2700_v53, %v2694_v46 }
 0x4f5   : > { %852 = vmatprep.subr.bf16.mxu0 %v812_v54  ;;  %v818_v39 = vpack.c.bf16 %v746_v27, %v744_v10 }
 0x4f6   : > { %853 = vmatpush1.bf16.msra.mxu0 %v811_v42  ;;  %v817_v9 = vpack.c.bf16 %v745_v38, %v743_v17 }
 0x4f7   : > { %v752_v24 = vpop.permute.xlu1 %751  ;;  %854 = vmatprep.subr.bf16.mxu0 %v814_v0  ;;  %v754_v25 = vpop.permute.xlu0 %753 }
 0x4f8   : > { %v757_v18 = vsel %vm332_vm4, %v752_v24, %v748_v48  ;;  %v758_v40 = vsel %vm332_vm4, %v754_v25, %v750_v50  ;;  %v755_v42 = vsel %vm332_vm4, %v748_v48, %v752_v24  ;;  %v756_v54 = vsel %vm332_vm4, %v750_v50, %v754_v25 }
 0x4f9   : > { %v760_v57 = vmul.f32 %v757_v18, %v2517_v44  ;;  %v762_v58 = vmul.f32 %v758_v40, %v2517_v44  ;;  %v759_v59 = vmul.f32 %v755_v42, %v2514_v43  ;;  %v761_v48 = vmul.f32 %v756_v54, %v2514_v43 }
 0x4fa   : > { %855 = vmatpush1.bf16.msra.mxu0 %v813_v19  ;;  %v819_v24 = vpack.c.bf16 %v2706_v51, %v2692_v45 }
 0x4fb   : > { %v764_v30 = vpop.permute.xlu1 %763  ;;  %856 = vmatprep.subr.bf16.mxu0 %v816_v28  ;;  %v766_v31 = vpop.permute.xlu0 %765  ;;  %v822_v11 = vpack.c.bf16 %v762_v58, %v760_v57  ;;  %v821_v8 = vpack.c.bf16 %v761_v48, %v759_v59 }
 0x4fe   : > { %857 = vmatpush1.bf16.msra.mxu0 %v815_v32 }
 0x4ff   : > { %v768_v41 = vpop.permute.xlu1 %767  ;;  %858 = vmatprep.subr.bf16.mxu0 %v818_v39  ;;  %v770_v16 = vpop.permute.xlu0 %769 }
 0x500   : > { %v773_v62 = vsel %vm349_vm5, %v768_v41, %v764_v30  ;;  %v774_v0 = vsel %vm349_vm5, %v770_v16, %v766_v31  ;;  %v771_v22 = vsel %vm349_vm5, %v764_v30, %v768_v41  ;;  %v772_v23 = vsel %vm349_vm5, %v766_v31, %v770_v16 }
 0x501   : > { %v776_v25 = vmul.f32 %v773_v62, %v2539_v3  ;;  %v778_v19 = vmul.f32 %v774_v0, %v2539_v3  ;;  %v775_v26 = vmul.f32 %v771_v22, %v2536_v63  ;;  %v777_v27 = vmul.f32 %v772_v23, %v2536_v63 }
 0x502   : > { %859 = vmatpush1.bf16.msra.mxu0 %v817_v9 }
 0x503   : > { %v780_v61 = vpop.permute.xlu1 %779  ;;  %860 = vmatprep.subr.bf16.mxu0 %v820_v60  ;;  %v782_v50 = vpop.permute.xlu0 %781  ;;  %v824_v39 = vpack.c.bf16 %v778_v19, %v776_v25  ;;  %v823_v16 = vpack.c.bf16 %v777_v27, %v775_v26 }
 0x506   : > { %861 = vmatpush1.bf16.msra.mxu0 %v819_v24  ;;  %v2252_v24 = vld [vmem:[%s3759_s3] ss:$8 sps:$4 sm:$0xff]  }
 0x507   : > { %v784_v28 = vpop.permute.xlu1 %783  ;;  %v786_v29 = vpop.permute.xlu0 %785  ;;  %862 = vmatprep.subr.bf16.mxu0 %v822_v11 }
 0x508   : > { %v787_v1 = vsel %vm366_vm6, %v780_v61, %v784_v28  ;;  %v789_v10 = vsel %vm366_vm6, %v784_v28, %v780_v61  ;;  %v788_v30 = vsel %vm366_vm6, %v782_v50, %v786_v29  ;;  %v790_v31 = vsel %vm366_vm6, %v786_v29, %v782_v50 }
 0x509   : > { %v792_v32 = vmul.f32 %v789_v10, %v2545_v7  ;;  %v794_v38 = vmul.f32 %v790_v31, %v2545_v7  ;;  %v791_v17 = vmul.f32 %v787_v1, %v2542_v4  ;;  %v793_v18 = vmul.f32 %v788_v30, %v2542_v4 }
 0x50a   : > { %863 = vmatpush1.bf16.msra.mxu0 %v821_v8 }
 0x50b   : > { %v796_v40 = vpop.permute.xlu1 %795  ;;  %v798_v41 = vpop.permute.xlu0 %797  ;;  %864 = vmatprep.subr.bf16.mxu0 %v824_v39  ;;  %v826_v9 = vpack.c.bf16 %v794_v38, %v792_v32  ;;  %v825_v42 = vpack.c.bf16 %v793_v18, %v791_v17 }
 0x50e   : > { %865 = vmatpush1.bf16.msra.mxu0 %v823_v16 }
 0x50f   : > { %v800_v54 = vpop.permute.xlu1 %799  ;;  %v802_v57 = vpop.permute.xlu0 %801  ;;  %866 = vmatprep.subr.bf16.mxu0 %v826_v9 }
 0x510   : > { %v803_v58 = vsel %vm383_vm7, %v796_v40, %v800_v54  ;;  %v805_v60 = vsel %vm383_vm7, %v800_v54, %v796_v40  ;;  %v804_v62 = vsel %vm383_vm7, %v798_v41, %v802_v57  ;;  %v806_v0 = vsel %vm383_vm7, %v802_v57, %v798_v41 }
 0x511   : > { %v807_v59 = vmul.f32 %v2568_v21, %v803_v58  ;;  %v808_v48 = vmul.f32 %v2563_v20, %v805_v60  ;;  %v809_v61 = vmul.f32 %v2568_v21, %v804_v62  ;;  %v810_v50 = vmul.f32 %v2563_v20, %v806_v0 }
 0x512   : > { %867 = vmatpush1.bf16.msra.mxu0 %v825_v42 }
 0x513   : > { %v827_v22 = vpack.c.bf16 %v809_v61, %v807_v59  ;;  %v828_v23 = vpack.c.bf16 %v810_v50, %v808_v48  ;;  %v1269_v11 = vpop.permute.xlu0 %1268 }
 0x515   : > { %868 = vmatprep.subr.bf16.mxu0 %v828_v23 }
 0x516   : > { %869 = vmatpush1.bf16.msra.mxu0 %v827_v22 }
 0x517   : > { %v1277_v1 = vpop.permute.xlu0 %1276 }
 0x519   : > { %885 = vmatmul.mubr.bf16.vlgmr.msra.gmra.mrb[4].mxu0 %v2252_v24 }
 0x51a   : > { %1380 = vmatprep.mubr.bf16.mxu0 %v2348_v2 }
 0x51b   : > { %v1285_v17 = vpop.permute.xlu0 %1284 }
 0x51f   : > { %v1293_v54 = vpop.permute.xlu0 %1292 }
 0x520   : > { %v2904_v25 = vpop.permute.xlu1 %831 }
 0x524   : > { %v1271_v19 = vpop.permute.xlu1 %1270 }
 0x525   : > { %v1272_v8 = vsel %vm264_vm1, %v1269_v11, %v1271_v19  ;;  %v1273_v26 = vsel %vm264_vm1, %v1271_v19, %v1269_v11 }
 0x526   : > { %v1274_v27 = vmul.f32 %v1273_v26, %v2470_v14  ;;  %v1275_v28 = vmul.f32 %v1272_v8, %v2463_v12 }
 0x528   : > { %v1279_v29 = vpop.permute.xlu1 %1278 }
 0x529   : > { %v1280_v10 = vsel %vm281_vm0, %v1277_v1, %v1279_v29  ;;  %v1281_v30 = vsel %vm281_vm0, %v1279_v29, %v1277_v1 }
 0x52a   : > { %v1282_v31 = vmul.f32 %v1281_v30, %v2473_v15  ;;  %v1283_v32 = vmul.f32 %v1280_v10, %v2466_v13 }
 0x52c   : > { %v1332_v38 = vpack.c.bf16 %v1282_v31, %v1274_v27  ;;  %v1287_v39 = vpop.permute.xlu1 %1286  ;;  %v1333_v18 = vpack.c.bf16 %v1283_v32, %v1275_v28 }
 0x52d   : > { %v1288_v40 = vsel %vm298_vm2, %v1285_v17, %v1287_v39  ;;  %v1289_v41 = vsel %vm298_vm2, %v1287_v39, %v1285_v17 }
 0x52e   : > { %1348 = vmatprep.subr.bf16.mxu0 %v1333_v18  ;;  %v1290_v16 = vmul.f32 %v1289_v41, %v2493_v33  ;;  %v1291_v9 = vmul.f32 %v1288_v40, %v2496_v34 }
 0x52f   : > { %1349 = vmatpush1.bf16.msra.mxu0 %v1332_v38 }
 0x530   : > { %v1295_v42 = vpop.permute.xlu1 %1294 }
 0x531   : > { %v1296_v57 = vsel %vm315_vm3, %v1293_v54, %v1295_v42  ;;  %v1297_v58 = vsel %vm315_vm3, %v1295_v42, %v1293_v54 }
 0x532   : > { %v1298_v60 = vmul.f32 %v1297_v58, %v2499_v35  ;;  %v1299_v62 = vmul.f32 %v1296_v57, %v2502_v36 }
 0x534   : > { %v1334_v0 = vpack.c.bf16 %v1298_v60, %v1290_v16  ;;  %v1335_v59 = vpack.c.bf16 %v1299_v62, %v1291_v9  ;;  %v1303_v27 = vpop.permute.xlu1 %1302 }
 0x536   : > { %1350 = vmatprep.subr.bf16.mxu0 %v1335_v59 }
 0x537   : > { %1351 = vmatpush1.bf16.msra.mxu0 %v1334_v0 }
 0x538   : > { %v1311_v28 = vpop.permute.xlu1 %1310 }
 0x5ec   : > { %v886_v48 = vpop.f32.mrb[4].mxu0 }
 0x5ed   : > { %v2931_v61 = vadd.f32 %v886_v48, %v2904_v25  ;;  %v888_v50 = vpop.f32.mrb[5].mxu0 }
 0x5ee   : > { %v2934_v22 = vadd.f32 %v888_v50, %v2904_v25  ;;  %v2936_v23 = vpop.f32.mrb[6].mxu0 }
 0x5ef   : > { %v2938_v24 = vpop.f32.mrb[7].mxu0  ;;  %v899_v19 = vmul.f32 %v2931_v61, %v2931_v61 }
 0x5f0   : > { %v895_v11 = vadd.f32 %v2934_v22, %v2931_v61  ;;  %v900_v8 = vmul.f32 %v2934_v22, %v2934_v22 }
 0x5f2   : > { %896 = vadd.xlane.f32.xlu0 %v895_v11  ;;  %v901_v26 = vadd.f32 %v900_v8, %v899_v19 }
 0x5f4   : > { %902 = vadd.xlane.f32.xlu1 %v901_v26 }
 0x605   : > { %1318 = vrot.lane.b32.xlu1 %v2780_v56, %s2349_s6 }
 0x608   : > { %1300 = vrot.lane.b32.xlu0 %v2775_v55, %s2346_s29 }
 0x609   : > { %1326 = vrot.lane.b32.xlu1 %v2780_v56, %s2350_s7 }
 0x60c   : > { %1308 = vrot.lane.b32.xlu0 %v2775_v55, %s2347_s30 }
 0x610   : > { %1316 = vrot.lane.b32.xlu0 %v2775_v55, %s2349_s6 }
 0x614   : > { %1324 = vrot.lane.b32.xlu0 %v2775_v55, %s2350_s7 }
 0x67f   : > { %v897_v29 = vpop.xlane.xlu0 %896 }
 0x680   : > { %v898_v1 = vmul.f32 0.00390625, %v897_v29 }
 0x681   : > { %v903_v10 = vpop.xlane.xlu1 %902 }
 0x682   : > { %v904_v30 = vmul.f32 0.00390625, %v903_v10  ;;  %v905_v31 = vmul.f32 %v898_v1, %v898_v1 }
 0x683   : > { %v1301_v32 = vpop.permute.xlu0 %1300 }
 0x684   : > { %v906_v38 = vsub.f32 %v904_v30, %v905_v31  ;;  %v1304_v39 = vsel %vm332_vm4, %v1301_v32, %v1303_v27  ;;  %v1305_v17 = vsel %vm332_vm4, %v1303_v27, %v1301_v32  ;;  %v908_v30 = vsub.f32 %v2931_v61, %v898_v1 }
 0x685   : > { %v1306_v18 = vmul.f32 %v1304_v39, %v2514_v43  ;;  %v1307_v40 = vmul.f32 %v1305_v17, %v2517_v44  ;;  %v1319_v54 = vpop.permute.xlu1 %1318  ;;  %v909_v31 = vsub.f32 %v2934_v22, %v898_v1 }
 0x686   : > { %v907_v41 = vmax.f32 %v906_v38, 0.0 }
 0x687   : > { %v1336_v16 = vpack.c.bf16 %v1306_v18, %v2775_v55  ;;  %v1309_v9 = vpop.permute.xlu0 %1308  ;;  %v1337_v42 = vpack.c.bf16 %v1307_v40, %v2780_v56 }
 0x688   : > { %v910_v57 = vadd.f32 1e-05, %v907_v41  ;;  %v1312_v58 = vsel %vm349_vm5, %v1309_v9, %v1311_v28  ;;  %v1313_v60 = vsel %vm349_vm5, %v1311_v28, %v1309_v9 }
 0x689   : > { %1352 = vmatprep.subr.bf16.mxu0 %v1337_v42  ;;  %v1314_v56 = vmul.f32 %v1312_v58, %v2536_v63  ;;  %v1315_v59 = vmul.f32 %v1313_v60, %v2539_v3  ;;  %v1327_v19 = vpop.permute.xlu1 %1326 }
 0x68a   : > { %2269 = vrsqrt.f32 %v910_v57  ;;  %1353 = vmatpush1.bf16.msra.mxu0 %v1336_v16 }
 0x68b   : > { %v1317_v62 = vpop.permute.xlu0 %1316 }
 0x68c   : > { %v1320_v0 = vsel %vm366_vm6, %v1317_v62, %v1319_v54  ;;  %v1321_v55 = vsel %vm366_vm6, %v1319_v54, %v1317_v62 }
 0x68d   : > { %v1322_v48 = vmul.f32 %v1320_v0, %v2542_v4  ;;  %v1323_v50 = vmul.f32 %v1321_v55, %v2545_v7 }
 0x68f   : > { %v1338_v11 = vpack.c.bf16 %v1322_v48, %v1314_v56  ;;  %v1325_v8 = vpop.permute.xlu0 %1324  ;;  %v1339_v26 = vpack.c.bf16 %v1323_v50, %v1315_v59 }
 0x690   : > { %v1328_v27 = vsel %vm383_vm7, %v1325_v8, %v1327_v19  ;;  %v1329_v28 = vsel %vm383_vm7, %v1327_v19, %v1325_v8 }
 0x691   : > { %v1330_v29 = vmul.f32 %v2568_v21, %v1328_v27  ;;  %v1331_v10 = vmul.f32 %v2563_v20, %v1329_v28  ;;  %1354 = vmatprep.subr.bf16.mxu0 %v1339_v26  ;;  %v252_v20 = vld [vmem:[%s3760_s4 + $0x20] sm:$0xff] }
 0x692   : > { %1355 = vmatpush1.bf16.msra.mxu0 %v1338_v11 }
 0x693   : > { %v1340_v32 = vpack.c.bf16 %v1330_v29, %v1330_v29  ;;  %v1341_v38 = vpack.c.bf16 %v1331_v10, %v1331_v10 }
 0x694   : > { %v2270_v39 = vpop.eup %2269 }
 0x695   : > { %v912_v17 = vmul.f32 %v2270_v39, %v908_v30  ;;  %v913_v18 = vmul.f32 %v2270_v39, %v909_v31  ;;  %2208 = vmatprep.subr.msk.bf16.mxu0 %vm415_vm8, %v1341_v38  ;;  %v1343_v40 = vsel %vm415_vm8, %v1340_v32, 0 }
 0x696   : > { %1357 = vmatpush1.bf16.msra.mxu0 %v1343_v40 }
 0x697   : > { %v2988_v41 = vmax.f32 %v912_v17, 0.0  ;;  %v2990_v21 = vmax.f32 %v913_v18, 0.0 }
 0x699   : > { %930 = vrot.lane.b32.xlu1 %v2990_v21, %s2343_s26  ;;  %928 = vrot.lane.b32.xlu0 %v2988_v41, %s2343_s26 }
 0x69a   : > { %2209 = vmatmul.mubr.msk.bf16.vlgmr.msra.gmra.mrb[8].mxu0 %vm411_vm9, %v2581_v37 }
 0x69b   : > { %2214 = vmatprep.mubr.msk.bf16.mxu0 %vm848_vm10, %v2759_v52 }
 0x69d   : > { %938 = vrot.lane.b32.xlu1 %v2990_v21, %s2342_s25  ;;  %936 = vrot.lane.b32.xlu0 %v2988_v41, %s2342_s25 }
 0x6a1   : > { %946 = vrot.lane.b32.xlu1 %v2990_v21, %s2344_s27  ;;  %944 = vrot.lane.b32.xlu0 %v2988_v41, %s2344_s27 }
 0x6a5   : > { %954 = vrot.lane.b32.xlu1 %v2990_v21, %s2345_s28  ;;  %952 = vrot.lane.b32.xlu0 %v2988_v41, %s2345_s28 }
 0x6a9   : > { %962 = vrot.lane.b32.xlu1 %v2990_v21, %s2346_s29  ;;  %960 = vrot.lane.b32.xlu0 %v2988_v41, %s2346_s29 }
 0x6ad   : > { %970 = vrot.lane.b32.xlu1 %v2990_v21, %s2347_s30  ;;  %968 = vrot.lane.b32.xlu0 %v2988_v41, %s2347_s30 }
 0x6b1   : > { %978 = vrot.lane.b32.xlu1 %v2990_v21, %s2349_s6  ;;  %976 = vrot.lane.b32.xlu0 %v2988_v41, %s2349_s6 }
 0x6b5   : > { %986 = vrot.lane.b32.xlu1 %v2990_v21, %s2350_s7  ;;  %984 = vrot.lane.b32.xlu0 %v2988_v41, %s2350_s7 }
 0x6b9   : > { %1004 = vperm.xlu0 %2246, %v252_v20  }
 0x70b   : > { %v931_v37 = vpop.permute.xlu1 %930  ;;  %v929_v52 = vpop.permute.xlu0 %928 }
 0x70c   : > { %v932_v61 = vsel %vm264_vm1, %v929_v52, %v931_v37  ;;  %v933_v22 = vsel %vm264_vm1, %v931_v37, %v929_v52 }
 0x70d   : > { %v934_v54 = vmul.f32 %v933_v22, %v2470_v14  ;;  %v935_v57 = vmul.f32 %v932_v61, %v2463_v12 }
 0x70f   : > { %v939_v1 = vpop.permute.xlu1 %938  ;;  %v937_v16 = vpop.permute.xlu0 %936 }
 0x710   : > { %v940_v9 = vsel %vm281_vm0, %v937_v16, %v939_v1  ;;  %v941_v42 = vsel %vm281_vm0, %v939_v1, %v937_v16 }
 0x711   : > { %v942_v58 = vmul.f32 %v941_v42, %v2473_v15  ;;  %v943_v60 = vmul.f32 %v940_v9, %v2466_v13 }
 0x713   : > { %v992_v62 = vpack.c.bf16 %v942_v58, %v934_v54  ;;  %v947_v0 = vpop.permute.xlu1 %946  ;;  %v945_v55 = vpop.permute.xlu0 %944  ;;  %v993_v56 = vpack.c.bf16 %v943_v60, %v935_v57 }
 0x714   : > { %v948_v59 = vsel %vm298_vm2, %v945_v55, %v947_v0  ;;  %v949_v48 = vsel %vm298_vm2, %v947_v0, %v945_v55 }
 0x715   : > { %1025 = vmatprep.subr.bf16.mxu1 %v993_v56  ;;  %v950_v26 = vmul.f32 %v949_v48, %v2493_v33  ;;  %v951_v27 = vmul.f32 %v948_v59, %v2496_v34  ;;  %v3082_v59 = vld [vmem:[%s3757_s1 + $0x10] ss:$0 sm:$0xff] }
 0x716   : > { %1026 = vmatpush1.bf16.msra.mxu1 %v992_v62 }
 0x717   : > { %v955_v50 = vpop.permute.xlu1 %954  ;;  %v953_v19 = vpop.permute.xlu0 %952 }
 0x718   : > { %v956_v11 = vsel %vm315_vm3, %v953_v19, %v955_v50  ;;  %v957_v8 = vsel %vm315_vm3, %v955_v50, %v953_v19  ;;  %v3088_v50 = vld [vmem:[%s3757_s1 + $0x18] ss:$0 sm:$0xff] }
 0x719   : > { %v958_v28 = vmul.f32 %v957_v8, %v2499_v35  ;;  %v959_v29 = vmul.f32 %v956_v11, %v2502_v36 }
 0x71b   : > { %v994_v10 = vpack.c.bf16 %v958_v28, %v950_v26  ;;  %v963_v30 = vpop.permute.xlu1 %962  ;;  %v961_v31 = vpop.permute.xlu0 %960  ;;  %v995_v32 = vpack.c.bf16 %v959_v29, %v951_v27  ;;  %v2253_v27 = vld [vmem:[%s3758_s2 + $0x10] sm:$0xff]  }
 0x71c   : > { %v964_v38 = vsel %vm332_vm4, %v961_v31, %v963_v30  ;;  %v965_v39 = vsel %vm332_vm4, %v963_v30, %v961_v31 }
 0x71d   : > { %v966_v17 = vmul.f32 %v964_v38, %v2514_v43  ;;  %v967_v18 = vmul.f32 %v965_v39, %v2517_v44  ;;  %1027 = vmatprep.subr.bf16.mxu1 %v995_v32 }
 0x71e   : > { %1028 = vmatpush1.bf16.msra.mxu1 %v994_v10 }
 0x71f   : > { %v996_v40 = vpack.c.bf16 %v966_v17, %v2988_v41  ;;  %v971_v20 = vpop.permute.xlu1 %970  ;;  %v969_v37 = vpop.permute.xlu0 %968  ;;  %v997_v52 = vpack.c.bf16 %v967_v18, %v2990_v21 }
 0x720   : > { %v972_v61 = vsel %vm349_vm5, %v969_v37, %v971_v20  ;;  %v973_v22 = vsel %vm349_vm5, %v971_v20, %v969_v37 }
 0x721   : > { %1029 = vmatprep.subr.bf16.mxu1 %v997_v52  ;;  %v974_v42 = vmul.f32 %v972_v61, %v2536_v63  ;;  %v975_v21 = vmul.f32 %v973_v22, %v2539_v3 }
 0x722   : > { %1030 = vmatpush1.bf16.msra.mxu1 %v996_v40 }
 0x723   : > { %v979_v1 = vpop.permute.xlu1 %978  ;;  %v977_v16 = vpop.permute.xlu0 %976 }
 0x724   : > { %v980_v9 = vsel %vm366_vm6, %v977_v16, %v979_v1  ;;  %v981_v41 = vsel %vm366_vm6, %v979_v1, %v977_v16 }
 0x725   : > { %v982_v54 = vmul.f32 %v980_v9, %v2542_v4  ;;  %v983_v57 = vmul.f32 %v981_v41, %v2545_v7 }
 0x727   : > { %v998_v58 = vpack.c.bf16 %v982_v54, %v974_v42  ;;  %v987_v60 = vpop.permute.xlu1 %986  ;;  %v985_v62 = vpop.permute.xlu0 %984  ;;  %v999_v0 = vpack.c.bf16 %v983_v57, %v975_v21 }
 0x728   : > { %v988_v55 = vsel %vm383_vm7, %v985_v62, %v987_v60  ;;  %v989_v56 = vsel %vm383_vm7, %v987_v60, %v985_v62 }
 0x729   : > { %v990_v48 = vmul.f32 %v3082_v59, %v988_v55  ;;  %v991_v19 = vmul.f32 %v3088_v50, %v989_v56  ;;  %1031 = vmatprep.subr.bf16.mxu1 %v999_v0 }
 0x72a   : > { %1032 = vmatpush1.bf16.msra.mxu1 %v998_v58 }
 0x72b   : > { %v1000_v11 = vpack.c.bf16 %v990_v48, %v990_v48  ;;  %v1001_v8 = vpack.c.bf16 %v991_v19, %v991_v19 }
 0x72d   : > { %2199 = vmatprep.subr.msk.bf16.mxu1 %vm415_vm8, %v1001_v8  ;;  %v1020_v26 = vsel %vm415_vm8, %v1000_v11, 0 }
 0x72e   : > { %1034 = vmatpush1.bf16.msra.mxu1 %v1020_v26 }
 0x731   : > { %2200 = vmatmul.mubr.msk.bf16.vlgmr.msra.gmra.mrb[4].mxu1 %vm411_vm9, %v2253_v27 }
 0x732   : > { %1231 = vmatprep.mubr.bf16.mxu1 %v2348_v2 }
 0x738   : > { %v3103_v9 = vpop.permute.xlu0 %1004 }
 0x76d   : > { %v1382_v28 = vpop.f32.mrb[8].mxu0 }
 0x76e   : > { %v1384_v29 = vpop.f32.mrb[9].mxu0 }
 0x76f   : > { %v1386_v10 = vpop.f32.mrb[10].mxu0 }
 0x770   : > { %v2210_v30 = vmul.f32 -1.442695, %v1386_v10  ;;  %v1388_v31 = vpop.f32.mrb[11].mxu0 }
 0x771   : > { %v2211_v32 = vmul.f32 -1.442695, %v1388_v31 }
 0x772   : > { %2271 = vpow2.f32 %v2210_v30 }
 0x773   : > { %2273 = vpow2.f32 %v2211_v32 }
 0x77c   : > { %v2272_v38 = vpop.eup %2271 }
 0x77d   : > { %v2274_v39 = vpop.eup %2273  ;;  %v1397_v17 = vadd.f32 1.0, %v2272_v38 }
 0x77e   : > { %v1398_v18 = vadd.f32 1.0, %v2274_v39 }
 0x77f   : > { %2275 = vrcp.f32 %v1397_v17 }
 0x780   : > { %2277 = vrcp.f32 %v1398_v18 }
 0x789   : > { %v2276_v40 = vpop.eup %2275 }
 0x78a   : > { %v2278_v20 = vpop.eup %2277  ;;  %v3098_v37 = vmul.f32 %v2276_v40, %v1382_v28 }
 0x78b   : > { %v1404_v52 = vmul.f32 %v2278_v20, %v1384_v29 }
 0x78c   : > { %v1409_v61 = vmul.f32 %v3098_v37, %v3098_v37 }
 0x78d   : > { %v1405_v22 = vadd.f32 %v1404_v52, %v3098_v37  ;;  %v1410_v1 = vmul.f32 %v1404_v52, %v1404_v52 }
 0x78f   : > { %1406 = vadd.xlane.f32.xlu1 %v1405_v22  ;;  %v1411_v16 = vadd.f32 %v1410_v1, %v1409_v61 }
 0x791   : > { %1412 = vadd.xlane.f32.xlu0 %v1411_v16 }
 0x804   : > { %v1059_v41 = vpop.f32.mrb[4].mxu1 }
 0x805   : > { %v1060_v42 = vadd.f32 %v1059_v41, %v3103_v9  ;;  %v1061_v21 = vpop.f32.mrb[5].mxu1 }
 0x806   : > { %v1063_v54 = vpop.f32.mrb[6].mxu1  ;;  %v1062_v60 = vadd.f32 %v1061_v21, %v3103_v9 }
 0x807   : > { %v2201_v57 = vmul.f32 -1.442695, %v1060_v42  ;;  %v1064_v58 = vpop.f32.mrb[7].mxu1 }
 0x808   : > { %v2202_v62 = vmul.f32 -1.442695, %v1062_v60 }
 0x809   : > { %2279 = vpow2.f32 %v2201_v57 }
 0x80a   : > { %2281 = vpow2.f32 %v2202_v62 }
 0x813   : > { %v2280_v0 = vpop.eup %2279 }
 0x814   : > { %v1072_v55 = vadd.f32 1.0, %v2280_v0  ;;  %v2282_v11 = vpop.eup %2281 }
 0x815   : > { %v1073_v30 = vadd.f32 1.0, %v2282_v11 }
 0x816   : > { %2283 = vrcp.f32 %v1072_v55 }
 0x817   : > { %2285 = vrcp.f32 %v1073_v30 }
 0x81c   : > { %v1407_v56 = vpop.xlane.xlu1 %1406 }
 0x81d   : > { %v1408_v48 = vmul.f32 0.00390625, %v1407_v56 }
 0x81e   : > { %v1413_v19 = vpop.xlane.xlu0 %1412 }
 0x81f   : > { %v1415_v8 = vmul.f32 %v1408_v48, %v1408_v48  ;;  %v1414_v26 = vmul.f32 0.00390625, %v1413_v19  ;;  %v1419_v20 = vsub.f32 %v1404_v52, %v1408_v48  ;;  %v1418_v21 = vsub.f32 %v3098_v37, %v1408_v48 }
 0x820   : > { %v3107_v27 = vpop.eup %2283 }
 0x821   : > { %v1081_v28 = vrot.slane %v3107_v27, %v2446_v6  ;;  %v1088_v29 = vsub.f32 1.0, %v3107_v27  ;;  %v1416_v10 = vsub.f32 %v1414_v26, %v1415_v8  ;;  %v3123_v40 = vpop.eup %2285 }
 0x822   : > { %v1089_v61 = vsub.f32 1.0, %v3123_v40  ;;  %v1085_v52 = vrot.slane %v3123_v40, %v2446_v6 }
 0x823   : > { %v1093_v31 = vrot.slane %v1088_v29, %v2446_v6  ;;  %v1417_v32 = vmax.f32 %v1416_v10, 0.0  ;;  %v1086_v38 = vmul.f32 %v1081_v28, %v2692_v45 }
 0x824   : > { %v1097_v1 = vrot.slane %v1089_v61, %v2446_v6  ;;  %v1087_v41 = vmul.f32 %v1085_v52, %v2694_v46 }
 0x825   : > { %v1098_v39 = vmul.f32 %v1093_v31, %v2706_v51  ;;  %v1420_v17 = vadd.f32 1e-05, %v1417_v32 }
 0x826   : > { %v1099_v16 = vmul.f32 %v1097_v1, %v2700_v53 }
 0x827   : > { %v3115_v18 = vadd.f32 %v1098_v39, %v1086_v38  ;;  %2287 = vrsqrt.f32 %v1420_v17 }
 0x828   : > { %v3147_v42 = vadd.f32 %v1099_v16, %v1087_v41 }
 0x829   : > { %1110 = vrot.lane.b32.xlu1 %v3115_v18, %s2342_s25  ;;  %1102 = vrot.lane.b32.xlu0 %v3115_v18, %s2343_s26 }
 0x82d   : > { %1118 = vrot.lane.b32.xlu1 %v3115_v18, %s2344_s27 }
 0x831   : > { %v2288_v45 = vpop.eup %2287  ;;  %1126 = vrot.lane.b32.xlu1 %v3115_v18, %s2345_s28 }
 0x832   : > { %v1423_v51 = vmul.f32 %v2288_v45, %v1419_v20  ;;  %v1422_v54 = vmul.f32 %v2288_v45, %v1418_v21 }
 0x834   : > { %v3128_v22 = vmax.f32 %v1423_v51, 0.0  ;;  %v3158_v46 = vmax.f32 %v1422_v54, 0.0 }
 0x835   : > { %1134 = vrot.lane.b32.xlu1 %v3115_v18, %s2346_s29 }
 0x836   : > { %1428 = vrot.lane.b32.xlu0 %v3128_v22, %s2343_s26 }
 0x839   : > { %1142 = vrot.lane.b32.xlu1 %v3115_v18, %s2347_s30 }
 0x83a   : > { %1436 = vrot.lane.b32.xlu0 %v3128_v22, %s2342_s25 }
 0x83d   : > { %1150 = vrot.lane.b32.xlu1 %v3115_v18, %s2349_s6 }
 0x83e   : > { %1444 = vrot.lane.b32.xlu0 %v3128_v22, %s2344_s27 }
 0x841   : > { %1104 = vrot.lane.b32.xlu1 %v3147_v42, %s2343_s26 }
 0x842   : > { %1112 = vrot.lane.b32.xlu0 %v3147_v42, %s2342_s25 }
 0x845   : > { %1158 = vrot.lane.b32.xlu1 %v3115_v18, %s2350_s7 }
 0x846   : > { %1120 = vrot.lane.b32.xlu0 %v3147_v42, %s2344_s27 }
 0x849   : > { %1426 = vrot.lane.b32.xlu1 %v3158_v46, %s2343_s26 }
 0x84a   : > { %1128 = vrot.lane.b32.xlu0 %v3147_v42, %s2345_s28 }
 0x84d   : > { %1434 = vrot.lane.b32.xlu1 %v3158_v46, %s2342_s25 }
 0x84e   : > { %1136 = vrot.lane.b32.xlu0 %v3147_v42, %s2346_s29 }
 0x851   : > { %1442 = vrot.lane.b32.xlu1 %v3158_v46, %s2344_s27 }
 0x852   : > { %1144 = vrot.lane.b32.xlu0 %v3147_v42, %s2347_s30 }
 0x855   : > { %1450 = vrot.lane.b32.xlu1 %v3158_v46, %s2345_s28 }
 0x856   : > { %1152 = vrot.lane.b32.xlu0 %v3147_v42, %s2349_s6 }
 0x859   : > { %1458 = vrot.lane.b32.xlu1 %v3158_v46, %s2346_s29 }
 0x85a   : > { %1160 = vrot.lane.b32.xlu0 %v3147_v42, %s2350_s7 }
 0x85d   : > { %1466 = vrot.lane.b32.xlu1 %v3158_v46, %s2347_s30 }
 0x85e   : > { %1452 = vrot.lane.b32.xlu0 %v3128_v22, %s2345_s28 }
 0x861   : > { %1474 = vrot.lane.b32.xlu1 %v3158_v46, %s2349_s6 }
 0x862   : > { %1460 = vrot.lane.b32.xlu0 %v3128_v22, %s2346_s29 }
 0x865   : > { %1482 = vrot.lane.b32.xlu1 %v3158_v46, %s2350_s7 }
 0x866   : > { %1468 = vrot.lane.b32.xlu0 %v3128_v22, %s2347_s30 }
 0x86a   : > { %1476 = vrot.lane.b32.xlu0 %v3128_v22, %s2349_s6 }
 0x86e   : > { %1484 = vrot.lane.b32.xlu0 %v3128_v22, %s2350_s7 }
 0x89b   : > { %v1111_v53 = vpop.permute.xlu1 %1110  ;;  %v1103_v58 = vpop.permute.xlu0 %1102 }
 0x89f   : > { %v1119_v37 = vpop.permute.xlu1 %1118 }
 0x8a3   : > { %v1127_v57 = vpop.permute.xlu1 %1126 }
 0x8a7   : > { %v1135_v60 = vpop.permute.xlu1 %1134 }
 0x8a8   : > { %v3196_v62 = vpop.permute.xlu0 %1428 }
 0x8ab   : > { %v1143_v0 = vpop.permute.xlu1 %1142 }
 0x8ac   : > { %v3198_v55 = vpop.permute.xlu0 %1436 }
 0x8af   : > { %v1151_v56 = vpop.permute.xlu1 %1150 }
 0x8b0   : > { %v3200_v48 = vpop.permute.xlu0 %1444 }
 0x8b3   : > { %v1105_v19 = vpop.permute.xlu1 %1104 }
 0x8b4   : > { %v1106_v11 = vsel %vm264_vm1, %v1103_v58, %v1105_v19  ;;  %v1107_v8 = vsel %vm264_vm1, %v1105_v19, %v1103_v58  ;;  %v1113_v26 = vpop.permute.xlu0 %1112 }
 0x8b5   : > { %v1108_v28 = vmul.f32 %v1107_v8, %v2470_v14  ;;  %v1109_v29 = vmul.f32 %v1106_v11, %v2463_v12  ;;  %v1114_v10 = vsel %vm281_vm0, %v1111_v53, %v1113_v26  ;;  %v1115_v30 = vsel %vm281_vm0, %v1113_v26, %v1111_v53 }
 0x8b6   : > { %v1116_v31 = vmul.f32 %v1115_v30, %v2473_v15  ;;  %v1117_v32 = vmul.f32 %v1114_v10, %v2466_v13 }
 0x8b7   : > { %v1159_v38 = vpop.permute.xlu1 %1158 }
 0x8b8   : > { %v1166_v39 = vpack.c.bf16 %v1116_v31, %v1108_v28  ;;  %v1121_v17 = vpop.permute.xlu0 %1120  ;;  %v1167_v20 = vpack.c.bf16 %v1117_v32, %v1109_v29 }
 0x8b9   : > { %v1122_v45 = vsel %vm298_vm2, %v1119_v37, %v1121_v17  ;;  %v1123_v51 = vsel %vm298_vm2, %v1121_v17, %v1119_v37 }
 0x8ba   : > { %1199 = vmatprep.subr.bf16.mxu1 %v1167_v20  ;;  %v1124_v41 = vmul.f32 %v1123_v51, %v2493_v33  ;;  %v1125_v21 = vmul.f32 %v1122_v45, %v2496_v34 }
 0x8bb   : > { %1200 = vmatpush1.bf16.msra.mxu1 %v1166_v39  ;;  %v1427_v61 = vpop.permute.xlu1 %1426 }
 0x8bc   : > { %v1129_v1 = vpop.permute.xlu0 %1128 }
 0x8bd   : > { %v1130_v52 = vsel %vm315_vm3, %v1127_v57, %v1129_v1  ;;  %v1131_v16 = vsel %vm315_vm3, %v1129_v1, %v1127_v57 }
 0x8be   : > { %v1132_v54 = vmul.f32 %v1131_v16, %v2499_v35  ;;  %v1133_v53 = vmul.f32 %v1130_v52, %v2502_v36 }
 0x8bf   : > { %v1435_v58 = vpop.permute.xlu1 %1434 }
 0x8c0   : > { %v1168_v19 = vpack.c.bf16 %v1132_v54, %v1124_v41  ;;  %v1137_v37 = vpop.permute.xlu0 %1136  ;;  %v1169_v11 = vpack.c.bf16 %v1133_v53, %v1125_v21  ;;  %v1430_v21 = vsel %vm264_vm1, %v1427_v61, %v3196_v62  ;;  %v1439_v53 = vsel %vm281_vm0, %v3198_v55, %v1435_v58 }
 0x8c1   : > { %v1138_v8 = vsel %vm332_vm4, %v1135_v60, %v1137_v37  ;;  %v1139_v26 = vsel %vm332_vm4, %v1137_v37, %v1135_v60 }
 0x8c2   : > { %v1140_v57 = vmul.f32 %v1138_v8, %v2514_v43  ;;  %v1141_v28 = vmul.f32 %v1139_v26, %v2517_v44  ;;  %1201 = vmatprep.subr.bf16.mxu1 %v1169_v11  ;;  %v1431_v26 = vsel %vm264_vm1, %v3196_v62, %v1427_v61 }
 0x8c3   : > { %1202 = vmatpush1.bf16.msra.mxu1 %v1168_v19  ;;  %v1443_v29 = vpop.permute.xlu1 %1442 }
 0x8c4   : > { %v1170_v10 = vpack.c.bf16 %v1140_v57, %v3115_v18  ;;  %v1145_v30 = vpop.permute.xlu0 %1144  ;;  %v1171_v31 = vpack.c.bf16 %v1141_v28, %v3147_v42  ;;  %v1433_v57 = vmul.f32 %v1430_v21, %v2463_v12 }
 0x8c5   : > { %v1146_v32 = vsel %vm349_vm5, %v1143_v0, %v1145_v30  ;;  %v1147_v39 = vsel %vm349_vm5, %v1145_v30, %v1143_v0  ;;  %v1438_v0 = vsel %vm281_vm0, %v1435_v58, %v3198_v55  ;;  %v1440_v55 = vmul.f32 %v1439_v53, %v2473_v15 }
 0x8c6   : > { %1203 = vmatprep.subr.bf16.mxu1 %v1171_v31  ;;  %v1148_v18 = vmul.f32 %v1146_v32, %v2536_v63  ;;  %v1149_v42 = vmul.f32 %v1147_v39, %v2539_v3  ;;  %v1441_v19 = vmul.f32 %v1438_v0, %v2466_v13  ;;  %v1446_v58 = vsel %vm298_vm2, %v1443_v29, %v3200_v48  ;;  %v3280_v39 = vld [vmem:[%s3758_s2 + $0x18] sm:$0xff]  }
 0x8c7   : > { %1204 = vmatpush1.bf16.msra.mxu1 %v1170_v10  ;;  %v1451_v60 = vpop.permute.xlu1 %1450 }
 0x8c8   : > { %v1153_v17 = vpop.permute.xlu0 %1152  ;;  %v1491_v61 = vpack.c.bf16 %v1441_v19, %v1433_v57 }
 0x8c9   : > { %v1154_v20 = vsel %vm366_vm6, %v1151_v56, %v1153_v17  ;;  %v1155_v45 = vsel %vm366_vm6, %v1153_v17, %v1151_v56  ;;  %v1432_v17 = vmul.f32 %v1431_v26, %v2470_v14 }
 0x8ca   : > { %v1156_v51 = vmul.f32 %v1154_v20, %v2542_v4  ;;  %v1157_v1 = vmul.f32 %v1155_v45, %v2545_v7  ;;  %v1447_v20 = vsel %vm298_vm2, %v3200_v48, %v1443_v29 }
 0x8cb   : > { %v1459_v37 = vpop.permute.xlu1 %1458  ;;  %v1448_v29 = vmul.f32 %v1447_v20, %v2493_v33 }
 0x8cc   : > { %v1172_v52 = vpack.c.bf16 %v1156_v51, %v1148_v18  ;;  %v1161_v16 = vpop.permute.xlu0 %1160  ;;  %v1173_v41 = vpack.c.bf16 %v1157_v1, %v1149_v42  ;;  %v1490_v42 = vpack.c.bf16 %v1440_v55, %v1432_v17 }
 0x8cd   : > { %v1162_v56 = vsel %vm383_vm7, %v1159_v38, %v1161_v16  ;;  %v1163_v54 = vsel %vm383_vm7, %v1161_v16, %v1159_v38 }
 0x8ce   : > { %v1164_v11 = vmul.f32 %v3082_v59, %v1162_v56  ;;  %v1165_v8 = vmul.f32 %v3088_v50, %v1163_v54  ;;  %1205 = vmatprep.subr.bf16.mxu1 %v1173_v41 }
 0x8cf   : > { %1206 = vmatpush1.bf16.msra.mxu1 %v1172_v52  ;;  %v1467_v45 = vpop.permute.xlu1 %1466 }
 0x8d0   : > { %v1174_v38 = vpack.c.bf16 %v1164_v11, %v1164_v11  ;;  %v1175_v28 = vpack.c.bf16 %v1165_v8, %v1165_v8  ;;  %v1453_v10 = vpop.permute.xlu0 %1452 }
 0x8d1   : > { %v1454_v30 = vsel %vm315_vm3, %v1451_v60, %v1453_v10  ;;  %v1455_v31 = vsel %vm315_vm3, %v1453_v10, %v1451_v60  ;;  %v1449_v60 = vmul.f32 %v1446_v58, %v2496_v34 }
 0x8d2   : > { %v1457_v32 = vmul.f32 %v1454_v30, %v2502_v36  ;;  %2204 = vmatprep.subr.msk.bf16.mxu1 %vm415_vm8, %v1175_v28  ;;  %v1194_v62 = vsel %vm415_vm8, %v1174_v38, 0  ;;  %v1456_v51 = vmul.f32 %v1455_v31, %v2499_v35 }
 0x8d3   : > { %1208 = vmatpush1.bf16.msra.mxu1 %v1194_v62  ;;  %v1475_v56 = vpop.permute.xlu1 %1474 }
 0x8d4   : > { %1506 = vmatprep.subr.bf16.mxu1 %v1491_v61  ;;  %v1461_v18 = vpop.permute.xlu0 %1460  ;;  %v1493_v48 = vpack.c.bf16 %v1457_v32, %v1449_v60  ;;  %v1492_v41 = vpack.c.bf16 %v1456_v51, %v1448_v29  ;;  %v2329_v60 = vld [vmem:[%s3758_s2 + $0x8] sm:$0xff]  }
 0x8d5   : > { %v1463_v1 = vsel %vm332_vm4, %v1461_v18, %v1459_v37  ;;  %v1462_v0 = vsel %vm332_vm4, %v1459_v37, %v1461_v18 }
 0x8d6   : > { %v1465_v52 = vmul.f32 %v1463_v1, %v2517_v44  ;;  %2205 = vmatmul.mubr.msk.bf16.vlgmr.msra.gmra.mrb[8].mxu1 %vm411_vm9, %v3280_v39  ;;  %v1464_v21 = vmul.f32 %v1462_v0, %v2514_v43 }
 0x8d7   : > { %1507 = vmatpush1.bf16.msra.mxu1 %v1490_v42  ;;  %1538 = vmatprep.mubr.bf16.mxu1 %v2348_v2  ;;  %v1483_v10 = vpop.permute.xlu1 %1482 }
 0x8d8   : > { %1508 = vmatprep.subr.bf16.mxu1 %v1493_v48  ;;  %v1469_v16 = vpop.permute.xlu0 %1468  ;;  %v1495_v54 = vpack.c.bf16 %v1465_v52, %v3128_v22  ;;  %v1494_v11 = vpack.c.bf16 %v1464_v21, %v3158_v46 }
 0x8d9   : > { %v1470_v53 = vsel %vm349_vm5, %v1467_v45, %v1469_v16  ;;  %v1471_v19 = vsel %vm349_vm5, %v1469_v16, %v1467_v45 }
 0x8da   : > { %v1472_v57 = vmul.f32 %v1470_v53, %v2536_v63  ;;  %v1473_v22 = vmul.f32 %v1471_v19, %v2539_v3 }
 0x8db   : > { %1509 = vmatpush1.bf16.msra.mxu1 %v1492_v41 }
 0x8dc   : > { %1510 = vmatprep.subr.bf16.mxu1 %v1495_v54  ;;  %v1477_v37 = vpop.permute.xlu0 %1476 }
 0x8dd   : > { %v1478_v8 = vsel %vm366_vm6, %v1475_v56, %v1477_v37  ;;  %v1479_v26 = vsel %vm366_vm6, %v1477_v37, %v1475_v56 }
 0x8de   : > { %v1480_v38 = vmul.f32 %v1478_v8, %v2542_v4  ;;  %v1481_v28 = vmul.f32 %v1479_v26, %v2545_v7 }
 0x8df   : > { %1511 = vmatpush1.bf16.msra.mxu1 %v1494_v11 }
 0x8e0   : > { %v1496_v55 = vpack.c.bf16 %v1480_v38, %v1472_v57  ;;  %v1485_v58 = vpop.permute.xlu0 %1484  ;;  %v1497_v30 = vpack.c.bf16 %v1481_v28, %v1473_v22 }
 0x8e1   : > { %v1486_v46 = vsel %vm383_vm7, %v1483_v10, %v1485_v58  ;;  %v1487_v31 = vsel %vm383_vm7, %v1485_v58, %v1483_v10 }
 0x8e2   : > { %v1488_v32 = vmul.f32 %v3082_v59, %v1486_v46  ;;  %v1489_v62 = vmul.f32 %v3088_v50, %v1487_v31  ;;  %1512 = vmatprep.subr.bf16.mxu1 %v1497_v30 }
 0x8e3   : > { %1513 = vmatpush1.bf16.msra.mxu1 %v1496_v55 }
 0x8e4   : > { %v1498_v61 = vpack.c.bf16 %v1488_v32, %v1488_v32  ;;  %v1499_v17 = vpack.c.bf16 %v1489_v62, %v1489_v62 }
 0x8e6   : > { %2212 = vmatprep.subr.msk.bf16.mxu1 %vm415_vm8, %v1499_v17  ;;  %v1501_v20 = vsel %vm415_vm8, %v1498_v61, 0 }
 0x8e7   : > { %1515 = vmatpush1.bf16.msra.mxu1 %v1501_v20 }
 0x8ea   : > { %2213 = vmatmul.mubr.msk.bf16.vlgmr.msra.gmra.mrb[12].mxu1 %vm411_vm9, %v2329_v60 }
 0x8eb   : > { %1925 = vmatprep.mubr.bf16.mxu1 %v2348_v2 }
 0x9a9   : > { %v3325_v45 = vpop.f32.mrb[8].mxu1 }
 0x9aa   : > { %v3327_v18 = vpop.f32.mrb[9].mxu1 }
 0x9ab   : > { %v1237_v42 = vpop.f32.mrb[10].mxu1 }
 0x9ac   : > { %v1238_v51 = vpop.f32.mrb[11].mxu1 }
 0x9bd   : > { %v1540_v1 = vpop.f32.mrb[12].mxu1 }
 0x9be   : > { %v1541_v0 = vadd.f32 %v1540_v1, %v2684_v47  ;;  %v1542_v52 = vpop.f32.mrb[13].mxu1 }
 0x9bf   : > { %v1543_v48 = vadd.f32 %v1542_v52, %v2684_v47  ;;  %v1544_v29 = vpop.f32.mrb[14].mxu1 }
 0x9c0   : > { %v1545_v16 = vadd.f32 %v1544_v29, %v2686_v49  ;;  %v1546_v41 = vpop.f32.mrb[15].mxu1  ;;  %v1557_v53 = vmul.f32 %v1541_v0, %v1541_v0 }
 0x9c1   : > { %v1547_v21 = vadd.f32 %v1546_v41, %v2686_v49  ;;  %v1549_v56 = vadd.f32 %v1543_v48, %v1541_v0  ;;  %v1558_v19 = vmul.f32 %v1543_v48, %v1543_v48 }
 0x9c2   : > { %v1559_v54 = vmul.f32 %v1545_v16, %v1545_v16 }
 0x9c3   : > { %v1560_v37 = vmul.f32 %v1547_v21, %v1547_v21  ;;  %1550 = vadd.xlane.f32.xlu1 %v1549_v56  ;;  %v1552_v11 = vadd.f32 %v1547_v21, %v1545_v16  ;;  %v1561_v26 = vadd.f32 %v1558_v19, %v1557_v53 }
 0x9c5   : > { %1553 = vadd.xlane.f32.xlu0 %v1552_v11  ;;  %v1564_v8 = vadd.f32 %v1560_v37, %v1559_v54 }
 0x9c7   : > { %1565 = vadd.xlane.f32.xlu1 %v1564_v8 }
 0x9c9   : > { %1562 = vadd.xlane.f32.xlu0 %v1561_v26 }
 0xa50   : > { %v1551_v57 = vpop.xlane.xlu1 %1550 }
 0xa51   : > { %v1555_v22 = vmul.f32 0.00390625, %v1551_v57 }
 0xa52   : > { %v1554_v47 = vpop.xlane.xlu0 %1553 }
 0xa53   : > { %v1556_v38 = vmul.f32 0.00390625, %v1554_v47  ;;  %v1569_v46 = vmul.f32 %v1555_v22, %v1555_v22  ;;  %v1575_v60 = vsub.f32 %v1541_v0, %v1555_v22  ;;  %v1576_v42 = vsub.f32 %v1543_v48, %v1555_v22 }
 0xa54   : > { %v1566_v28 = vpop.xlane.xlu1 %1565 }
 0xa55   : > { %v1570_v10 = vmul.f32 %v1556_v38, %v1556_v38  ;;  %v1568_v55 = vmul.f32 0.00390625, %v1566_v28  ;;  %v1578_v1 = vsub.f32 %v1547_v21, %v1556_v38  ;;  %v1577_v53 = vsub.f32 %v1545_v16, %v1556_v38 }
 0xa56   : > { %v1563_v49 = vpop.xlane.xlu0 %1562 }
 0xa57   : > { %v1572_v58 = vsub.f32 %v1568_v55, %v1570_v10  ;;  %v1567_v30 = vmul.f32 0.00390625, %v1563_v49 }
 0xa59   : > { %v1574_v31 = vmax.f32 %v1572_v58, 0.0  ;;  %v1571_v32 = vsub.f32 %v1567_v30, %v1569_v46 }
 0xa5b   : > { %v1580_v62 = vadd.f32 1e-05, %v1574_v31  ;;  %v1573_v61 = vmax.f32 %v1571_v32, 0.0 }
 0xa5d   : > { %v1579_v17 = vadd.f32 1e-05, %v1573_v61  ;;  %2289 = vrsqrt.f32 %v1580_v62 }
 0xa5f   : > { %2291 = vrsqrt.f32 %v1579_v17 }
 0xa67   : > { %v2290_v20 = vpop.eup %2289 }
 0xa68   : > { %v1586_v41 = vmul.f32 %v2290_v20, %v1578_v1  ;;  %v1585_v19 = vmul.f32 %v2290_v20, %v1577_v53 }
 0xa69   : > { %v2292_v51 = vpop.eup %2291 }
 0xa6a   : > { %v1583_v52 = vmul.f32 %v2292_v51, %v1575_v60  ;;  %v1584_v29 = vmul.f32 %v2292_v51, %v1576_v42  ;;  %v3341_v37 = vmax.f32 %v1586_v41, 0.0  ;;  %v3347_v0 = vmax.f32 %v1585_v19, 0.0 }
 0xa6c   : > { %v3333_v56 = vmax.f32 %v1583_v52, 0.0  ;;  %v3335_v54 = vmax.f32 %v1584_v29, 0.0 }
 0xa6e   : > { %1595 = vrot.lane.b32.xlu1 %v3335_v54, %s2343_s26  ;;  %1591 = vrot.lane.b32.xlu0 %v3333_v56, %s2343_s26 }
 0xa72   : > { %1607 = vrot.lane.b32.xlu1 %v3333_v56, %s2342_s25  ;;  %1597 = vrot.lane.b32.xlu0 %v3341_v37, %s2343_s26 }
 0xa76   : > { %1611 = vrot.lane.b32.xlu1 %v3335_v54, %s2342_s25  ;;  %1609 = vrot.lane.b32.xlu0 %v3347_v0, %s2342_s25 }
 0xa7a   : > { %1623 = vrot.lane.b32.xlu1 %v3333_v56, %s2344_s27  ;;  %1613 = vrot.lane.b32.xlu0 %v3341_v37, %s2342_s25 }
 0xa7e   : > { %1627 = vrot.lane.b32.xlu1 %v3335_v54, %s2344_s27  ;;  %1625 = vrot.lane.b32.xlu0 %v3347_v0, %s2344_s27 }
 0xa82   : > { %1639 = vrot.lane.b32.xlu1 %v3333_v56, %s2345_s28  ;;  %1629 = vrot.lane.b32.xlu0 %v3341_v37, %s2344_s27 }
 0xa86   : > { %1643 = vrot.lane.b32.xlu1 %v3335_v54, %s2345_s28  ;;  %1641 = vrot.lane.b32.xlu0 %v3347_v0, %s2345_s28 }
 0xa8a   : > { %1645 = vrot.lane.b32.xlu0 %v3341_v37, %s2345_s28  ;;  %1593 = vrot.lane.b32.xlu1 %v3347_v0, %s2343_s26 }
 0xa8e   : > { %1657 = vrot.lane.b32.xlu0 %v3347_v0, %s2346_s29  ;;  %1655 = vrot.lane.b32.xlu1 %v3333_v56, %s2346_s29 }
 0xa92   : > { %1661 = vrot.lane.b32.xlu0 %v3341_v37, %s2346_s29  ;;  %1659 = vrot.lane.b32.xlu1 %v3335_v54, %s2346_s29 }
 0xa96   : > { %1673 = vrot.lane.b32.xlu0 %v3347_v0, %s2347_s30  ;;  %1671 = vrot.lane.b32.xlu1 %v3333_v56, %s2347_s30 }
 0xa9a   : > { %1677 = vrot.lane.b32.xlu0 %v3341_v37, %s2347_s30  ;;  %1675 = vrot.lane.b32.xlu1 %v3335_v54, %s2347_s30 }
 0xa9e   : > { %1689 = vrot.lane.b32.xlu0 %v3347_v0, %s2349_s6  ;;  %1687 = vrot.lane.b32.xlu1 %v3333_v56, %s2349_s6 }
 0xaa2   : > { %1693 = vrot.lane.b32.xlu0 %v3341_v37, %s2349_s6  ;;  %1691 = vrot.lane.b32.xlu1 %v3335_v54, %s2349_s6 }
 0xaa6   : > { %1705 = vrot.lane.b32.xlu0 %v3347_v0, %s2350_s7  ;;  %1703 = vrot.lane.b32.xlu1 %v3333_v56, %s2350_s7 }
 0xaaa   : > { %1709 = vrot.lane.b32.xlu0 %v3341_v37, %s2350_s7  ;;  %1707 = vrot.lane.b32.xlu1 %v3335_v54, %s2350_s7 }
 0xae0   : > { %v1592_v48 = vpop.permute.xlu0 %1591  ;;  %v1596_v16 = vpop.permute.xlu1 %1595 }
 0xae1   : > { %v1601_v58 = vsel %vm264_vm1, %v1596_v16, %v1592_v48  ;;  %v1599_v30 = vsel %vm264_vm1, %v1592_v48, %v1596_v16 }
 0xae2   : > { %v1603_v31 = vmul.f32 %v1601_v58, %v2470_v14  ;;  %v1604_v61 = vmul.f32 %v1599_v30, %v2463_v12 }
 0xae4   : > { %v1598_v21 = vpop.permute.xlu0 %1597  ;;  %v1608_v11 = vpop.permute.xlu1 %1607 }
 0xae8   : > { %v1610_v8 = vpop.permute.xlu0 %1609  ;;  %v1612_v26 = vpop.permute.xlu1 %1611 }
 0xae9   : > { %v1615_v17 = vsel %vm281_vm0, %v1608_v11, %v1612_v26  ;;  %v1617_v41 = vsel %vm281_vm0, %v1612_v26, %v1608_v11 }
 0xaea   : > { %v1620_v53 = vmul.f32 %v1615_v17, %v2466_v13  ;;  %v1619_v11 = vmul.f32 %v1617_v41, %v2473_v15 }
 0xaec   : > { %v1614_v57 = vpop.permute.xlu0 %1613  ;;  %v1624_v47 = vpop.permute.xlu1 %1623 }
 0xaed   : > { %v1616_v46 = vsel %vm281_vm0, %v1610_v8, %v1614_v57  ;;  %v1618_v42 = vsel %vm281_vm0, %v1614_v57, %v1610_v8 }
 0xaee   : > { %v1622_v51 = vmul.f32 %v1616_v46, %v2466_v13  ;;  %v1621_v8 = vmul.f32 %v1618_v42, %v2473_v15 }
 0xaf0   : > { %v1626_v22 = vpop.permute.xlu0 %1625  ;;  %v1628_v38 = vpop.permute.xlu1 %1627  ;;  %v1722_v46 = vpack.c.bf16 %v1622_v51, %v1620_v53 }
 0xaf1   : > { %v1631_v57 = vsel %vm298_vm2, %v1624_v47, %v1628_v38 }
 0xaf4   : > { %v1630_v28 = vpop.permute.xlu0 %1629  ;;  %v1640_v10 = vpop.permute.xlu1 %1639 }
 0xaf5   : > { %v1632_v29 = vsel %vm298_vm2, %v1626_v22, %v1630_v28  ;;  %v1634_v58 = vsel %vm298_vm2, %v1630_v28, %v1626_v22 }
 0xaf6   : > { %v1638_v30 = vmul.f32 %v1632_v29, %v2496_v34  ;;  %v1637_v22 = vmul.f32 %v1634_v58, %v2493_v33 }
 0xaf8   : > { %v1642_v55 = vpop.permute.xlu0 %1641  ;;  %v1644_v49 = vpop.permute.xlu1 %1643 }
 0xaf9   : > { %v1647_v28 = vsel %vm315_vm3, %v1640_v10, %v1644_v49 }
 0xafc   : > { %v1646_v32 = vpop.permute.xlu0 %1645  ;;  %v1594_v62 = vpop.permute.xlu1 %1593 }
 0xafd   : > { %v1600_v20 = vsel %vm264_vm1, %v1594_v62, %v1598_v21  ;;  %v1602_v60 = vsel %vm264_vm1, %v1598_v21, %v1594_v62  ;;  %v1648_v26 = vsel %vm315_vm3, %v1642_v55, %v1646_v32  ;;  %v1636_v62 = vmul.f32 %v1631_v57, %v2496_v34 }
 0xafe   : > { %v1605_v1 = vmul.f32 %v1602_v60, %v2470_v14  ;;  %v1606_v52 = vmul.f32 %v1600_v20, %v2463_v12  ;;  %v1721_v20 = vpack.c.bf16 %v1621_v8, %v1619_v11  ;;  %v1650_v60 = vsel %vm315_vm3, %v1646_v32, %v1642_v55 }
 0xaff   : > { %v1654_v42 = vmul.f32 %v1648_v26, %v2502_v36  ;;  %v1724_v51 = vpack.c.bf16 %v1638_v30, %v1636_v62  ;;  %v1653_v53 = vmul.f32 %v1650_v60, %v2499_v35  ;;  %v1728_v11 = vpack.c.bf16 %v3341_v37, %v3335_v54 }
 0xb00   : > { %v1719_v19 = vpack.c.bf16 %v1605_v1, %v1603_v31  ;;  %v1658_v48 = vpop.permute.xlu0 %1657  ;;  %v1656_v16 = vpop.permute.xlu1 %1655  ;;  %v1720_v21 = vpack.c.bf16 %v1606_v52, %v1604_v61  ;;  %v1633_v31 = vsel %vm298_vm2, %v1628_v38, %v1624_v47  ;;  %v1649_v47 = vsel %vm315_vm3, %v1644_v49, %v1640_v10 }
 0xb01   : > { %v1635_v1 = vmul.f32 %v1633_v31, %v2493_v33  ;;  %v1652_v38 = vmul.f32 %v1647_v28, %v2502_v36  ;;  %v1651_v55 = vmul.f32 %v1649_v47, %v2499_v35 }
 0xb02   : > { %1737 = vmatprep.subr.bf16.mxu0 %v1720_v21 }
 0xb03   : > { %1738 = vmatpush1.bf16.msra.mxu0 %v1719_v19  ;;  %v1723_v41 = vpack.c.bf16 %v1637_v22, %v1635_v1  ;;  %v1726_v19 = vpack.c.bf16 %v1654_v42, %v1652_v38  ;;  %v1725_v49 = vpack.c.bf16 %v1653_v53, %v1651_v55  ;;  %v1727_v22 = vpack.c.bf16 %v3347_v0, %v3333_v56 }
 0xb04   : > { %v1662_v61 = vpop.permute.xlu0 %1661  ;;  %1739 = vmatprep.subr.bf16.mxu0 %v1722_v46  ;;  %v1660_v17 = vpop.permute.xlu1 %1659 }
 0xb05   : > { %v1666_v32 = vsel %vm332_vm4, %v1662_v61, %v1658_v48  ;;  %v1665_v21 = vsel %vm332_vm4, %v1660_v17, %v1656_v16  ;;  %v1664_v57 = vsel %vm332_vm4, %v1658_v48, %v1662_v61  ;;  %v1663_v58 = vsel %vm332_vm4, %v1656_v16, %v1660_v17 }
 0xb06   : > { %v1670_v30 = vmul.f32 %v1666_v32, %v2517_v44  ;;  %v1668_v46 = vmul.f32 %v1665_v21, %v2517_v44  ;;  %v1669_v62 = vmul.f32 %v1664_v57, %v2514_v43  ;;  %v1667_v48 = vmul.f32 %v1663_v58, %v2514_v43 }
 0xb07   : > { %1740 = vmatpush1.bf16.msra.mxu0 %v1721_v20 }
 0xb08   : > { %v1674_v52 = vpop.permute.xlu0 %1673  ;;  %1741 = vmatprep.subr.bf16.mxu0 %v1724_v51  ;;  %v1672_v29 = vpop.permute.xlu1 %1671  ;;  %v1730_v42 = vpack.c.bf16 %v1670_v30, %v1668_v46  ;;  %v1729_v51 = vpack.c.bf16 %v1669_v62, %v1667_v48 }
 0xb0b   : > { %1742 = vmatpush1.bf16.msra.mxu0 %v1723_v41 }
 0xb0c   : > { %v1678_v8 = vpop.permute.xlu0 %1677  ;;  %1743 = vmatprep.subr.bf16.mxu0 %v1726_v19  ;;  %v1676_v10 = vpop.permute.xlu1 %1675 }
 0xb0d   : > { %v1682_v26 = vsel %vm349_vm5, %v1678_v8, %v1674_v52  ;;  %v1681_v31 = vsel %vm349_vm5, %v1676_v10, %v1672_v29  ;;  %v1680_v17 = vsel %vm349_vm5, %v1674_v52, %v1678_v8  ;;  %v1679_v20 = vsel %vm349_vm5, %v1672_v29, %v1676_v10 }
 0xb0e   : > { %v1686_v28 = vmul.f32 %v1682_v26, %v2539_v3  ;;  %v1684_v60 = vmul.f32 %v1681_v31, %v2539_v3  ;;  %v1685_v1 = vmul.f32 %v1680_v17, %v2536_v63  ;;  %v1683_v47 = vmul.f32 %v1679_v20, %v2536_v63 }
 0xb0f   : > { %1744 = vmatpush1.bf16.msra.mxu0 %v1725_v49 }
 0xb10   : > { %v1690_v61 = vpop.permute.xlu0 %1689  ;;  %1745 = vmatprep.subr.bf16.mxu0 %v1728_v11  ;;  %v1688_v16 = vpop.permute.xlu1 %1687  ;;  %v1732_v21 = vpack.c.bf16 %v1686_v28, %v1684_v60  ;;  %v1731_v58 = vpack.c.bf16 %v1685_v1, %v1683_v47 }
 0xb13   : > { %1746 = vmatpush1.bf16.msra.mxu0 %v1727_v22 }
 0xb14   : > { %v1694_v38 = vpop.permute.xlu0 %1693  ;;  %1747 = vmatprep.subr.bf16.mxu0 %v1730_v42  ;;  %v1692_v52 = vpop.permute.xlu1 %1691  ;;  %v2330_v42 = vld [vmem:[%s3759_s3] ss:$8 sps:$4 sm:$0xff]  }
 0xb15   : > { %v1696_v29 = vsel %vm366_vm6, %v1690_v61, %v1694_v38  ;;  %v1698_v41 = vsel %vm366_vm6, %v1694_v38, %v1690_v61  ;;  %v1695_v53 = vsel %vm366_vm6, %v1688_v16, %v1692_v52  ;;  %v1697_v19 = vsel %vm366_vm6, %v1692_v52, %v1688_v16 }
 0xb16   : > { %v1702_v55 = vmul.f32 %v1698_v41, %v2545_v7  ;;  %v1700_v32 = vmul.f32 %v1697_v19, %v2545_v7  ;;  %v1701_v8 = vmul.f32 %v1696_v29, %v2542_v4  ;;  %v1699_v10 = vmul.f32 %v1695_v53, %v2542_v4 }
 0xb17   : > { %1748 = vmatpush1.bf16.msra.mxu0 %v1729_v51 }
 0xb18   : > { %v1706_v49 = vpop.permute.xlu0 %1705  ;;  %1749 = vmatprep.subr.bf16.mxu0 %v1732_v21  ;;  %v1704_v57 = vpop.permute.xlu1 %1703  ;;  %v1734_v30 = vpack.c.bf16 %v1702_v55, %v1700_v32  ;;  %v1733_v46 = vpack.c.bf16 %v1701_v8, %v1699_v10 }
 0xb1b   : > { %1750 = vmatpush1.bf16.msra.mxu0 %v1731_v58 }
 0xb1c   : > { %v1710_v11 = vpop.permute.xlu0 %1709  ;;  %1751 = vmatprep.subr.bf16.mxu0 %v1734_v30  ;;  %v1708_v26 = vpop.permute.xlu1 %1707 }
 0xb1d   : > { %v1712_v31 = vsel %vm383_vm7, %v1706_v49, %v1710_v11  ;;  %v1714_v62 = vsel %vm383_vm7, %v1710_v11, %v1706_v49  ;;  %v1711_v48 = vsel %vm383_vm7, %v1704_v57, %v1708_v26  ;;  %v1713_v61 = vsel %vm383_vm7, %v1708_v26, %v1704_v57 }
 0xb1e   : > { %v1717_v16 = vmul.f32 %v3082_v59, %v1712_v31  ;;  %v1718_v17 = vmul.f32 %v3088_v50, %v1714_v62  ;;  %v1715_v20 = vmul.f32 %v3082_v59, %v1711_v48  ;;  %v1716_v22 = vmul.f32 %v3088_v50, %v1713_v61 }
 0xb1f   : > { %1752 = vmatpush1.bf16.msra.mxu0 %v1733_v46 }
 0xb20   : > { %v1735_v28 = vpack.c.bf16 %v1717_v16, %v1715_v20  ;;  %v1736_v60 = vpack.c.bf16 %v1718_v17, %v1716_v22 }
 0xb22   : > { %1753 = vmatprep.subr.bf16.mxu0 %v1736_v60 }
 0xb23   : > { %1754 = vmatpush1.bf16.msra.mxu0 %v1735_v28 }
 0xb26   : > { %1770 = vmatmul.mubr.bf16.vlgmr.msra.gmra.mrb[12].mxu0 %v2330_v42 }
 0xbf9   : > { %v1771_v51 = vpop.f32.mrb[12].mxu0 }
 0xbfa   : > { %v1772_v1 = vadd.f32 %v1771_v51, %v2904_v25  ;;  %v1773_v47 = vpop.f32.mrb[13].mxu0 }
 0xbfb   : > { %v1774_v38 = vadd.f32 %v1773_v47, %v2904_v25  ;;  %v3510_v52 = vpop.f32.mrb[14].mxu0 }
 0xbfc   : > { %v1784_v59 = vmul.f32 %v1772_v1, %v1772_v1  ;;  %v3512_v50 = vpop.f32.mrb[15].mxu0 }
 0xbfd   : > { %v1785_v29 = vmul.f32 %v1774_v38, %v1774_v38  ;;  %v1780_v41 = vadd.f32 %v1774_v38, %v1772_v1 }
 0xbff   : > { %1781 = vadd.xlane.f32.xlu1 %v1780_v41  ;;  %v1786_v53 = vadd.f32 %v1785_v29, %v1784_v59 }
 0xc01   : > { %1787 = vadd.xlane.f32.xlu0 %v1786_v53 }
 0xc8c   : > { %v1782_v19 = vpop.xlane.xlu1 %1781 }
 0xc8d   : > { %v1783_v55 = vmul.f32 0.00390625, %v1782_v19 }
 0xc8e   : > { %v1788_v32 = vpop.xlane.xlu0 %1787 }
 0xc8f   : > { %v1789_v21 = vmul.f32 0.00390625, %v1788_v32  ;;  %v1790_v8 = vmul.f32 %v1783_v55, %v1783_v55  ;;  %v1793_v25 = vsub.f32 %v1772_v1, %v1783_v55  ;;  %v1794_v58 = vsub.f32 %v1774_v38, %v1783_v55 }
 0xc91   : > { %v1791_v10 = vsub.f32 %v1789_v21, %v1790_v8 }
 0xc93   : > { %v1792_v49 = vmax.f32 %v1791_v10, 0.0 }
 0xc95   : > { %v1795_v57 = vadd.f32 1e-05, %v1792_v49 }
 0xc97   : > { %2293 = vrsqrt.f32 %v1795_v57 }
 0xca1   : > { %v2294_v30 = vpop.eup %2293 }
 0xca2   : > { %v1797_v46 = vmul.f32 %v2294_v30, %v1793_v25  ;;  %v1798_v11 = vmul.f32 %v2294_v30, %v1794_v58 }
 0xca4   : > { %v3514_v26 = vmax.f32 %v1797_v46, 0.0  ;;  %v1800_v31 = vmax.f32 %v1798_v11, 0.0 }
 0xca6   : > { %1815 = vrot.lane.b32.xlu1 %v1800_v31, %s2343_s26  ;;  %1813 = vrot.lane.b32.xlu0 %v3514_v26, %s2343_s26 }
 0xcaa   : > { %1821 = vrot.lane.b32.xlu1 %v3514_v26, %s2342_s25  ;;  %1823 = vrot.lane.b32.xlu0 %v1800_v31, %s2342_s25 }
 0xcae   : > { %1829 = vrot.lane.b32.xlu1 %v3514_v26, %s2344_s27  ;;  %1831 = vrot.lane.b32.xlu0 %v1800_v31, %s2344_s27 }
 0xcb2   : > { %1837 = vrot.lane.b32.xlu1 %v3514_v26, %s2345_s28  ;;  %1839 = vrot.lane.b32.xlu0 %v1800_v31, %s2345_s28 }
 0xcb6   : > { %1845 = vrot.lane.b32.xlu1 %v3514_v26, %s2346_s29  ;;  %1847 = vrot.lane.b32.xlu0 %v1800_v31, %s2346_s29 }
 0xcba   : > { %1853 = vrot.lane.b32.xlu1 %v3514_v26, %s2347_s30  ;;  %1855 = vrot.lane.b32.xlu0 %v1800_v31, %s2347_s30 }
 0xcbe   : > { %1861 = vrot.lane.b32.xlu1 %v3514_v26, %s2349_s6  ;;  %1863 = vrot.lane.b32.xlu0 %v1800_v31, %s2349_s6 }
 0xcc2   : > { %1869 = vrot.lane.b32.xlu1 %v3514_v26, %s2350_s7  ;;  %1871 = vrot.lane.b32.xlu0 %v1800_v31, %s2350_s7 }
 0xd18   : > { %v1816_v62 = vpop.permute.xlu1 %1815  ;;  %v1814_v48 = vpop.permute.xlu0 %1813 }
 0xd19   : > { %v1817_v61 = vsel %vm264_vm1, %v1814_v48, %v1816_v62  ;;  %v1818_v16 = vsel %vm264_vm1, %v1816_v62, %v1814_v48 }
 0xd1a   : > { %v1819_v60 = vmul.f32 %v1818_v16, %v2470_v14  ;;  %v1820_v42 = vmul.f32 %v1817_v61, %v2463_v12 }
 0xd1c   : > { %v1822_v17 = vpop.permute.xlu1 %1821  ;;  %v1824_v20 = vpop.permute.xlu0 %1823 }
 0xd1d   : > { %v1825_v22 = vsel %vm281_vm0, %v1822_v17, %v1824_v20  ;;  %v1826_v28 = vsel %vm281_vm0, %v1824_v20, %v1822_v17 }
 0xd1e   : > { %v1827_v51 = vmul.f32 %v1826_v28, %v2473_v15  ;;  %v1828_v1 = vmul.f32 %v1825_v22, %v2466_v13 }
 0xd20   : > { %v1877_v47 = vpack.c.bf16 %v1827_v51, %v1819_v60  ;;  %v1830_v38 = vpop.permute.xlu1 %1829  ;;  %v1832_v59 = vpop.permute.xlu0 %1831  ;;  %v1878_v29 = vpack.c.bf16 %v1828_v1, %v1820_v42 }
 0xd21   : > { %v1833_v41 = vsel %vm298_vm2, %v1830_v38, %v1832_v59  ;;  %v1834_v53 = vsel %vm298_vm2, %v1832_v59, %v1830_v38 }
 0xd22   : > { %1893 = vmatprep.subr.bf16.mxu1 %v1878_v29  ;;  %v1835_v8 = vmul.f32 %v1834_v53, %v2493_v33  ;;  %v1836_v10 = vmul.f32 %v1833_v41, %v2496_v34 }
 0xd23   : > { %1894 = vmatpush1.bf16.msra.mxu1 %v1877_v47 }
 0xd24   : > { %v1838_v19 = vpop.permute.xlu1 %1837  ;;  %v1840_v55 = vpop.permute.xlu0 %1839 }
 0xd25   : > { %v1841_v32 = vsel %vm315_vm3, %v1838_v19, %v1840_v55  ;;  %v1842_v21 = vsel %vm315_vm3, %v1840_v55, %v1838_v19 }
 0xd26   : > { %v1843_v49 = vmul.f32 %v1842_v21, %v2499_v35  ;;  %v1844_v57 = vmul.f32 %v1841_v32, %v2502_v36  ;;  %v3590_v21 = vld [vmem:[%s3757_s1 + $0x10] ss:$0 sm:$0xff] }
 0xd28   : > { %v1879_v25 = vpack.c.bf16 %v1843_v49, %v1835_v8  ;;  %v1846_v58 = vpop.permute.xlu1 %1845  ;;  %v1848_v30 = vpop.permute.xlu0 %1847  ;;  %v1880_v46 = vpack.c.bf16 %v1844_v57, %v1836_v10  ;;  %v3596_v10 = vld [vmem:[%s3757_s1 + $0x18] ss:$0 sm:$0xff] }
 0xd29   : > { %v1849_v11 = vsel %vm332_vm4, %v1846_v58, %v1848_v30  ;;  %v1850_v62 = vsel %vm332_vm4, %v1848_v30, %v1846_v58  ;;  %v2333_v30 = vld [vmem:[%s3758_s2 + $0x10] sm:$0xff]  }
 0xd2a   : > { %v1851_v48 = vmul.f32 %v1849_v11, %v2514_v43  ;;  %v1852_v61 = vmul.f32 %v1850_v62, %v2517_v44  ;;  %1895 = vmatprep.subr.bf16.mxu1 %v1880_v46 }
 0xd2b   : > { %1896 = vmatpush1.bf16.msra.mxu1 %v1879_v25 }
 0xd2c   : > { %v1881_v16 = vpack.c.bf16 %v1851_v48, %v3514_v26  ;;  %v1854_v17 = vpop.permute.xlu1 %1853  ;;  %v1856_v20 = vpop.permute.xlu0 %1855  ;;  %v1882_v22 = vpack.c.bf16 %v1852_v61, %v1800_v31 }
 0xd2d   : > { %v1857_v28 = vsel %vm349_vm5, %v1854_v17, %v1856_v20  ;;  %v1858_v60 = vsel %vm349_vm5, %v1856_v20, %v1854_v17 }
 0xd2e   : > { %1897 = vmatprep.subr.bf16.mxu1 %v1882_v22  ;;  %v1859_v26 = vmul.f32 %v1857_v28, %v2536_v63  ;;  %v1860_v31 = vmul.f32 %v1858_v60, %v2539_v3 }
 0xd2f   : > { %1898 = vmatpush1.bf16.msra.mxu1 %v1881_v16 }
 0xd30   : > { %v1862_v42 = vpop.permute.xlu1 %1861  ;;  %v1864_v51 = vpop.permute.xlu0 %1863 }
 0xd31   : > { %v1865_v1 = vsel %vm366_vm6, %v1862_v42, %v1864_v51  ;;  %v1866_v47 = vsel %vm366_vm6, %v1864_v51, %v1862_v42 }
 0xd32   : > { %v1867_v38 = vmul.f32 %v1865_v1, %v2542_v4  ;;  %v1868_v59 = vmul.f32 %v1866_v47, %v2545_v7 }
 0xd34   : > { %v1883_v29 = vpack.c.bf16 %v1867_v38, %v1859_v26  ;;  %v1870_v41 = vpop.permute.xlu1 %1869  ;;  %v1872_v53 = vpop.permute.xlu0 %1871  ;;  %v1884_v19 = vpack.c.bf16 %v1868_v59, %v1860_v31 }
 0xd35   : > { %v1873_v55 = vsel %vm383_vm7, %v1870_v41, %v1872_v53  ;;  %v1874_v32 = vsel %vm383_vm7, %v1872_v53, %v1870_v41 }
 0xd36   : > { %v1875_v8 = vmul.f32 %v3590_v21, %v1873_v55  ;;  %v1876_v49 = vmul.f32 %v3596_v10, %v1874_v32  ;;  %1899 = vmatprep.subr.bf16.mxu1 %v1884_v19 }
 0xd37   : > { %1900 = vmatpush1.bf16.msra.mxu1 %v1883_v29 }
 0xd38   : > { %v1885_v57 = vpack.c.bf16 %v1875_v8, %v1875_v8  ;;  %v1886_v25 = vpack.c.bf16 %v1876_v49, %v1876_v49 }
 0xd3a   : > { %2217 = vmatprep.subr.msk.bf16.mxu1 %vm415_vm8, %v1886_v25  ;;  %v1888_v58 = vsel %vm415_vm8, %v1885_v57, 0 }
 0xd3b   : > { %1902 = vmatpush1.bf16.msra.mxu1 %v1888_v58 }
 0xd3e   : > { %2218 = vmatmul.mubr.msk.bf16.vlgmr.msra.gmra.mrb[16].mxu1 %vm411_vm9, %v2333_v30 }
 0xd3f   : > { %2082 = vmatprep.mubr.bf16.mxu1 %v2348_v2 }
 0xe11   : > { %v1927_v46 = vpop.f32.mrb[16].mxu1 }
 0xe12   : > { %v1928_v11 = vadd.f32 %v1927_v46, %v3103_v9  ;;  %v1929_v62 = vpop.f32.mrb[17].mxu1 }
 0xe13   : > { %v1930_v48 = vadd.f32 %v1929_v62, %v3103_v9  ;;  %v1931_v61 = vpop.f32.mrb[18].mxu1 }
 0xe14   : > { %v2219_v16 = vmul.f32 -1.442695, %v1928_v11  ;;  %v1932_v17 = vpop.f32.mrb[19].mxu1 }
 0xe15   : > { %v2220_v20 = vmul.f32 -1.442695, %v1930_v48 }
 0xe16   : > { %2295 = vpow2.f32 %v2219_v16 }
 0xe17   : > { %2297 = vpow2.f32 %v2220_v20 }
 0xe20   : > { %v2296_v22 = vpop.eup %2295 }
 0xe21   : > { %v2298_v28 = vpop.eup %2297  ;;  %v1940_v60 = vadd.f32 1.0, %v2296_v22 }
 0xe22   : > { %v1941_v42 = vadd.f32 1.0, %v2298_v28 }
 0xe23   : > { %2299 = vrcp.f32 %v1940_v60 }
 0xe24   : > { %2301 = vrcp.f32 %v1941_v42 }
 0xe2d   : > { %v3608_v51 = vpop.eup %2299 }
 0xe2e   : > { %v3610_v2 = vpop.eup %2301  ;;  %v1949_v1 = vrot.slane %v3608_v51, %v2446_v6  ;;  %v1956_v9 = vsub.f32 1.0, %v3608_v51 }
 0xe2f   : > { %v1953_v47 = vrot.slane %v3610_v2, %v2446_v6  ;;  %v1957_v26 = vsub.f32 1.0, %v3610_v2 }
 0xe30   : > { %v1961_v31 = vrot.slane %v1956_v9, %v2446_v6  ;;  %v1954_v59 = vmul.f32 %v1949_v1, %v3333_v56  ;;  %v254_v56 = vld [vmem:[%s3760_s4 + $0x30] sm:$0xff] }
 0xe31   : > { %v1965_v38 = vrot.slane %v1957_v26, %v2446_v6  ;;  %v1955_v41 = vmul.f32 %v1953_v47, %v3335_v54  ;;  %v251_v6 = vld [vmem:[%s3760_s4 + $0x18] sm:$0xff] }
 0xe32   : > { %v1966_v29 = vmul.f32 %v1961_v31, %v3347_v0 }
 0xe33   : > { %v1967_v53 = vmul.f32 %v1965_v38, %v3341_v37 }
 0xe34   : > { %v3624_v19 = vadd.f32 %v1966_v29, %v1954_v59 }
 0xe35   : > { %v3626_v55 = vadd.f32 %v1967_v53, %v1955_v41 }
 0xe36   : > { %1970 = vrot.lane.b32.xlu1 %v3624_v19, %s2343_s26 }
 0xe37   : > { %1972 = vrot.lane.b32.xlu0 %v3626_v55, %s2343_s26 }
 0xe3a   : > { %1978 = vrot.lane.b32.xlu1 %v3624_v19, %s2342_s25 }
 0xe3b   : > { %1980 = vrot.lane.b32.xlu0 %v3626_v55, %s2342_s25 }
 0xe3e   : > { %1986 = vrot.lane.b32.xlu1 %v3624_v19, %s2344_s27 }
 0xe3f   : > { %1988 = vrot.lane.b32.xlu0 %v3626_v55, %s2344_s27 }
 0xe42   : > { %1994 = vrot.lane.b32.xlu1 %v3624_v19, %s2345_s28 }
 0xe43   : > { %1996 = vrot.lane.b32.xlu0 %v3626_v55, %s2345_s28 }
 0xe46   : > { %2002 = vrot.lane.b32.xlu1 %v3624_v19, %s2346_s29 }
 0xe47   : > { %2004 = vrot.lane.b32.xlu0 %v3626_v55, %s2346_s29 }
 0xe4a   : > { %2010 = vrot.lane.b32.xlu1 %v3624_v19, %s2347_s30 }
 0xe4b   : > { %2012 = vrot.lane.b32.xlu0 %v3626_v55, %s2347_s30 }
 0xe4e   : > { %2018 = vrot.lane.b32.xlu1 %v3624_v19, %s2349_s6 }
 0xe4f   : > { %2020 = vrot.lane.b32.xlu0 %v3626_v55, %s2349_s6  ;;  %s3732_s6 = scalar_lea.vmem %s3761_s5, %s2227_s21 }
 0xe52   : > { %2026 = vrot.lane.b32.xlu1 %v3624_v19, %s2350_s7 }
 0xe53   : > { %2028 = vrot.lane.b32.xlu0 %v3626_v55, %s2350_s7 }
 0xe56   : > { %836 = vperm.xlu1 %2247, %v251_v6  }
 0xe57   : > { %1178 = vperm.xlu0 %2246, %v254_v56  }
 0xea8   : > { %v1971_v54 = vpop.permute.xlu1 %1970 }
 0xea9   : > { %v1973_v37 = vpop.permute.xlu0 %1972 }
 0xeaa   : > { %v1974_v0 = vsel %vm264_vm1, %v1971_v54, %v1973_v37  ;;  %v1975_v32 = vsel %vm264_vm1, %v1973_v37, %v1971_v54 }
 0xeab   : > { %v1976_v58 = vmul.f32 %v1975_v32, %v2470_v14  ;;  %v1977_v30 = vmul.f32 %v1974_v0, %v2463_v12 }
 0xeac   : > { %v1979_v8 = vpop.permute.xlu1 %1978 }
 0xead   : > { %v1981_v49 = vpop.permute.xlu0 %1980 }
 0xeae   : > { %v1982_v57 = vsel %vm281_vm0, %v1979_v8, %v1981_v49  ;;  %v1983_v25 = vsel %vm281_vm0, %v1981_v49, %v1979_v8 }
 0xeaf   : > { %v1984_v46 = vmul.f32 %v1983_v25, %v2473_v15  ;;  %v1985_v11 = vmul.f32 %v1982_v57, %v2466_v13 }
 0xeb0   : > { %v1987_v62 = vpop.permute.xlu1 %1986 }
 0xeb1   : > { %v2034_v48 = vpack.c.bf16 %v1984_v46, %v1976_v58  ;;  %v1989_v61 = vpop.permute.xlu0 %1988  ;;  %v2035_v16 = vpack.c.bf16 %v1985_v11, %v1977_v30 }
 0xeb2   : > { %v1990_v17 = vsel %vm298_vm2, %v1987_v62, %v1989_v61  ;;  %v1991_v20 = vsel %vm298_vm2, %v1989_v61, %v1987_v62 }
 0xeb3   : > { %2050 = vmatprep.subr.bf16.mxu1 %v2035_v16  ;;  %v1992_v15 = vmul.f32 %v1991_v20, %v2493_v33  ;;  %v1993_v28 = vmul.f32 %v1990_v17, %v2496_v34 }
 0xeb4   : > { %2051 = vmatpush1.bf16.msra.mxu1 %v2034_v48  ;;  %v1995_v22 = vpop.permute.xlu1 %1994 }
 0xeb5   : > { %v1997_v14 = vpop.permute.xlu0 %1996 }
 0xeb6   : > { %v1998_v12 = vsel %vm315_vm3, %v1995_v22, %v1997_v14  ;;  %v1999_v13 = vsel %vm315_vm3, %v1997_v14, %v1995_v22  ;;  %v1250_v14 = vrot.slane %v3107_v27, 3 }
 0xeb7   : > { %v2000_v60 = vmul.f32 %v1999_v13, %v2499_v35  ;;  %v2001_v42 = vmul.f32 %v1998_v12, %v2502_v36 }
 0xeb8   : > { %v2003_v1 = vpop.permute.xlu1 %2002 }
 0xeb9   : > { %v2036_v9 = vpack.c.bf16 %v2000_v60, %v1992_v15  ;;  %v2005_v47 = vpop.permute.xlu0 %2004  ;;  %v2037_v26 = vpack.c.bf16 %v2001_v42, %v1993_v28 }
 0xeba   : > { %v2006_v31 = vsel %vm332_vm4, %v2003_v1, %v2005_v47  ;;  %v2007_v38 = vsel %vm332_vm4, %v2005_v47, %v2003_v1 }
 0xebb   : > { %v2008_v59 = vmul.f32 %v2006_v31, %v2514_v43  ;;  %v2009_v33 = vmul.f32 %v2007_v38, %v2517_v44  ;;  %2052 = vmatprep.subr.bf16.mxu1 %v2037_v26 }
 0xebc   : > { %2053 = vmatpush1.bf16.msra.mxu1 %v2036_v9  ;;  %v2011_v34 = vpop.permute.xlu1 %2010 }
 0xebd   : > { %v2038_v35 = vpack.c.bf16 %v2008_v59, %v3624_v19  ;;  %v2013_v36 = vpop.permute.xlu0 %2012  ;;  %v2039_v29 = vpack.c.bf16 %v2009_v33, %v3626_v55 }
 0xebe   : > { %v2014_v41 = vsel %vm349_vm5, %v2011_v34, %v2013_v36  ;;  %v2015_v53 = vsel %vm349_vm5, %v2013_v36, %v2011_v34 }
 0xebf   : > { %2054 = vmatprep.subr.bf16.mxu1 %v2039_v29  ;;  %v2016_v19 = vmul.f32 %v2014_v41, %v2536_v63  ;;  %v2017_v55 = vmul.f32 %v2015_v53, %v2539_v3 }
 0xec0   : > { %2055 = vmatpush1.bf16.msra.mxu1 %v2038_v35  ;;  %v2019_v6 = vpop.permute.xlu1 %2018 }
 0xec1   : > { %v2021_v43 = vpop.permute.xlu0 %2020 }
 0xec2   : > { %v2022_v44 = vsel %vm366_vm6, %v2019_v6, %v2021_v43  ;;  %v2023_v56 = vsel %vm366_vm6, %v2021_v43, %v2019_v6  ;;  %v2101_v43 = vrot.slane %v3608_v51, 3 }
 0xec3   : > { %v2024_v54 = vmul.f32 %v2022_v44, %v2542_v4  ;;  %v2025_v37 = vmul.f32 %v2023_v56, %v2545_v7 }
 0xec4   : > { %v2027_v0 = vpop.permute.xlu1 %2026 }
 0xec5   : > { %v2040_v32 = vpack.c.bf16 %v2024_v54, %v2016_v19  ;;  %v2029_v8 = vpop.permute.xlu0 %2028  ;;  %v2041_v49 = vpack.c.bf16 %v2025_v37, %v2017_v55  ;;  %v2102_v19 = vrot.slane %v3610_v2, 3 }
 0xec6   : > { %v2030_v57 = vsel %vm383_vm7, %v2027_v0, %v2029_v8  ;;  %v2031_v25 = vsel %vm383_vm7, %v2029_v8, %v2027_v0 }
 0xec7   : > { %v2032_v58 = vmul.f32 %v3590_v21, %v2030_v57  ;;  %v2033_v63 = vmul.f32 %v3596_v10, %v2031_v25  ;;  %2056 = vmatprep.subr.bf16.mxu1 %v2041_v49 }
 0xec8   : > { %2057 = vmatpush1.bf16.msra.mxu1 %v2040_v32 }
 0xec9   : > { %v2042_v3 = vpack.c.bf16 %v2032_v58, %v2032_v58  ;;  %v2043_v4 = vpack.c.bf16 %v2033_v63, %v2033_v63 }
 0xecb   : > { %2221 = vmatprep.subr.msk.bf16.mxu1 %vm415_vm8, %v2043_v4  ;;  %v2045_v7 = vsel %vm415_vm8, %v2042_v3, 0 }
 0xecc   : > { %2059 = vmatpush1.bf16.msra.mxu1 %v2045_v7 }
 0xecf   : > { %2222 = vmatmul.mubr.msk.bf16.vlgmr.msra.gmra.mrb[20].mxu1 %vm411_vm9, %v3280_v39 }
 0xed5   : > { %v837_v30 = vpop.permute.xlu1 %836 }
 0xed6   : > { %v891_v5 = vadd.f32 %v2936_v23, %v837_v30  ;;  %v893_v46 = vadd.f32 %v2938_v24, %v837_v30  ;;  %v1776_v21 = vadd.f32 %v3510_v52, %v837_v30  ;;  %v1778_v10 = vadd.f32 %v3512_v50, %v837_v30  ;;  %v1179_v48 = vpop.permute.xlu0 %1178 }
 0xed7   : > { %v1234_v20 = vadd.f32 %v3325_v45, %v1179_v48  ;;  %v1236_v23 = vadd.f32 %v3327_v18, %v1179_v48  ;;  %v1251_v45 = vrot.slane %v3123_v40, 3 }
 0xed8   : > { %v2196_v11 = vmul.f32 -1.442695, %v891_v5  ;;  %v2197_v62 = vmul.f32 -1.442695, %v893_v46  ;;  %v2215_v1 = vmul.f32 -1.442695, %v1776_v21 }
 0xed9   : > { %v2216_v9 = vmul.f32 -1.442695, %v1778_v10 }
 0xeda   : > { %2303 = vpow2.f32 %v2196_v11 }
 0xedb   : > { %2305 = vpow2.f32 %v2197_v62 }
 0xee4   : > { %v2304_v61 = vpop.eup %2303 }
 0xee5   : > { %v2306_v16 = vpop.eup %2305  ;;  %v922_v17 = vadd.f32 1.0, %v2304_v61 }
 0xee6   : > { %v923_v39 = vadd.f32 1.0, %v2306_v16 }
 0xee7   : > { %2307 = vrcp.f32 %v922_v17 }
 0xee8   : > { %2309 = vrcp.f32 %v923_v39 }
 0xee9   : > { %2311 = vtanh.f32 %v1234_v20 }
 0xeea   : > { %2313 = vtanh.f32 %v1236_v23 }
 0xeeb   : > { %2315 = vpow2.f32 %v2215_v1 }
 0xeec   : > { %2317 = vpow2.f32 %v2216_v9 }
 0xef1   : > { %v2308_v24 = vpop.eup %2307 }
 0xef2   : > { %v2310_v52 = vpop.eup %2309  ;;  %v1244_v50 = vrot.slane %v2308_v24, 5 }
 0xef3   : > { %v2312_v22 = vpop.eup %2311  ;;  %v1245_v12 = vrot.slane %v2310_v52, 5 }
 0xef4   : > { %v2314_v13 = vpop.eup %2313  ;;  %v1255_v18 = vsel %vm1254_vm11, %v2312_v22, %v1244_v50 }
 0xef5   : > { %v1256_v15 = vsel %vm1254_vm11, %v2314_v13, %v1245_v12  ;;  %v1258_v28 = vsel %vm1257_vm12, %v1255_v18, %v1250_v14  ;;  %v2316_v47 = vpop.eup %2315 }
 0xef6   : > { %v1259_v27 = vsel %vm1257_vm12, %v1256_v15, %v1251_v45  ;;  %v1261_v60 = vsel %vm1260_vm13, %v1258_v28, 0.0  ;;  %v2318_v40 = vpop.eup %2317  ;;  %v1807_v26 = vadd.f32 1.0, %v2316_v47 }
 0xef7   : > { %v1262_v42 = vsel %vm1260_vm13, %v1259_v27, 0.0  ;;  %1263 = vst [vmem:[%s3732_s6] sm:$0xff] %v1261_v60  ;;  %v1808_v31 = vadd.f32 1.0, %v2318_v40 }
 0xef8   : > { %1264 = vst [vmem:[%s3732_s6 + $0x8] sm:$0xff] %v1262_v42  ;;  %2319 = vrcp.f32 %v1807_v26 }
 0xef9   : > { %2321 = vrcp.f32 %v1808_v31 }
 0xf02   : > { %v2320_v29 = vpop.eup %2319 }
 0xf03   : > { %v2322_v41 = vpop.eup %2321  ;;  %v2095_v53 = vrot.slane %v2320_v29, 5 }
 0xf04   : > { %v2096_v44 = vrot.slane %v2322_v41, 5 }
 0xfa2   : > { %v2084_v38 = vpop.f32.mrb[20].mxu1 }
 0xfa3   : > { %v2085_v59 = vadd.f32 %v2084_v38, %v1179_v48  ;;  %v2086_v33 = vpop.f32.mrb[21].mxu1 }
 0xfa4   : > { %v2087_v34 = vadd.f32 %v2086_v33, %v1179_v48  ;;  %v2088_v35 = vpop.f32.mrb[22].mxu1 }
 0xfa5   : > { %2323 = vtanh.f32 %v2085_v59  ;;  %v2089_v36 = vpop.f32.mrb[23].mxu1 }
 0xfa6   : > { %2325 = vtanh.f32 %v2087_v34 }
 0xfaf   : > { %v2324_v6 = vpop.eup %2323 }
 0xfb0   : > { %v2326_v56 = vpop.eup %2325  ;;  %v2105_v55 = vsel %vm1254_vm11, %v2324_v6, %v2095_v53 }
 0xfb1   : > { %v2107_v54 = vsel %vm1257_vm12, %v2105_v55, %v2101_v43  ;;  %v2106_v37 = vsel %vm1254_vm11, %v2326_v56, %v2096_v44 }
 0xfb2   : > { %v2109_v0 = vsel %vm1260_vm13, %v2107_v54, 0.0  ;;  %v2108_v32 = vsel %vm1257_vm12, %v2106_v37, %v2102_v19 }
 0xfb3   : > { %2223 = vst [vmem:[%s3732_s6 + $0x10] sm:$0xff] %v2109_v0  ;;  %v2110_v8 = vsel %vm1260_vm13, %v2108_v32, 0.0 }
 0xfb4   : > { %2224 = vst [vmem:[%s3732_s6 + $0x18] sm:$0xff] %v2110_v8 }
 0xfb5 PF: > { %s15_s18 = sadd.s32 1, %s2340_s18  }
 0xfb6   : > { %p12_p4 = scmp.ge.s32.totalorder %s15_s18, 4  }
 0xfb8   :  { %14 = sbr.rel (!%p12_p4) target bundleno = 1 (0x1), region = 72 }

</bundles_post_ra>
